<compile_context>
chip_gen: v7x
topology: tpu7x:2x2x1
jax: 0.10.0
libtpu: 0.0.40
codegen_flags: <defaults>
</compile_context>

<pallas_src>
import functools

import jax
import jax.numpy as jnp
from jax.experimental import pallas as pl
from jax.experimental.pallas import tpu as pltpu

K = 7   # conv kernel size
P = 3   # conv padding


def _round_up(x, m):
    return ((x + m - 1) // m) * m


def spatial_attention_kernel(x_ref, w_ref, o_ref,
                             sum_ref, max_ref, apad_ref, mpad_ref,
                             *, C, W, PADH, CHUNK, mask_channels):
    # x_ref : (1, Ct, HWp)  lane-dense channel tile of one batch element
    # w_ref : (2*K*K,)      conv1 weight, flattened, in SMEM
    # o_ref : (1, 1, HWp)   lane-dense output block (resident across c axis)
    Ct = x_ref.shape[1]
    HWp = x_ref.shape[2]
    c = pl.program_id(1)

    # ---- fused partial mean/max over this channel tile (lane-dense) -------
    x = x_ref[0].astype(jnp.float32)                      # (Ct, HWp)
    if mask_channels:
        # C was padded wrapper-side to a multiple of Ct: mask padded channels
        # (neutral element 0 for the sum, -inf for the max).
        ch = c * Ct + jax.lax.broadcasted_iota(jnp.int32, (Ct, 1), 0)
        ok = ch < C
        psum = jnp.sum(jnp.where(ok, x, 0.0), axis=0, keepdims=True)
        pmax = jnp.max(jnp.where(ok, x, -jnp.inf), axis=0, keepdims=True)
    else:
        psum = jnp.sum(x, axis=0, keepdims=True)           # (1, HWp)
        pmax = jnp.max(x, axis=0, keepdims=True)           # (1, HWp)

    @pl.when(c == 0)
    def _init():
        sum_ref[...] = psum
        max_ref[...] = pmax

    @pl.when(c > 0)
    def _accumulate():
        sum_ref[...] = sum_ref[...] + psum
        max_ref[...] = jnp.maximum(max_ref[...], pmax)

    # ---- finalize: 7x7 conv over [avg, max] planes + sigmoid ---------------
    @pl.when(c == pl.num_programs(1) - 1)
    def _finalize():
        # Flat planes with 128-aligned zeroed halos on both sides.  The halo
        # absorbs every tap whose row falls outside the image, so no row
        # masks are needed in the tap loop (only column-wrap masks).
        zhalo = jnp.zeros((1, PADH), jnp.float32)
        apad_ref[:, pl.ds(0, PADH)] = zhalo
        apad_ref[:, pl.ds(PADH + HWp, PADH)] = zhalo
        mpad_ref[:, pl.ds(0, PADH)] = zhalo
        mpad_ref[:, pl.ds(PADH + HWp, PADH)] = zhalo
        apad_ref[:, pl.ds(PADH, HWp)] = sum_ref[...] * jnp.float32(1.0 / C)
        mpad_ref[:, pl.ds(PADH, HWp)] = max_ref[...]

        def conv_chunk(base):
            # One lane chunk of the output plane (<= CHUNK lanes), kept small
            # enough that the 4 accumulators + taps stay register-resident.
            lin = base + jax.lax.broadcasted_iota(jnp.int32, (1, CHUNK), 1)
            col = lin % W
            accs = [jnp.zeros((1, CHUNK), jnp.float32) for _ in range(4)]
            t = 0
            for kw in range(K):                      # kw outer: one col mask live
                dw = kw - P
                col_ok = None if dw == 0 else ((col >= -dw) & (col < W - dw))
                for kh in range(K):
                    dh = kh - P
                    off = dh * W + dw                # flat tap offset
                    start = base + (PADH + off)
                    a_tap = apad_ref[:, pl.ds(start, CHUNK)]
                    m_tap = mpad_ref[:, pl.ds(start, CHUNK)]
                    w_avg = w_ref[kh * K + kw]          # conv in-channel 0 (avg)
                    w_max = w_ref[K * K + kh * K + kw]  # conv in-channel 1 (max)
                    contrib = a_tap * w_avg + m_tap * w_max
                    if col_ok is not None:
                        contrib = jnp.where(col_ok, contrib, 0.0)
                    accs[t % 4] = accs[t % 4] + contrib
                    t += 1
            conv = (accs[0] + accs[1]) + (accs[2] + accs[3])
            o_ref[0, :, pl.ds(base, CHUNK)] = (
                jax.nn.sigmoid(conv).astype(o_ref.dtype))

        n_chunks = HWp // CHUNK
        if n_chunks <= 4:
            # Fully static indexing for small planes (the common case).
            for ci in range(n_chunks):
                conv_chunk(ci * CHUNK)
        else:
            # Strip-mine large planes so live values stay within the vreg file.
            def body(ci, carry):
                conv_chunk(pl.multiple_of(ci * CHUNK, 128))
                return carry
            jax.lax.fori_loop(0, n_chunks, body, 0)


def _pick_channel_tile(C, hw_pad, dtype, target_bytes):
    """Channel tile (Ct) and padded channel count (C_pad).

    Ct respects the dtype's sublane packing (8 / 16 / 32 rows), stays near
    target_bytes per block, and C is padded up only when no clean divisor
    exists (padded channels are masked in-kernel)."""
    itemsize = jnp.dtype(dtype).itemsize
    mult = 8 if itemsize >= 4 else (16 if itemsize == 2 else 32)
    budget_rows = max(1, target_bytes // max(1, hw_pad * itemsize))
    if C <= budget_rows:
        return C, C                                   # single full-channel tile
    max_ct = max(mult, (budget_rows // mult) * mult)
    for cand in range(max_ct, mult - 1, -mult):       # prefer a divisor of C
        if C % cand == 0:
            return cand, C
    ct = max_ct                                       # no divisor: pad C, mask in kernel
    return ct, _round_up(C, ct)


def _pick_conv_chunk(hw_pad, max_chunk=512):
    """Largest multiple of 128 that divides hw_pad and is <= max_chunk."""
    m = hw_pad // 128
    best = 1
    for d in range(1, min(m, max_chunk // 128) + 1):
        if m % d == 0:
            best = d
    return 128 * best


def spatial_attention(x, weight, *, target_block_bytes=4 * 1024 * 1024):
    """x: (N, C, H, W);  weight: (1, 2, K, K) conv filter (bias-free)."""
    N, C, H, W = x.shape
    HW = H * W
    HW_pad = _round_up(HW, 128)          # lane-dense, 128-aligned planes
    PADF = P * W + P                     # max |flat offset| of a conv tap
    PADH = _round_up(PADF, 128)          # 128-aligned halo width

    Ct, C_pad = _pick_channel_tile(C, HW_pad, x.dtype, target_block_bytes)
    Cn = C_pad // Ct
    CHUNK = _pick_conv_chunk(HW_pad)

    x_flat = x.reshape(N, C, HW)
    if C_pad != C or HW_pad != HW:
        # Zero padding: padded HW positions reduce to 0 (correct conv zero
        # padding); padded channels are masked inside the kernel.
        x_flat = jnp.pad(x_flat, ((0, 0), (0, C_pad - C), (0, HW_pad - HW)))
    w_flat = weight.astype(jnp.float32).reshape(-1)    # (2*K*K,) -> SMEM

    kernel = functools.partial(
        spatial_attention_kernel, C=C, W=W, PADH=PADH, CHUNK=CHUNK,
        mask_channels=(C_pad != C))

    cost = pl.CostEstimate(
        flops=int(N * (2 * C_pad * HW_pad + 4 * K * K * HW_pad)),
        transcendentals=int(N * HW_pad),
        bytes_accessed=int(x.dtype.itemsize * N * (C_pad + 1) * HW_pad
                           + 4 * 2 * K * K),
    )

    out_flat = pl.pallas_call(
        kernel,
        out_shape=jax.ShapeDtypeStruct((N, 1, HW_pad), x.dtype),
        grid=(N, Cn),
        in_specs=[
            pl.BlockSpec((1, Ct, HW_pad), lambda n, c: (n, c, 0)),
            pl.BlockSpec(memory_space=pltpu.MemorySpace.SMEM),
        ],
        out_specs=pl.BlockSpec((1, 1, HW_pad), lambda n, c: (n, 0, 0)),
        scratch_shapes=[
            pltpu.VMEM((1, HW_pad), jnp.float32),               # running sum over C
            pltpu.VMEM((1, HW_pad), jnp.float32),               # running max over C
            pltpu.VMEM((1, HW_pad + 2 * PADH), jnp.float32),    # halo-padded avg plane
            pltpu.VMEM((1, HW_pad + 2 * PADH), jnp.float32),    # halo-padded max plane
        ],
        compiler_params=pltpu.CompilerParams(
            # N axis "parallel" (megacore sharding); C axis is the reduction.
            # On v7x, pltpu.CORE_PARALLEL on the N axis is the next lever.
            dimension_semantics=("parallel", "arbitrary"),
            vmem_limit_bytes=32 * 1024 * 1024,   # raises v5e's 16 MiB default
        ),
        cost_estimate=cost,
    )(x_flat, w_flat)

    return out_flat[:, :, :HW].reshape(N, 1, H, W)


def spatial_attention_ref(x, weight):
    """Pure-JAX reference matching the PyTorch module."""
    avg = jnp.mean(x, axis=1, keepdims=True)
    mx = jnp.max(x, axis=1, keepdims=True)
    cat = jnp.concatenate([avg, mx], axis=1)
    out = jax.lax.conv_general_dilated(
        cat, weight, window_strides=(1, 1), padding=[(P, P), (P, P)],
        dimension_numbers=("NCHW", "OIHW", "NCHW"))
    return jax.nn.sigmoid(out)


if __name__ == "__main__":
    key = jax.random.PRNGKey(0)
    kx, kw, kx2 = jax.random.split(key, 3)

    # Conv1 weight (1, 2, 7, 7), bias=False, kaiming-uniform-like scale.
    fan_in = 2 * K * K
    bound = (1.0 / fan_in) ** 0.5
    weight = jax.random.uniform(
        kw, (1, 2, K, K), dtype=jnp.float32, minval=-bound, maxval=bound)

    # Case 1: canonical small shape (single channel tile, HW already 128-aligned).
    N, C, H, W = 2, 4, 16, 16
    x = jax.random.normal(kx, (N, C, H, W), dtype=jnp.float32)
    out = jax.block_until_ready(spatial_attention(x, weight))
    ref = spatial_attention_ref(x, weight)
    assert out.shape == (N, 1, H, W)
    assert jnp.allclose(out, ref, atol=1e-5, rtol=1e-5), (
        float(jnp.max(jnp.abs(out - ref))))

    # Case 2: exercises channel tiling + padded-C masking + HW padding to 128
    # (small target_block_bytes forces the multi-tile reduction path).
    N2, C2, H2, W2 = 2, 20, 10, 16
    x2 = jax.random.normal(kx2, (N2, C2, H2, W2), dtype=jnp.float32)
    out2 = jax.block_until_ready(
        spatial_attention(x2, weight, target_block_bytes=8 * 256 * 4))
    ref2 = spatial_attention_ref(x2, weight)
    assert out2.shape == (N2, 1, H2, W2)
    assert jnp.allclose(out2, ref2, atol=1e-5, rtol=1e-5), (
        float(jnp.max(jnp.abs(out2 - ref2))))

    print("KERNEL_OK")
</pallas_src>

<mosaic_0001>
module attributes {stable_mosaic.version = 11 : i64} {
  func.func @spatial_attention_kernel(%arg0: i32, %arg1: i32, %arg2: memref<1x4x256xf32, #tpu.memory_space<vmem>>, %arg3: memref<98xf32, #tpu.memory_space<smem>>, %arg4: memref<1x1x256xf32, #tpu.memory_space<vmem>>, %arg5: memref<1x256xf32, #tpu.memory_space<vmem>>, %arg6: memref<1x256xf32, #tpu.memory_space<vmem>>, %arg7: memref<1x512xf32, #tpu.memory_space<vmem>>, %arg8: memref<1x512xf32, #tpu.memory_space<vmem>>) attributes {dimension_semantics = [#tpu.dimension_semantics<parallel>, #tpu.dimension_semantics<arbitrary>], iteration_bounds = array<i64: 2, 1>, scalar_prefetch = 0 : i64, scratch_operands = 4 : i64, tpu.core_type = #tpu.core_type<tc>, window_params = [{transform_indices = @transform_0, window_bounds = array<i64: 1, 4, 256>}, {transform_indices = @transform_1, window_bounds = array<i64: 98>}, {transform_indices = @transform_2, window_bounds = array<i64: 1, 1, 256>}]} {
    %c0 = arith.constant 0 : index
    %c0_0 = arith.constant 0 : index
    %c0_1 = arith.constant 0 : index
    %0 = vector.load %arg2[%c0, %c0_0, %c0_1] : memref<1x4x256xf32, #tpu.memory_space<vmem>>, vector<1x4x256xf32>
    %1 = vector.shape_cast %0 : vector<1x4x256xf32> to vector<4x256xf32>
    %cst = arith.constant dense<0.000000e+00> : vector<256xf32>
    %2 = vector.multi_reduction <add>, %1, %cst [0] : vector<4x256xf32> to vector<256xf32>
    %3 = vector.shape_cast %2 : vector<256xf32> to vector<1x256xf32>
    %cst_2 = arith.constant dense<0xFF800000> : vector<256xf32>
    %4 = vector.multi_reduction <maximumf>, %1, %cst_2 [0] : vector<4x256xf32> to vector<256xf32>
    %5 = vector.shape_cast %4 : vector<256xf32> to vector<1x256xf32>
    %c0_i32 = arith.constant 0 : i32
    %6 = arith.cmpi eq, %arg1, %c0_i32 : i32
    %7 = arith.extui %6 : i1 to i32
    %c0_i32_3 = arith.constant 0 : i32
    %8 = arith.cmpi ne, %7, %c0_i32_3 : i32
    scf.if %8 {
      %c0_8 = arith.constant 0 : index
      %c0_9 = arith.constant 0 : index
      %15 = vector.load %arg5[%c0_8, %c0_9] : memref<1x256xf32, #tpu.memory_space<vmem>>, vector<1x256xf32>
      tpu.vector_store %arg5[%c0_8, %c0_9], %3 {strides = array<i32>} : memref<1x256xf32, #tpu.memory_space<vmem>>, vector<1x256xf32>,
      %c0_10 = arith.constant 0 : index
      %c0_11 = arith.constant 0 : index
      %16 = vector.load %arg6[%c0_10, %c0_11] : memref<1x256xf32, #tpu.memory_space<vmem>>, vector<1x256xf32>
      tpu.vector_store %arg6[%c0_10, %c0_11], %5 {strides = array<i32>} : memref<1x256xf32, #tpu.memory_space<vmem>>, vector<1x256xf32>,
    } else {
    }
    %c0_i32_4 = arith.constant 0 : i32
    %9 = arith.cmpi sgt, %arg1, %c0_i32_4 : i32
    %10 = arith.extui %9 : i1 to i32
    %c0_i32_5 = arith.constant 0 : i32
    %11 = arith.cmpi ne, %10, %c0_i32_5 : i32
    scf.if %11 {
      %c0_8 = arith.constant 0 : index
      %c0_9 = arith.constant 0 : index
      %15 = vector.load %arg5[%c0_8, %c0_9] : memref<1x256xf32, #tpu.memory_space<vmem>>, vector<1x256xf32>
      %16 = arith.addf %15, %3 : vector<1x256xf32>
      %c0_10 = arith.constant 0 : index
      %c0_11 = arith.constant 0 : index
      %17 = vector.load %arg5[%c0_10, %c0_11] : memref<1x256xf32, #tpu.memory_space<vmem>>, vector<1x256xf32>
      tpu.vector_store %arg5[%c0_10, %c0_11], %16 {strides = array<i32>} : memref<1x256xf32, #tpu.memory_space<vmem>>, vector<1x256xf32>,
      %c0_12 = arith.constant 0 : index
      %c0_13 = arith.constant 0 : index
      %18 = vector.load %arg6[%c0_12, %c0_13] : memref<1x256xf32, #tpu.memory_space<vmem>>, vector<1x256xf32>
      %19 = arith.maximumf %18, %5 : vector<1x256xf32>
      %c0_14 = arith.constant 0 : index
      %c0_15 = arith.constant 0 : index
      %20 = vector.load %arg6[%c0_14, %c0_15] : memref<1x256xf32, #tpu.memory_space<vmem>>, vector<1x256xf32>
      tpu.vector_store %arg6[%c0_14, %c0_15], %19 {strides = array<i32>} : memref<1x256xf32, #tpu.memory_space<vmem>>, vector<1x256xf32>,
    } else {
    }
    %c0_i32_6 = arith.constant 0 : i32
    %12 = arith.cmpi eq, %arg1, %c0_i32_6 : i32
    %13 = arith.extui %12 : i1 to i32
    %c0_i32_7 = arith.constant 0 : i32
    %14 = arith.cmpi ne, %13, %c0_i32_7 : i32
    scf.if %14 {
      %cst_8 = arith.constant 0.000000e+00 : f32
      %15 = vector.broadcast %cst_8 : f32 to vector<1x128xf32>
      %c0_9 = arith.constant 0 : index
      %c0_10 = arith.constant 0 : index
      %16 = vector.load %arg7[%c0_9, %c0_10] : memref<1x512xf32, #tpu.memory_space<vmem>>, vector<1x128xf32>
      tpu.vector_store %arg7[%c0_9, %c0_10], %15 {strides = array<i32>} : memref<1x512xf32, #tpu.memory_space<vmem>>, vector<1x128xf32>,
      %c0_11 = arith.constant 0 : index
      %c384 = arith.constant 384 : index
      %17 = vector.load %arg7[%c0_11, %c384] : memref<1x512xf32, #tpu.memory_space<vmem>>, vector<1x128xf32>
      tpu.vector_store %arg7[%c0_11, %c384], %15 {strides = array<i32>} : memref<1x512xf32, #tpu.memory_space<vmem>>, vector<1x128xf32>,
      %c0_12 = arith.constant 0 : index
      %c0_13 = arith.constant 0 : index
      %18 = vector.load %arg8[%c0_12, %c0_13] : memref<1x512xf32, #tpu.memory_space<vmem>>, vector<1x128xf32>
      tpu.vector_store %arg8[%c0_12, %c0_13], %15 {strides = array<i32>} : memref<1x512xf32, #tpu.memory_space<vmem>>, vector<1x128xf32>,
      %c0_14 = arith.constant 0 : index
      %c384_15 = arith.constant 384 : index
      %19 = vector.load %arg8[%c0_14, %c384_15] : memref<1x512xf32, #tpu.memory_space<vmem>>, vector<1x128xf32>
      tpu.vector_store %arg8[%c0_14, %c384_15], %15 {strides = array<i32>} : memref<1x512xf32, #tpu.memory_space<vmem>>, vector<1x128xf32>,
      %c0_16 = arith.constant 0 : index
      %c0_17 = arith.constant 0 : index
      %20 = vector.load %arg5[%c0_16, %c0_17] : memref<1x256xf32, #tpu.memory_space<vmem>>, vector<1x256xf32>
      %cst_18 = arith.constant 2.500000e-01 : f32
      %21 = vector.broadcast %cst_18 : f32 to vector<1x256xf32>
      %22 = arith.mulf %20, %21 : vector<1x256xf32>
      %c0_19 = arith.constant 0 : index
      %c128 = arith.constant 128 : index
      %23 = vector.load %arg7[%c0_19, %c128] : memref<1x512xf32, #tpu.memory_space<vmem>>, vector<1x256xf32>
      tpu.vector_store %arg7[%c0_19, %c128], %22 {strides = array<i32>} : memref<1x512xf32, #tpu.memory_space<vmem>>, vector<1x256xf32>,
      %c0_20 = arith.constant 0 : index
      %c0_21 = arith.constant 0 : index
      %24 = vector.load %arg6[%c0_20, %c0_21] : memref<1x256xf32, #tpu.memory_space<vmem>>, vector<1x256xf32>
      %c0_22 = arith.constant 0 : index
      %c128_23 = arith.constant 128 : index
      %25 = vector.load %arg8[%c0_22, %c128_23] : memref<1x512xf32, #tpu.memory_space<vmem>>, vector<1x256xf32>
      tpu.vector_store %arg8[%c0_22, %c128_23], %24 {strides = array<i32>} : memref<1x512xf32, #tpu.memory_space<vmem>>, vector<1x256xf32>,
      %26 = tpu.iota {dimensions = array<i32: 1>} : vector<1x256xi32>
      %c0_i32_24 = arith.constant 0 : i32
      %27 = vector.broadcast %c0_i32_24 : i32 to vector<1x256xi32>
      %28 = arith.addi %27, %26 : vector<1x256xi32>
      %c16_i32 = arith.constant 16 : i32
      %c0_i32_25 = arith.constant 0 : i32
      %29 = arith.cmpi eq, %c16_i32, %c0_i32_25 : i32
      %c1_i32 = arith.constant 1 : i32
      %30 = arith.select %29, %c1_i32, %c16_i32 : i32
      %31 = vector.broadcast %30 : i32 to vector<1x256xi32>
      %32 = arith.remsi %28, %31 : vector<1x256xi32>
      %c0_i32_26 = arith.constant 0 : i32
      %33 = vector.broadcast %c0_i32_26 : i32 to vector<1x256xi32>
      %34 = arith.cmpi ne, %32, %33 : vector<1x256xi32>
      %c0_i32_27 = arith.constant 0 : i32
      %35 = vector.broadcast %c0_i32_27 : i32 to vector<1x256xi32>
      %36 = arith.cmpi slt, %32, %35 : vector<1x256xi32>
      %c0_i32_28 = arith.constant 0 : i32
      %37 = arith.cmpi slt, %30, %c0_i32_28 : i32
      %38 = vector.broadcast %37 : i1 to vector<1x256xi1>
      %39 = vector.broadcast %38 : vector<1x256xi1> to vector<1x256xi1>
      %40 = arith.xori %36, %39 : vector<1x256xi1>
      %41 = arith.andi %40, %34 : vector<1x256xi1>
      %42 = vector.broadcast %30 : i32 to vector<1x256xi32>
      %43 = arith.addi %32, %42 : vector<1x256xi32>
      %44 = arith.select %41, %43, %32 : vector<1x256xi1>, vector<1x256xi32>
      %cst_29 = arith.constant 0.000000e+00 : f32
      %45 = vector.broadcast %cst_29 : f32 to vector<1x256xf32>
      %cst_30 = arith.constant 0.000000e+00 : f32
      %46 = vector.broadcast %cst_30 : f32 to vector<1x256xf32>
      %cst_31 = arith.constant 0.000000e+00 : f32
      %47 = vector.broadcast %cst_31 : f32 to vector<1x256xf32>
      %cst_32 = arith.constant 0.000000e+00 : f32
      %48 = vector.broadcast %cst_32 : f32 to vector<1x256xf32>
      %c3_i32 = arith.constant 3 : i32
      %49 = vector.broadcast %c3_i32 : i32 to vector<1x256xi32>
      %50 = arith.cmpi sge, %44, %49 : vector<1x256xi32>
      %c19_i32 = arith.constant 19 : i32
      %51 = vector.broadcast %c19_i32 : i32 to vector<1x256xi32>
      %52 = arith.cmpi slt, %44, %51 : vector<1x256xi32>
      %53 = arith.andi %50, %52 : vector<1x256xi1>
      %c0_33 = arith.constant 0 : index
      %c77 = arith.constant 77 : index
      %54 = vector.load %arg7[%c0_33, %c77] : memref<1x512xf32, #tpu.memory_space<vmem>>, vector<1x256xf32>
      %c0_34 = arith.constant 0 : index
      %c77_35 = arith.constant 77 : index
      %55 = vector.load %arg8[%c0_34, %c77_35] : memref<1x512xf32, #tpu.memory_space<vmem>>, vector<1x256xf32>
      %c0_36 = arith.constant 0 : index
      %56 = memref.load %arg3[%c0_36] : memref<98xf32, #tpu.memory_space<smem>>
      %c49 = arith.constant 49 : index
      %57 = memref.load %arg3[%c49] : memref<98xf32, #tpu.memory_space<smem>>
      %58 = vector.broadcast %56 : f32 to vector<1x256xf32>
      %59 = arith.mulf %54, %58 : vector<1x256xf32>
      %60 = vector.broadcast %57 : f32 to vector<1x256xf32>
      %61 = arith.mulf %55, %60 : vector<1x256xf32>
      %62 = arith.addf %59, %61 : vector<1x256xf32>
      %cst_37 = arith.constant 0.000000e+00 : f32
      %63 = vector.broadcast %cst_37 : f32 to vector<1x256xf32>
      %64 = arith.select %53, %62, %63 : vector<1x256xi1>, vector<1x256xf32>
      %65 = arith.addf %45, %64 : vector<1x256xf32>
      %c0_38 = arith.constant 0 : index
      %c93 = arith.constant 93 : index
      %66 = vector.load %arg7[%c0_38, %c93] : memref<1x512xf32, #tpu.memory_space<vmem>>, vector<1x256xf32>
      %c0_39 = arith.constant 0 : index
      %c93_40 = arith.constant 93 : index
      %67 = vector.load %arg8[%c0_39, %c93_40] : memref<1x512xf32, #tpu.memory_space<vmem>>, vector<1x256xf32>
      %c7 = arith.constant 7 : index
      %68 = memref.load %arg3[%c7] : memref<98xf32, #tpu.memory_space<smem>>
      %c56 = arith.constant 56 : index
      %69 = memref.load %arg3[%c56] : memref<98xf32, #tpu.memory_space<smem>>
      %70 = vector.broadcast %68 : f32 to vector<1x256xf32>
      %71 = arith.mulf %66, %70 : vector<1x256xf32>
      %72 = vector.broadcast %69 : f32 to vector<1x256xf32>
      %73 = arith.mulf %67, %72 : vector<1x256xf32>
      %74 = arith.addf %71, %73 : vector<1x256xf32>
      %cst_41 = arith.constant 0.000000e+00 : f32
      %75 = vector.broadcast %cst_41 : f32 to vector<1x256xf32>
      %76 = arith.select %53, %74, %75 : vector<1x256xi1>, vector<1x256xf32>
      %77 = arith.addf %46, %76 : vector<1x256xf32>
      %c0_42 = arith.constant 0 : index
      %c109 = arith.constant 109 : index
      %78 = vector.load %arg7[%c0_42, %c109] : memref<1x512xf32, #tpu.memory_space<vmem>>, vector<1x256xf32>
      %c0_43 = arith.constant 0 : index
      %c109_44 = arith.constant 109 : index
      %79 = vector.load %arg8[%c0_43, %c109_44] : memref<1x512xf32, #tpu.memory_space<vmem>>, vector<1x256xf32>
      %c14 = arith.constant 14 : index
      %80 = memref.load %arg3[%c14] : memref<98xf32, #tpu.memory_space<smem>>
      %c63 = arith.constant 63 : index
      %81 = memref.load %arg3[%c63] : memref<98xf32, #tpu.memory_space<smem>>
      %82 = vector.broadcast %80 : f32 to vector<1x256xf32>
      %83 = arith.mulf %78, %82 : vector<1x256xf32>
      %84 = vector.broadcast %81 : f32 to vector<1x256xf32>
      %85 = arith.mulf %79, %84 : vector<1x256xf32>
      %86 = arith.addf %83, %85 : vector<1x256xf32>
      %cst_45 = arith.constant 0.000000e+00 : f32
      %87 = vector.broadcast %cst_45 : f32 to vector<1x256xf32>
      %88 = arith.select %53, %86, %87 : vector<1x256xi1>, vector<1x256xf32>
      %89 = arith.addf %47, %88 : vector<1x256xf32>
      %c0_46 = arith.constant 0 : index
      %c125 = arith.constant 125 : index
      %90 = vector.load %arg7[%c0_46, %c125] : memref<1x512xf32, #tpu.memory_space<vmem>>, vector<1x256xf32>
      %c0_47 = arith.constant 0 : index
      %c125_48 = arith.constant 125 : index
      %91 = vector.load %arg8[%c0_47, %c125_48] : memref<1x512xf32, #tpu.memory_space<vmem>>, vector<1x256xf32>
      %c21 = arith.constant 21 : index
      %92 = memref.load %arg3[%c21] : memref<98xf32, #tpu.memory_space<smem>>
      %c70 = arith.constant 70 : index
      %93 = memref.load %arg3[%c70] : memref<98xf32, #tpu.memory_space<smem>>
      %94 = vector.broadcast %92 : f32 to vector<1x256xf32>
      %95 = arith.mulf %90, %94 : vector<1x256xf32>
      %96 = vector.broadcast %93 : f32 to vector<1x256xf32>
      %97 = arith.mulf %91, %96 : vector<1x256xf32>
      %98 = arith.addf %95, %97 : vector<1x256xf32>
      %cst_49 = arith.constant 0.000000e+00 : f32
      %99 = vector.broadcast %cst_49 : f32 to vector<1x256xf32>
      %100 = arith.select %53, %98, %99 : vector<1x256xi1>, vector<1x256xf32>
      %101 = arith.addf %48, %100 : vector<1x256xf32>
      %c0_50 = arith.constant 0 : index
      %c141 = arith.constant 141 : index
      %102 = vector.load %arg7[%c0_50, %c141] : memref<1x512xf32, #tpu.memory_space<vmem>>, vector<1x256xf32>
      %c0_51 = arith.constant 0 : index
      %c141_52 = arith.constant 141 : index
      %103 = vector.load %arg8[%c0_51, %c141_52] : memref<1x512xf32, #tpu.memory_space<vmem>>, vector<1x256xf32>
      %c28 = arith.constant 28 : index
      %104 = memref.load %arg3[%c28] : memref<98xf32, #tpu.memory_space<smem>>
      %c77_53 = arith.constant 77 : index
      %105 = memref.load %arg3[%c77_53] : memref<98xf32, #tpu.memory_space<smem>>
      %106 = vector.broadcast %104 : f32 to vector<1x256xf32>
      %107 = arith.mulf %102, %106 : vector<1x256xf32>
      %108 = vector.broadcast %105 : f32 to vector<1x256xf32>
      %109 = arith.mulf %103, %108 : vector<1x256xf32>
      %110 = arith.addf %107, %109 : vector<1x256xf32>
      %cst_54 = arith.constant 0.000000e+00 : f32
      %111 = vector.broadcast %cst_54 : f32 to vector<1x256xf32>
      %112 = arith.select %53, %110, %111 : vector<1x256xi1>, vector<1x256xf32>
      %113 = arith.addf %65, %112 : vector<1x256xf32>
      %c0_55 = arith.constant 0 : index
      %c157 = arith.constant 157 : index
      %114 = vector.load %arg7[%c0_55, %c157] : memref<1x512xf32, #tpu.memory_space<vmem>>, vector<1x256xf32>
      %c0_56 = arith.constant 0 : index
      %c157_57 = arith.constant 157 : index
      %115 = vector.load %arg8[%c0_56, %c157_57] : memref<1x512xf32, #tpu.memory_space<vmem>>, vector<1x256xf32>
      %c35 = arith.constant 35 : index
      %116 = memref.load %arg3[%c35] : memref<98xf32, #tpu.memory_space<smem>>
      %c84 = arith.constant 84 : index
      %117 = memref.load %arg3[%c84] : memref<98xf32, #tpu.memory_space<smem>>
      %118 = vector.broadcast %116 : f32 to vector<1x256xf32>
      %119 = arith.mulf %114, %118 : vector<1x256xf32>
      %120 = vector.broadcast %117 : f32 to vector<1x256xf32>
      %121 = arith.mulf %115, %120 : vector<1x256xf32>
      %122 = arith.addf %119, %121 : vector<1x256xf32>
      %cst_58 = arith.constant 0.000000e+00 : f32
      %123 = vector.broadcast %cst_58 : f32 to vector<1x256xf32>
      %124 = arith.select %53, %122, %123 : vector<1x256xi1>, vector<1x256xf32>
      %125 = arith.addf %77, %124 : vector<1x256xf32>
      %c0_59 = arith.constant 0 : index
      %c173 = arith.constant 173 : index
      %126 = vector.load %arg7[%c0_59, %c173] : memref<1x512xf32, #tpu.memory_space<vmem>>, vector<1x256xf32>
      %c0_60 = arith.constant 0 : index
      %c173_61 = arith.constant 173 : index
      %127 = vector.load %arg8[%c0_60, %c173_61] : memref<1x512xf32, #tpu.memory_space<vmem>>, vector<1x256xf32>
      %c42 = arith.constant 42 : index
      %128 = memref.load %arg3[%c42] : memref<98xf32, #tpu.memory_space<smem>>
      %c91 = arith.constant 91 : index
      %129 = memref.load %arg3[%c91] : memref<98xf32, #tpu.memory_space<smem>>
      %130 = vector.broadcast %128 : f32 to vector<1x256xf32>
      %131 = arith.mulf %126, %130 : vector<1x256xf32>
      %132 = vector.broadcast %129 : f32 to vector<1x256xf32>
      %133 = arith.mulf %127, %132 : vector<1x256xf32>
      %134 = arith.addf %131, %133 : vector<1x256xf32>
      %cst_62 = arith.constant 0.000000e+00 : f32
      %135 = vector.broadcast %cst_62 : f32 to vector<1x256xf32>
      %136 = arith.select %53, %134, %135 : vector<1x256xi1>, vector<1x256xf32>
      %137 = arith.addf %89, %136 : vector<1x256xf32>
      %c2_i32 = arith.constant 2 : i32
      %138 = vector.broadcast %c2_i32 : i32 to vector<1x256xi32>
      %139 = arith.cmpi sge, %44, %138 : vector<1x256xi32>
      %c18_i32 = arith.constant 18 : i32
      %140 = vector.broadcast %c18_i32 : i32 to vector<1x256xi32>
      %141 = arith.cmpi slt, %44, %140 : vector<1x256xi32>
      %142 = arith.andi %139, %141 : vector<1x256xi1>
      %c0_63 = arith.constant 0 : index
      %c78 = arith.constant 78 : index
      %143 = vector.load %arg7[%c0_63, %c78] : memref<1x512xf32, #tpu.memory_space<vmem>>, vector<1x256xf32>
      %c0_64 = arith.constant 0 : index
      %c78_65 = arith.constant 78 : index
      %144 = vector.load %arg8[%c0_64, %c78_65] : memref<1x512xf32, #tpu.memory_space<vmem>>, vector<1x256xf32>
      %c1 = arith.constant 1 : index
      %145 = memref.load %arg3[%c1] : memref<98xf32, #tpu.memory_space<smem>>
      %c50 = arith.constant 50 : index
      %146 = memref.load %arg3[%c50] : memref<98xf32, #tpu.memory_space<smem>>
      %147 = vector.broadcast %145 : f32 to vector<1x256xf32>
      %148 = arith.mulf %143, %147 : vector<1x256xf32>
      %149 = vector.broadcast %146 : f32 to vector<1x256xf32>
      %150 = arith.mulf %144, %149 : vector<1x256xf32>
      %151 = arith.addf %148, %150 : vector<1x256xf32>
      %cst_66 = arith.constant 0.000000e+00 : f32
      %152 = vector.broadcast %cst_66 : f32 to vector<1x256xf32>
      %153 = arith.select %142, %151, %152 : vector<1x256xi1>, vector<1x256xf32>
      %154 = arith.addf %101, %153 : vector<1x256xf32>
      %c0_67 = arith.constant 0 : index
      %c94 = arith.constant 94 : index
      %155 = vector.load %arg7[%c0_67, %c94] : memref<1x512xf32, #tpu.memory_space<vmem>>, vector<1x256xf32>
      %c0_68 = arith.constant 0 : index
      %c94_69 = arith.constant 94 : index
      %156 = vector.load %arg8[%c0_68, %c94_69] : memref<1x512xf32, #tpu.memory_space<vmem>>, vector<1x256xf32>
      %c8 = arith.constant 8 : index
      %157 = memref.load %arg3[%c8] : memref<98xf32, #tpu.memory_space<smem>>
      %c57 = arith.constant 57 : index
      %158 = memref.load %arg3[%c57] : memref<98xf32, #tpu.memory_space<smem>>
      %159 = vector.broadcast %157 : f32 to vector<1x256xf32>
      %160 = arith.mulf %155, %159 : vector<1x256xf32>
      %161 = vector.broadcast %158 : f32 to vector<1x256xf32>
      %162 = arith.mulf %156, %161 : vector<1x256xf32>
      %163 = arith.addf %160, %162 : vector<1x256xf32>
      %cst_70 = arith.constant 0.000000e+00 : f32
      %164 = vector.broadcast %cst_70 : f32 to vector<1x256xf32>
      %165 = arith.select %142, %163, %164 : vector<1x256xi1>, vector<1x256xf32>
      %166 = arith.addf %113, %165 : vector<1x256xf32>
      %c0_71 = arith.constant 0 : index
      %c110 = arith.constant 110 : index
      %167 = vector.load %arg7[%c0_71, %c110] : memref<1x512xf32, #tpu.memory_space<vmem>>, vector<1x256xf32>
      %c0_72 = arith.constant 0 : index
      %c110_73 = arith.constant 110 : index
      %168 = vector.load %arg8[%c0_72, %c110_73] : memref<1x512xf32, #tpu.memory_space<vmem>>, vector<1x256xf32>
      %c15 = arith.constant 15 : index
      %169 = memref.load %arg3[%c15] : memref<98xf32, #tpu.memory_space<smem>>
      %c64 = arith.constant 64 : index
      %170 = memref.load %arg3[%c64] : memref<98xf32, #tpu.memory_space<smem>>
      %171 = vector.broadcast %169 : f32 to vector<1x256xf32>
      %172 = arith.mulf %167, %171 : vector<1x256xf32>
      %173 = vector.broadcast %170 : f32 to vector<1x256xf32>
      %174 = arith.mulf %168, %173 : vector<1x256xf32>
      %175 = arith.addf %172, %174 : vector<1x256xf32>
      %cst_74 = arith.constant 0.000000e+00 : f32
      %176 = vector.broadcast %cst_74 : f32 to vector<1x256xf32>
      %177 = arith.select %142, %175, %176 : vector<1x256xi1>, vector<1x256xf32>
      %178 = arith.addf %125, %177 : vector<1x256xf32>
      %c0_75 = arith.constant 0 : index
      %c126 = arith.constant 126 : index
      %179 = vector.load %arg7[%c0_75, %c126] : memref<1x512xf32, #tpu.memory_space<vmem>>, vector<1x256xf32>
      %c0_76 = arith.constant 0 : index
      %c126_77 = arith.constant 126 : index
      %180 = vector.load %arg8[%c0_76, %c126_77] : memref<1x512xf32, #tpu.memory_space<vmem>>, vector<1x256xf32>
      %c22 = arith.constant 22 : index
      %181 = memref.load %arg3[%c22] : memref<98xf32, #tpu.memory_space<smem>>
      %c71 = arith.constant 71 : index
      %182 = memref.load %arg3[%c71] : memref<98xf32, #tpu.memory_space<smem>>
      %183 = vector.broadcast %181 : f32 to vector<1x256xf32>
      %184 = arith.mulf %179, %183 : vector<1x256xf32>
      %185 = vector.broadcast %182 : f32 to vector<1x256xf32>
      %186 = arith.mulf %180, %185 : vector<1x256xf32>
      %187 = arith.addf %184, %186 : vector<1x256xf32>
      %cst_78 = arith.constant 0.000000e+00 : f32
      %188 = vector.broadcast %cst_78 : f32 to vector<1x256xf32>
      %189 = arith.select %142, %187, %188 : vector<1x256xi1>, vector<1x256xf32>
      %190 = arith.addf %137, %189 : vector<1x256xf32>
      %c0_79 = arith.constant 0 : index
      %c142 = arith.constant 142 : index
      %191 = vector.load %arg7[%c0_79, %c142] : memref<1x512xf32, #tpu.memory_space<vmem>>, vector<1x256xf32>
      %c0_80 = arith.constant 0 : index
      %c142_81 = arith.constant 142 : index
      %192 = vector.load %arg8[%c0_80, %c142_81] : memref<1x512xf32, #tpu.memory_space<vmem>>, vector<1x256xf32>
      %c29 = arith.constant 29 : index
      %193 = memref.load %arg3[%c29] : memref<98xf32, #tpu.memory_space<smem>>
      %c78_82 = arith.constant 78 : index
      %194 = memref.load %arg3[%c78_82] : memref<98xf32, #tpu.memory_space<smem>>
      %195 = vector.broadcast %193 : f32 to vector<1x256xf32>
      %196 = arith.mulf %191, %195 : vector<1x256xf32>
      %197 = vector.broadcast %194 : f32 to vector<1x256xf32>
      %198 = arith.mulf %192, %197 : vector<1x256xf32>
      %199 = arith.addf %196, %198 : vector<1x256xf32>
      %cst_83 = arith.constant 0.000000e+00 : f32
      %200 = vector.broadcast %cst_83 : f32 to vector<1x256xf32>
      %201 = arith.select %142, %199, %200 : vector<1x256xi1>, vector<1x256xf32>
      %202 = arith.addf %154, %201 : vector<1x256xf32>
      %c0_84 = arith.constant 0 : index
      %c158 = arith.constant 158 : index
      %203 = vector.load %arg7[%c0_84, %c158] : memref<1x512xf32, #tpu.memory_space<vmem>>, vector<1x256xf32>
      %c0_85 = arith.constant 0 : index
      %c158_86 = arith.constant 158 : index
      %204 = vector.load %arg8[%c0_85, %c158_86] : memref<1x512xf32, #tpu.memory_space<vmem>>, vector<1x256xf32>
      %c36 = arith.constant 36 : index
      %205 = memref.load %arg3[%c36] : memref<98xf32, #tpu.memory_space<smem>>
      %c85 = arith.constant 85 : index
      %206 = memref.load %arg3[%c85] : memref<98xf32, #tpu.memory_space<smem>>
      %207 = vector.broadcast %205 : f32 to vector<1x256xf32>
      %208 = arith.mulf %203, %207 : vector<1x256xf32>
      %209 = vector.broadcast %206 : f32 to vector<1x256xf32>
      %210 = arith.mulf %204, %209 : vector<1x256xf32>
      %211 = arith.addf %208, %210 : vector<1x256xf32>
      %cst_87 = arith.constant 0.000000e+00 : f32
      %212 = vector.broadcast %cst_87 : f32 to vector<1x256xf32>
      %213 = arith.select %142, %211, %212 : vector<1x256xi1>, vector<1x256xf32>
      %214 = arith.addf %166, %213 : vector<1x256xf32>
      %c0_88 = arith.constant 0 : index
      %c174 = arith.constant 174 : index
      %215 = vector.load %arg7[%c0_88, %c174] : memref<1x512xf32, #tpu.memory_space<vmem>>, vector<1x256xf32>
      %c0_89 = arith.constant 0 : index
      %c174_90 = arith.constant 174 : index
      %216 = vector.load %arg8[%c0_89, %c174_90] : memref<1x512xf32, #tpu.memory_space<vmem>>, vector<1x256xf32>
      %c43 = arith.constant 43 : index
      %217 = memref.load %arg3[%c43] : memref<98xf32, #tpu.memory_space<smem>>
      %c92 = arith.constant 92 : index
      %218 = memref.load %arg3[%c92] : memref<98xf32, #tpu.memory_space<smem>>
      %219 = vector.broadcast %217 : f32 to vector<1x256xf32>
      %220 = arith.mulf %215, %219 : vector<1x256xf32>
      %221 = vector.broadcast %218 : f32 to vector<1x256xf32>
      %222 = arith.mulf %216, %221 : vector<1x256xf32>
      %223 = arith.addf %220, %222 : vector<1x256xf32>
      %cst_91 = arith.constant 0.000000e+00 : f32
      %224 = vector.broadcast %cst_91 : f32 to vector<1x256xf32>
      %225 = arith.select %142, %223, %224 : vector<1x256xi1>, vector<1x256xf32>
      %226 = arith.addf %178, %225 : vector<1x256xf32>
      %c1_i32_92 = arith.constant 1 : i32
      %227 = vector.broadcast %c1_i32_92 : i32 to vector<1x256xi32>
      %228 = arith.cmpi sge, %44, %227 : vector<1x256xi32>
      %c17_i32 = arith.constant 17 : i32
      %229 = vector.broadcast %c17_i32 : i32 to vector<1x256xi32>
      %230 = arith.cmpi slt, %44, %229 : vector<1x256xi32>
      %231 = arith.andi %228, %230 : vector<1x256xi1>
      %c0_93 = arith.constant 0 : index
      %c79 = arith.constant 79 : index
      %232 = vector.load %arg7[%c0_93, %c79] : memref<1x512xf32, #tpu.memory_space<vmem>>, vector<1x256xf32>
      %c0_94 = arith.constant 0 : index
      %c79_95 = arith.constant 79 : index
      %233 = vector.load %arg8[%c0_94, %c79_95] : memref<1x512xf32, #tpu.memory_space<vmem>>, vector<1x256xf32>
      %c2 = arith.constant 2 : index
      %234 = memref.load %arg3[%c2] : memref<98xf32, #tpu.memory_space<smem>>
      %c51 = arith.constant 51 : index
      %235 = memref.load %arg3[%c51] : memref<98xf32, #tpu.memory_space<smem>>
      %236 = vector.broadcast %234 : f32 to vector<1x256xf32>
      %237 = arith.mulf %232, %236 : vector<1x256xf32>
      %238 = vector.broadcast %235 : f32 to vector<1x256xf32>
      %239 = arith.mulf %233, %238 : vector<1x256xf32>
      %240 = arith.addf %237, %239 : vector<1x256xf32>
      %cst_96 = arith.constant 0.000000e+00 : f32
      %241 = vector.broadcast %cst_96 : f32 to vector<1x256xf32>
      %242 = arith.select %231, %240, %241 : vector<1x256xi1>, vector<1x256xf32>
      %243 = arith.addf %190, %242 : vector<1x256xf32>
      %c0_97 = arith.constant 0 : index
      %c95 = arith.constant 95 : index
      %244 = vector.load %arg7[%c0_97, %c95] : memref<1x512xf32, #tpu.memory_space<vmem>>, vector<1x256xf32>
      %c0_98 = arith.constant 0 : index
      %c95_99 = arith.constant 95 : index
      %245 = vector.load %arg8[%c0_98, %c95_99] : memref<1x512xf32, #tpu.memory_space<vmem>>, vector<1x256xf32>
      %c9 = arith.constant 9 : index
      %246 = memref.load %arg3[%c9] : memref<98xf32, #tpu.memory_space<smem>>
      %c58 = arith.constant 58 : index
      %247 = memref.load %arg3[%c58] : memref<98xf32, #tpu.memory_space<smem>>
      %248 = vector.broadcast %246 : f32 to vector<1x256xf32>
      %249 = arith.mulf %244, %248 : vector<1x256xf32>
      %250 = vector.broadcast %247 : f32 to vector<1x256xf32>
      %251 = arith.mulf %245, %250 : vector<1x256xf32>
      %252 = arith.addf %249, %251 : vector<1x256xf32>
      %cst_100 = arith.constant 0.000000e+00 : f32
      %253 = vector.broadcast %cst_100 : f32 to vector<1x256xf32>
      %254 = arith.select %231, %252, %253 : vector<1x256xi1>, vector<1x256xf32>
      %255 = arith.addf %202, %254 : vector<1x256xf32>
      %c0_101 = arith.constant 0 : index
      %c111 = arith.constant 111 : index
      %256 = vector.load %arg7[%c0_101, %c111] : memref<1x512xf32, #tpu.memory_space<vmem>>, vector<1x256xf32>
      %c0_102 = arith.constant 0 : index
      %c111_103 = arith.constant 111 : index
      %257 = vector.load %arg8[%c0_102, %c111_103] : memref<1x512xf32, #tpu.memory_space<vmem>>, vector<1x256xf32>
      %c16 = arith.constant 16 : index
      %258 = memref.load %arg3[%c16] : memref<98xf32, #tpu.memory_space<smem>>
      %c65 = arith.constant 65 : index
      %259 = memref.load %arg3[%c65] : memref<98xf32, #tpu.memory_space<smem>>
      %260 = vector.broadcast %258 : f32 to vector<1x256xf32>
      %261 = arith.mulf %256, %260 : vector<1x256xf32>
      %262 = vector.broadcast %259 : f32 to vector<1x256xf32>
      %263 = arith.mulf %257, %262 : vector<1x256xf32>
      %264 = arith.addf %261, %263 : vector<1x256xf32>
      %cst_104 = arith.constant 0.000000e+00 : f32
      %265 = vector.broadcast %cst_104 : f32 to vector<1x256xf32>
      %266 = arith.select %231, %264, %265 : vector<1x256xi1>, vector<1x256xf32>
      %267 = arith.addf %214, %266 : vector<1x256xf32>
      %c0_105 = arith.constant 0 : index
      %c127 = arith.constant 127 : index
      %268 = vector.load %arg7[%c0_105, %c127] : memref<1x512xf32, #tpu.memory_space<vmem>>, vector<1x256xf32>
      %c0_106 = arith.constant 0 : index
      %c127_107 = arith.constant 127 : index
      %269 = vector.load %arg8[%c0_106, %c127_107] : memref<1x512xf32, #tpu.memory_space<vmem>>, vector<1x256xf32>
      %c23 = arith.constant 23 : index
      %270 = memref.load %arg3[%c23] : memref<98xf32, #tpu.memory_space<smem>>
      %c72 = arith.constant 72 : index
      %271 = memref.load %arg3[%c72] : memref<98xf32, #tpu.memory_space<smem>>
      %272 = vector.broadcast %270 : f32 to vector<1x256xf32>
      %273 = arith.mulf %268, %272 : vector<1x256xf32>
      %274 = vector.broadcast %271 : f32 to vector<1x256xf32>
      %275 = arith.mulf %269, %274 : vector<1x256xf32>
      %276 = arith.addf %273, %275 : vector<1x256xf32>
      %cst_108 = arith.constant 0.000000e+00 : f32
      %277 = vector.broadcast %cst_108 : f32 to vector<1x256xf32>
      %278 = arith.select %231, %276, %277 : vector<1x256xi1>, vector<1x256xf32>
      %279 = arith.addf %226, %278 : vector<1x256xf32>
      %c0_109 = arith.constant 0 : index
      %c143 = arith.constant 143 : index
      %280 = vector.load %arg7[%c0_109, %c143] : memref<1x512xf32, #tpu.memory_space<vmem>>, vector<1x256xf32>
      %c0_110 = arith.constant 0 : index
      %c143_111 = arith.constant 143 : index
      %281 = vector.load %arg8[%c0_110, %c143_111] : memref<1x512xf32, #tpu.memory_space<vmem>>, vector<1x256xf32>
      %c30 = arith.constant 30 : index
      %282 = memref.load %arg3[%c30] : memref<98xf32, #tpu.memory_space<smem>>
      %c79_112 = arith.constant 79 : index
      %283 = memref.load %arg3[%c79_112] : memref<98xf32, #tpu.memory_space<smem>>
      %284 = vector.broadcast %282 : f32 to vector<1x256xf32>
      %285 = arith.mulf %280, %284 : vector<1x256xf32>
      %286 = vector.broadcast %283 : f32 to vector<1x256xf32>
      %287 = arith.mulf %281, %286 : vector<1x256xf32>
      %288 = arith.addf %285, %287 : vector<1x256xf32>
      %cst_113 = arith.constant 0.000000e+00 : f32
      %289 = vector.broadcast %cst_113 : f32 to vector<1x256xf32>
      %290 = arith.select %231, %288, %289 : vector<1x256xi1>, vector<1x256xf32>
      %291 = arith.addf %243, %290 : vector<1x256xf32>
      %c0_114 = arith.constant 0 : index
      %c159 = arith.constant 159 : index
      %292 = vector.load %arg7[%c0_114, %c159] : memref<1x512xf32, #tpu.memory_space<vmem>>, vector<1x256xf32>
      %c0_115 = arith.constant 0 : index
      %c159_116 = arith.constant 159 : index
      %293 = vector.load %arg8[%c0_115, %c159_116] : memref<1x512xf32, #tpu.memory_space<vmem>>, vector<1x256xf32>
      %c37 = arith.constant 37 : index
      %294 = memref.load %arg3[%c37] : memref<98xf32, #tpu.memory_space<smem>>
      %c86 = arith.constant 86 : index
      %295 = memref.load %arg3[%c86] : memref<98xf32, #tpu.memory_space<smem>>
      %296 = vector.broadcast %294 : f32 to vector<1x256xf32>
      %297 = arith.mulf %292, %296 : vector<1x256xf32>
      %298 = vector.broadcast %295 : f32 to vector<1x256xf32>
      %299 = arith.mulf %293, %298 : vector<1x256xf32>
      %300 = arith.addf %297, %299 : vector<1x256xf32>
      %cst_117 = arith.constant 0.000000e+00 : f32
      %301 = vector.broadcast %cst_117 : f32 to vector<1x256xf32>
      %302 = arith.select %231, %300, %301 : vector<1x256xi1>, vector<1x256xf32>
      %303 = arith.addf %255, %302 : vector<1x256xf32>
      %c0_118 = arith.constant 0 : index
      %c175 = arith.constant 175 : index
      %304 = vector.load %arg7[%c0_118, %c175] : memref<1x512xf32, #tpu.memory_space<vmem>>, vector<1x256xf32>
      %c0_119 = arith.constant 0 : index
      %c175_120 = arith.constant 175 : index
      %305 = vector.load %arg8[%c0_119, %c175_120] : memref<1x512xf32, #tpu.memory_space<vmem>>, vector<1x256xf32>
      %c44 = arith.constant 44 : index
      %306 = memref.load %arg3[%c44] : memref<98xf32, #tpu.memory_space<smem>>
      %c93_121 = arith.constant 93 : index
      %307 = memref.load %arg3[%c93_121] : memref<98xf32, #tpu.memory_space<smem>>
      %308 = vector.broadcast %306 : f32 to vector<1x256xf32>
      %309 = arith.mulf %304, %308 : vector<1x256xf32>
      %310 = vector.broadcast %307 : f32 to vector<1x256xf32>
      %311 = arith.mulf %305, %310 : vector<1x256xf32>
      %312 = arith.addf %309, %311 : vector<1x256xf32>
      %cst_122 = arith.constant 0.000000e+00 : f32
      %313 = vector.broadcast %cst_122 : f32 to vector<1x256xf32>
      %314 = arith.select %231, %312, %313 : vector<1x256xi1>, vector<1x256xf32>
      %315 = arith.addf %267, %314 : vector<1x256xf32>
      %c0_123 = arith.constant 0 : index
      %c80 = arith.constant 80 : index
      %316 = vector.load %arg7[%c0_123, %c80] : memref<1x512xf32, #tpu.memory_space<vmem>>, vector<1x256xf32>
      %c0_124 = arith.constant 0 : index
      %c80_125 = arith.constant 80 : index
      %317 = vector.load %arg8[%c0_124, %c80_125] : memref<1x512xf32, #tpu.memory_space<vmem>>, vector<1x256xf32>
      %c3 = arith.constant 3 : index
      %318 = memref.load %arg3[%c3] : memref<98xf32, #tpu.memory_space<smem>>
      %c52 = arith.constant 52 : index
      %319 = memref.load %arg3[%c52] : memref<98xf32, #tpu.memory_space<smem>>
      %320 = vector.broadcast %318 : f32 to vector<1x256xf32>
      %321 = arith.mulf %316, %320 : vector<1x256xf32>
      %322 = vector.broadcast %319 : f32 to vector<1x256xf32>
      %323 = arith.mulf %317, %322 : vector<1x256xf32>
      %324 = arith.addf %321, %323 : vector<1x256xf32>
      %325 = arith.addf %279, %324 : vector<1x256xf32>
      %c0_126 = arith.constant 0 : index
      %c96 = arith.constant 96 : index
      %326 = vector.load %arg7[%c0_126, %c96] : memref<1x512xf32, #tpu.memory_space<vmem>>, vector<1x256xf32>
      %c0_127 = arith.constant 0 : index
      %c96_128 = arith.constant 96 : index
      %327 = vector.load %arg8[%c0_127, %c96_128] : memref<1x512xf32, #tpu.memory_space<vmem>>, vector<1x256xf32>
      %c10 = arith.constant 10 : index
      %328 = memref.load %arg3[%c10] : memref<98xf32, #tpu.memory_space<smem>>
      %c59 = arith.constant 59 : index
      %329 = memref.load %arg3[%c59] : memref<98xf32, #tpu.memory_space<smem>>
      %330 = vector.broadcast %328 : f32 to vector<1x256xf32>
      %331 = arith.mulf %326, %330 : vector<1x256xf32>
      %332 = vector.broadcast %329 : f32 to vector<1x256xf32>
      %333 = arith.mulf %327, %332 : vector<1x256xf32>
      %334 = arith.addf %331, %333 : vector<1x256xf32>
      %335 = arith.addf %291, %334 : vector<1x256xf32>
      %c0_129 = arith.constant 0 : index
      %c112 = arith.constant 112 : index
      %336 = vector.load %arg7[%c0_129, %c112] : memref<1x512xf32, #tpu.memory_space<vmem>>, vector<1x256xf32>
      %c0_130 = arith.constant 0 : index
      %c112_131 = arith.constant 112 : index
      %337 = vector.load %arg8[%c0_130, %c112_131] : memref<1x512xf32, #tpu.memory_space<vmem>>, vector<1x256xf32>
      %c17 = arith.constant 17 : index
      %338 = memref.load %arg3[%c17] : memref<98xf32, #tpu.memory_space<smem>>
      %c66 = arith.constant 66 : index
      %339 = memref.load %arg3[%c66] : memref<98xf32, #tpu.memory_space<smem>>
      %340 = vector.broadcast %338 : f32 to vector<1x256xf32>
      %341 = arith.mulf %336, %340 : vector<1x256xf32>
      %342 = vector.broadcast %339 : f32 to vector<1x256xf32>
      %343 = arith.mulf %337, %342 : vector<1x256xf32>
      %344 = arith.addf %341, %343 : vector<1x256xf32>
      %345 = arith.addf %303, %344 : vector<1x256xf32>
      %c0_132 = arith.constant 0 : index
      %c128_133 = arith.constant 128 : index
      %346 = vector.load %arg7[%c0_132, %c128_133] : memref<1x512xf32, #tpu.memory_space<vmem>>, vector<1x256xf32>
      %c0_134 = arith.constant 0 : index
      %c128_135 = arith.constant 128 : index
      %347 = vector.load %arg8[%c0_134, %c128_135] : memref<1x512xf32, #tpu.memory_space<vmem>>, vector<1x256xf32>
      %c24 = arith.constant 24 : index
      %348 = memref.load %arg3[%c24] : memref<98xf32, #tpu.memory_space<smem>>
      %c73 = arith.constant 73 : index
      %349 = memref.load %arg3[%c73] : memref<98xf32, #tpu.memory_space<smem>>
      %350 = vector.broadcast %348 : f32 to vector<1x256xf32>
      %351 = arith.mulf %346, %350 : vector<1x256xf32>
      %352 = vector.broadcast %349 : f32 to vector<1x256xf32>
      %353 = arith.mulf %347, %352 : vector<1x256xf32>
      %354 = arith.addf %351, %353 : vector<1x256xf32>
      %355 = arith.addf %315, %354 : vector<1x256xf32>
      %c0_136 = arith.constant 0 : index
      %c144 = arith.constant 144 : index
      %356 = vector.load %arg7[%c0_136, %c144] : memref<1x512xf32, #tpu.memory_space<vmem>>, vector<1x256xf32>
      %c0_137 = arith.constant 0 : index
      %c144_138 = arith.constant 144 : index
      %357 = vector.load %arg8[%c0_137, %c144_138] : memref<1x512xf32, #tpu.memory_space<vmem>>, vector<1x256xf32>
      %c31 = arith.constant 31 : index
      %358 = memref.load %arg3[%c31] : memref<98xf32, #tpu.memory_space<smem>>
      %c80_139 = arith.constant 80 : index
      %359 = memref.load %arg3[%c80_139] : memref<98xf32, #tpu.memory_space<smem>>
      %360 = vector.broadcast %358 : f32 to vector<1x256xf32>
      %361 = arith.mulf %356, %360 : vector<1x256xf32>
      %362 = vector.broadcast %359 : f32 to vector<1x256xf32>
      %363 = arith.mulf %357, %362 : vector<1x256xf32>
      %364 = arith.addf %361, %363 : vector<1x256xf32>
      %365 = arith.addf %325, %364 : vector<1x256xf32>
      %c0_140 = arith.constant 0 : index
      %c160 = arith.constant 160 : index
      %366 = vector.load %arg7[%c0_140, %c160] : memref<1x512xf32, #tpu.memory_space<vmem>>, vector<1x256xf32>
      %c0_141 = arith.constant 0 : index
      %c160_142 = arith.constant 160 : index
      %367 = vector.load %arg8[%c0_141, %c160_142] : memref<1x512xf32, #tpu.memory_space<vmem>>, vector<1x256xf32>
      %c38 = arith.constant 38 : index
      %368 = memref.load %arg3[%c38] : memref<98xf32, #tpu.memory_space<smem>>
      %c87 = arith.constant 87 : index
      %369 = memref.load %arg3[%c87] : memref<98xf32, #tpu.memory_space<smem>>
      %370 = vector.broadcast %368 : f32 to vector<1x256xf32>
      %371 = arith.mulf %366, %370 : vector<1x256xf32>
      %372 = vector.broadcast %369 : f32 to vector<1x256xf32>
      %373 = arith.mulf %367, %372 : vector<1x256xf32>
      %374 = arith.addf %371, %373 : vector<1x256xf32>
      %375 = arith.addf %335, %374 : vector<1x256xf32>
      %c0_143 = arith.constant 0 : index
      %c176 = arith.constant 176 : index
      %376 = vector.load %arg7[%c0_143, %c176] : memref<1x512xf32, #tpu.memory_space<vmem>>, vector<1x256xf32>
      %c0_144 = arith.constant 0 : index
      %c176_145 = arith.constant 176 : index
      %377 = vector.load %arg8[%c0_144, %c176_145] : memref<1x512xf32, #tpu.memory_space<vmem>>, vector<1x256xf32>
      %c45 = arith.constant 45 : index
      %378 = memref.load %arg3[%c45] : memref<98xf32, #tpu.memory_space<smem>>
      %c94_146 = arith.constant 94 : index
      %379 = memref.load %arg3[%c94_146] : memref<98xf32, #tpu.memory_space<smem>>
      %380 = vector.broadcast %378 : f32 to vector<1x256xf32>
      %381 = arith.mulf %376, %380 : vector<1x256xf32>
      %382 = vector.broadcast %379 : f32 to vector<1x256xf32>
      %383 = arith.mulf %377, %382 : vector<1x256xf32>
      %384 = arith.addf %381, %383 : vector<1x256xf32>
      %385 = arith.addf %345, %384 : vector<1x256xf32>
      %c-1_i32 = arith.constant -1 : i32
      %386 = vector.broadcast %c-1_i32 : i32 to vector<1x256xi32>
      %387 = arith.cmpi sge, %44, %386 : vector<1x256xi32>
      %c15_i32 = arith.constant 15 : i32
      %388 = vector.broadcast %c15_i32 : i32 to vector<1x256xi32>
      %389 = arith.cmpi slt, %44, %388 : vector<1x256xi32>
      %390 = arith.andi %387, %389 : vector<1x256xi1>
      %c0_147 = arith.constant 0 : index
      %c81 = arith.constant 81 : index
      %391 = vector.load %arg7[%c0_147, %c81] : memref<1x512xf32, #tpu.memory_space<vmem>>, vector<1x256xf32>
      %c0_148 = arith.constant 0 : index
      %c81_149 = arith.constant 81 : index
      %392 = vector.load %arg8[%c0_148, %c81_149] : memref<1x512xf32, #tpu.memory_space<vmem>>, vector<1x256xf32>
      %c4 = arith.constant 4 : index
      %393 = memref.load %arg3[%c4] : memref<98xf32, #tpu.memory_space<smem>>
      %c53 = arith.constant 53 : index
      %394 = memref.load %arg3[%c53] : memref<98xf32, #tpu.memory_space<smem>>
      %395 = vector.broadcast %393 : f32 to vector<1x256xf32>
      %396 = arith.mulf %391, %395 : vector<1x256xf32>
      %397 = vector.broadcast %394 : f32 to vector<1x256xf32>
      %398 = arith.mulf %392, %397 : vector<1x256xf32>
      %399 = arith.addf %396, %398 : vector<1x256xf32>
      %cst_150 = arith.constant 0.000000e+00 : f32
      %400 = vector.broadcast %cst_150 : f32 to vector<1x256xf32>
      %401 = arith.select %390, %399, %400 : vector<1x256xi1>, vector<1x256xf32>
      %402 = arith.addf %355, %401 : vector<1x256xf32>
      %c0_151 = arith.constant 0 : index
      %c97 = arith.constant 97 : index
      %403 = vector.load %arg7[%c0_151, %c97] : memref<1x512xf32, #tpu.memory_space<vmem>>, vector<1x256xf32>
      %c0_152 = arith.constant 0 : index
      %c97_153 = arith.constant 97 : index
      %404 = vector.load %arg8[%c0_152, %c97_153] : memref<1x512xf32, #tpu.memory_space<vmem>>, vector<1x256xf32>
      %c11 = arith.constant 11 : index
      %405 = memref.load %arg3[%c11] : memref<98xf32, #tpu.memory_space<smem>>
      %c60 = arith.constant 60 : index
      %406 = memref.load %arg3[%c60] : memref<98xf32, #tpu.memory_space<smem>>
      %407 = vector.broadcast %405 : f32 to vector<1x256xf32>
      %408 = arith.mulf %403, %407 : vector<1x256xf32>
      %409 = vector.broadcast %406 : f32 to vector<1x256xf32>
      %410 = arith.mulf %404, %409 : vector<1x256xf32>
      %411 = arith.addf %408, %410 : vector<1x256xf32>
      %cst_154 = arith.constant 0.000000e+00 : f32
      %412 = vector.broadcast %cst_154 : f32 to vector<1x256xf32>
      %413 = arith.select %390, %411, %412 : vector<1x256xi1>, vector<1x256xf32>
      %414 = arith.addf %365, %413 : vector<1x256xf32>
      %c0_155 = arith.constant 0 : index
      %c113 = arith.constant 113 : index
      %415 = vector.load %arg7[%c0_155, %c113] : memref<1x512xf32, #tpu.memory_space<vmem>>, vector<1x256xf32>
      %c0_156 = arith.constant 0 : index
      %c113_157 = arith.constant 113 : index
      %416 = vector.load %arg8[%c0_156, %c113_157] : memref<1x512xf32, #tpu.memory_space<vmem>>, vector<1x256xf32>
      %c18 = arith.constant 18 : index
      %417 = memref.load %arg3[%c18] : memref<98xf32, #tpu.memory_space<smem>>
      %c67 = arith.constant 67 : index
      %418 = memref.load %arg3[%c67] : memref<98xf32, #tpu.memory_space<smem>>
      %419 = vector.broadcast %417 : f32 to vector<1x256xf32>
      %420 = arith.mulf %415, %419 : vector<1x256xf32>
      %421 = vector.broadcast %418 : f32 to vector<1x256xf32>
      %422 = arith.mulf %416, %421 : vector<1x256xf32>
      %423 = arith.addf %420, %422 : vector<1x256xf32>
      %cst_158 = arith.constant 0.000000e+00 : f32
      %424 = vector.broadcast %cst_158 : f32 to vector<1x256xf32>
      %425 = arith.select %390, %423, %424 : vector<1x256xi1>, vector<1x256xf32>
      %426 = arith.addf %375, %425 : vector<1x256xf32>
      %c0_159 = arith.constant 0 : index
      %c129 = arith.constant 129 : index
      %427 = vector.load %arg7[%c0_159, %c129] : memref<1x512xf32, #tpu.memory_space<vmem>>, vector<1x256xf32>
      %c0_160 = arith.constant 0 : index
      %c129_161 = arith.constant 129 : index
      %428 = vector.load %arg8[%c0_160, %c129_161] : memref<1x512xf32, #tpu.memory_space<vmem>>, vector<1x256xf32>
      %c25 = arith.constant 25 : index
      %429 = memref.load %arg3[%c25] : memref<98xf32, #tpu.memory_space<smem>>
      %c74 = arith.constant 74 : index
      %430 = memref.load %arg3[%c74] : memref<98xf32, #tpu.memory_space<smem>>
      %431 = vector.broadcast %429 : f32 to vector<1x256xf32>
      %432 = arith.mulf %427, %431 : vector<1x256xf32>
      %433 = vector.broadcast %430 : f32 to vector<1x256xf32>
      %434 = arith.mulf %428, %433 : vector<1x256xf32>
      %435 = arith.addf %432, %434 : vector<1x256xf32>
      %cst_162 = arith.constant 0.000000e+00 : f32
      %436 = vector.broadcast %cst_162 : f32 to vector<1x256xf32>
      %437 = arith.select %390, %435, %436 : vector<1x256xi1>, vector<1x256xf32>
      %438 = arith.addf %385, %437 : vector<1x256xf32>
      %c0_163 = arith.constant 0 : index
      %c145 = arith.constant 145 : index
      %439 = vector.load %arg7[%c0_163, %c145] : memref<1x512xf32, #tpu.memory_space<vmem>>, vector<1x256xf32>
      %c0_164 = arith.constant 0 : index
      %c145_165 = arith.constant 145 : index
      %440 = vector.load %arg8[%c0_164, %c145_165] : memref<1x512xf32, #tpu.memory_space<vmem>>, vector<1x256xf32>
      %c32 = arith.constant 32 : index
      %441 = memref.load %arg3[%c32] : memref<98xf32, #tpu.memory_space<smem>>
      %c81_166 = arith.constant 81 : index
      %442 = memref.load %arg3[%c81_166] : memref<98xf32, #tpu.memory_space<smem>>
      %443 = vector.broadcast %441 : f32 to vector<1x256xf32>
      %444 = arith.mulf %439, %443 : vector<1x256xf32>
      %445 = vector.broadcast %442 : f32 to vector<1x256xf32>
      %446 = arith.mulf %440, %445 : vector<1x256xf32>
      %447 = arith.addf %444, %446 : vector<1x256xf32>
      %cst_167 = arith.constant 0.000000e+00 : f32
      %448 = vector.broadcast %cst_167 : f32 to vector<1x256xf32>
      %449 = arith.select %390, %447, %448 : vector<1x256xi1>, vector<1x256xf32>
      %450 = arith.addf %402, %449 : vector<1x256xf32>
      %c0_168 = arith.constant 0 : index
      %c161 = arith.constant 161 : index
      %451 = vector.load %arg7[%c0_168, %c161] : memref<1x512xf32, #tpu.memory_space<vmem>>, vector<1x256xf32>
      %c0_169 = arith.constant 0 : index
      %c161_170 = arith.constant 161 : index
      %452 = vector.load %arg8[%c0_169, %c161_170] : memref<1x512xf32, #tpu.memory_space<vmem>>, vector<1x256xf32>
      %c39 = arith.constant 39 : index
      %453 = memref.load %arg3[%c39] : memref<98xf32, #tpu.memory_space<smem>>
      %c88 = arith.constant 88 : index
      %454 = memref.load %arg3[%c88] : memref<98xf32, #tpu.memory_space<smem>>
      %455 = vector.broadcast %453 : f32 to vector<1x256xf32>
      %456 = arith.mulf %451, %455 : vector<1x256xf32>
      %457 = vector.broadcast %454 : f32 to vector<1x256xf32>
      %458 = arith.mulf %452, %457 : vector<1x256xf32>
      %459 = arith.addf %456, %458 : vector<1x256xf32>
      %cst_171 = arith.constant 0.000000e+00 : f32
      %460 = vector.broadcast %cst_171 : f32 to vector<1x256xf32>
      %461 = arith.select %390, %459, %460 : vector<1x256xi1>, vector<1x256xf32>
      %462 = arith.addf %414, %461 : vector<1x256xf32>
      %c0_172 = arith.constant 0 : index
      %c177 = arith.constant 177 : index
      %463 = vector.load %arg7[%c0_172, %c177] : memref<1x512xf32, #tpu.memory_space<vmem>>, vector<1x256xf32>
      %c0_173 = arith.constant 0 : index
      %c177_174 = arith.constant 177 : index
      %464 = vector.load %arg8[%c0_173, %c177_174] : memref<1x512xf32, #tpu.memory_space<vmem>>, vector<1x256xf32>
      %c46 = arith.constant 46 : index
      %465 = memref.load %arg3[%c46] : memref<98xf32, #tpu.memory_space<smem>>
      %c95_175 = arith.constant 95 : index
      %466 = memref.load %arg3[%c95_175] : memref<98xf32, #tpu.memory_space<smem>>
      %467 = vector.broadcast %465 : f32 to vector<1x256xf32>
      %468 = arith.mulf %463, %467 : vector<1x256xf32>
      %469 = vector.broadcast %466 : f32 to vector<1x256xf32>
      %470 = arith.mulf %464, %469 : vector<1x256xf32>
      %471 = arith.addf %468, %470 : vector<1x256xf32>
      %cst_176 = arith.constant 0.000000e+00 : f32
      %472 = vector.broadcast %cst_176 : f32 to vector<1x256xf32>
      %473 = arith.select %390, %471, %472 : vector<1x256xi1>, vector<1x256xf32>
      %474 = arith.addf %426, %473 : vector<1x256xf32>
      %c-2_i32 = arith.constant -2 : i32
      %475 = vector.broadcast %c-2_i32 : i32 to vector<1x256xi32>
      %476 = arith.cmpi sge, %44, %475 : vector<1x256xi32>
      %c14_i32 = arith.constant 14 : i32
      %477 = vector.broadcast %c14_i32 : i32 to vector<1x256xi32>
      %478 = arith.cmpi slt, %44, %477 : vector<1x256xi32>
      %479 = arith.andi %476, %478 : vector<1x256xi1>
      %c0_177 = arith.constant 0 : index
      %c82 = arith.constant 82 : index
      %480 = vector.load %arg7[%c0_177, %c82] : memref<1x512xf32, #tpu.memory_space<vmem>>, vector<1x256xf32>
      %c0_178 = arith.constant 0 : index
      %c82_179 = arith.constant 82 : index
      %481 = vector.load %arg8[%c0_178, %c82_179] : memref<1x512xf32, #tpu.memory_space<vmem>>, vector<1x256xf32>
      %c5 = arith.constant 5 : index
      %482 = memref.load %arg3[%c5] : memref<98xf32, #tpu.memory_space<smem>>
      %c54 = arith.constant 54 : index
      %483 = memref.load %arg3[%c54] : memref<98xf32, #tpu.memory_space<smem>>
      %484 = vector.broadcast %482 : f32 to vector<1x256xf32>
      %485 = arith.mulf %480, %484 : vector<1x256xf32>
      %486 = vector.broadcast %483 : f32 to vector<1x256xf32>
      %487 = arith.mulf %481, %486 : vector<1x256xf32>
      %488 = arith.addf %485, %487 : vector<1x256xf32>
      %cst_180 = arith.constant 0.000000e+00 : f32
      %489 = vector.broadcast %cst_180 : f32 to vector<1x256xf32>
      %490 = arith.select %479, %488, %489 : vector<1x256xi1>, vector<1x256xf32>
      %491 = arith.addf %438, %490 : vector<1x256xf32>
      %c0_181 = arith.constant 0 : index
      %c98 = arith.constant 98 : index
      %492 = vector.load %arg7[%c0_181, %c98] : memref<1x512xf32, #tpu.memory_space<vmem>>, vector<1x256xf32>
      %c0_182 = arith.constant 0 : index
      %c98_183 = arith.constant 98 : index
      %493 = vector.load %arg8[%c0_182, %c98_183] : memref<1x512xf32, #tpu.memory_space<vmem>>, vector<1x256xf32>
      %c12 = arith.constant 12 : index
      %494 = memref.load %arg3[%c12] : memref<98xf32, #tpu.memory_space<smem>>
      %c61 = arith.constant 61 : index
      %495 = memref.load %arg3[%c61] : memref<98xf32, #tpu.memory_space<smem>>
      %496 = vector.broadcast %494 : f32 to vector<1x256xf32>
      %497 = arith.mulf %492, %496 : vector<1x256xf32>
      %498 = vector.broadcast %495 : f32 to vector<1x256xf32>
      %499 = arith.mulf %493, %498 : vector<1x256xf32>
      %500 = arith.addf %497, %499 : vector<1x256xf32>
      %cst_184 = arith.constant 0.000000e+00 : f32
      %501 = vector.broadcast %cst_184 : f32 to vector<1x256xf32>
      %502 = arith.select %479, %500, %501 : vector<1x256xi1>, vector<1x256xf32>
      %503 = arith.addf %450, %502 : vector<1x256xf32>
      %c0_185 = arith.constant 0 : index
      %c114 = arith.constant 114 : index
      %504 = vector.load %arg7[%c0_185, %c114] : memref<1x512xf32, #tpu.memory_space<vmem>>, vector<1x256xf32>
      %c0_186 = arith.constant 0 : index
      %c114_187 = arith.constant 114 : index
      %505 = vector.load %arg8[%c0_186, %c114_187] : memref<1x512xf32, #tpu.memory_space<vmem>>, vector<1x256xf32>
      %c19 = arith.constant 19 : index
      %506 = memref.load %arg3[%c19] : memref<98xf32, #tpu.memory_space<smem>>
      %c68 = arith.constant 68 : index
      %507 = memref.load %arg3[%c68] : memref<98xf32, #tpu.memory_space<smem>>
      %508 = vector.broadcast %506 : f32 to vector<1x256xf32>
      %509 = arith.mulf %504, %508 : vector<1x256xf32>
      %510 = vector.broadcast %507 : f32 to vector<1x256xf32>
      %511 = arith.mulf %505, %510 : vector<1x256xf32>
      %512 = arith.addf %509, %511 : vector<1x256xf32>
      %cst_188 = arith.constant 0.000000e+00 : f32
      %513 = vector.broadcast %cst_188 : f32 to vector<1x256xf32>
      %514 = arith.select %479, %512, %513 : vector<1x256xi1>, vector<1x256xf32>
      %515 = arith.addf %462, %514 : vector<1x256xf32>
      %c0_189 = arith.constant 0 : index
      %c130 = arith.constant 130 : index
      %516 = vector.load %arg7[%c0_189, %c130] : memref<1x512xf32, #tpu.memory_space<vmem>>, vector<1x256xf32>
      %c0_190 = arith.constant 0 : index
      %c130_191 = arith.constant 130 : index
      %517 = vector.load %arg8[%c0_190, %c130_191] : memref<1x512xf32, #tpu.memory_space<vmem>>, vector<1x256xf32>
      %c26 = arith.constant 26 : index
      %518 = memref.load %arg3[%c26] : memref<98xf32, #tpu.memory_space<smem>>
      %c75 = arith.constant 75 : index
      %519 = memref.load %arg3[%c75] : memref<98xf32, #tpu.memory_space<smem>>
      %520 = vector.broadcast %518 : f32 to vector<1x256xf32>
      %521 = arith.mulf %516, %520 : vector<1x256xf32>
      %522 = vector.broadcast %519 : f32 to vector<1x256xf32>
      %523 = arith.mulf %517, %522 : vector<1x256xf32>
      %524 = arith.addf %521, %523 : vector<1x256xf32>
      %cst_192 = arith.constant 0.000000e+00 : f32
      %525 = vector.broadcast %cst_192 : f32 to vector<1x256xf32>
      %526 = arith.select %479, %524, %525 : vector<1x256xi1>, vector<1x256xf32>
      %527 = arith.addf %474, %526 : vector<1x256xf32>
      %c0_193 = arith.constant 0 : index
      %c146 = arith.constant 146 : index
      %528 = vector.load %arg7[%c0_193, %c146] : memref<1x512xf32, #tpu.memory_space<vmem>>, vector<1x256xf32>
      %c0_194 = arith.constant 0 : index
      %c146_195 = arith.constant 146 : index
      %529 = vector.load %arg8[%c0_194, %c146_195] : memref<1x512xf32, #tpu.memory_space<vmem>>, vector<1x256xf32>
      %c33 = arith.constant 33 : index
      %530 = memref.load %arg3[%c33] : memref<98xf32, #tpu.memory_space<smem>>
      %c82_196 = arith.constant 82 : index
      %531 = memref.load %arg3[%c82_196] : memref<98xf32, #tpu.memory_space<smem>>
      %532 = vector.broadcast %530 : f32 to vector<1x256xf32>
      %533 = arith.mulf %528, %532 : vector<1x256xf32>
      %534 = vector.broadcast %531 : f32 to vector<1x256xf32>
      %535 = arith.mulf %529, %534 : vector<1x256xf32>
      %536 = arith.addf %533, %535 : vector<1x256xf32>
      %cst_197 = arith.constant 0.000000e+00 : f32
      %537 = vector.broadcast %cst_197 : f32 to vector<1x256xf32>
      %538 = arith.select %479, %536, %537 : vector<1x256xi1>, vector<1x256xf32>
      %539 = arith.addf %491, %538 : vector<1x256xf32>
      %c0_198 = arith.constant 0 : index
      %c162 = arith.constant 162 : index
      %540 = vector.load %arg7[%c0_198, %c162] : memref<1x512xf32, #tpu.memory_space<vmem>>, vector<1x256xf32>
      %c0_199 = arith.constant 0 : index
      %c162_200 = arith.constant 162 : index
      %541 = vector.load %arg8[%c0_199, %c162_200] : memref<1x512xf32, #tpu.memory_space<vmem>>, vector<1x256xf32>
      %c40 = arith.constant 40 : index
      %542 = memref.load %arg3[%c40] : memref<98xf32, #tpu.memory_space<smem>>
      %c89 = arith.constant 89 : index
      %543 = memref.load %arg3[%c89] : memref<98xf32, #tpu.memory_space<smem>>
      %544 = vector.broadcast %542 : f32 to vector<1x256xf32>
      %545 = arith.mulf %540, %544 : vector<1x256xf32>
      %546 = vector.broadcast %543 : f32 to vector<1x256xf32>
      %547 = arith.mulf %541, %546 : vector<1x256xf32>
      %548 = arith.addf %545, %547 : vector<1x256xf32>
      %cst_201 = arith.constant 0.000000e+00 : f32
      %549 = vector.broadcast %cst_201 : f32 to vector<1x256xf32>
      %550 = arith.select %479, %548, %549 : vector<1x256xi1>, vector<1x256xf32>
      %551 = arith.addf %503, %550 : vector<1x256xf32>
      %c0_202 = arith.constant 0 : index
      %c178 = arith.constant 178 : index
      %552 = vector.load %arg7[%c0_202, %c178] : memref<1x512xf32, #tpu.memory_space<vmem>>, vector<1x256xf32>
      %c0_203 = arith.constant 0 : index
      %c178_204 = arith.constant 178 : index
      %553 = vector.load %arg8[%c0_203, %c178_204] : memref<1x512xf32, #tpu.memory_space<vmem>>, vector<1x256xf32>
      %c47 = arith.constant 47 : index
      %554 = memref.load %arg3[%c47] : memref<98xf32, #tpu.memory_space<smem>>
      %c96_205 = arith.constant 96 : index
      %555 = memref.load %arg3[%c96_205] : memref<98xf32, #tpu.memory_space<smem>>
      %556 = vector.broadcast %554 : f32 to vector<1x256xf32>
      %557 = arith.mulf %552, %556 : vector<1x256xf32>
      %558 = vector.broadcast %555 : f32 to vector<1x256xf32>
      %559 = arith.mulf %553, %558 : vector<1x256xf32>
      %560 = arith.addf %557, %559 : vector<1x256xf32>
      %cst_206 = arith.constant 0.000000e+00 : f32
      %561 = vector.broadcast %cst_206 : f32 to vector<1x256xf32>
      %562 = arith.select %479, %560, %561 : vector<1x256xi1>, vector<1x256xf32>
      %563 = arith.addf %515, %562 : vector<1x256xf32>
      %c-3_i32 = arith.constant -3 : i32
      %564 = vector.broadcast %c-3_i32 : i32 to vector<1x256xi32>
      %565 = arith.cmpi sge, %44, %564 : vector<1x256xi32>
      %c13_i32 = arith.constant 13 : i32
      %566 = vector.broadcast %c13_i32 : i32 to vector<1x256xi32>
      %567 = arith.cmpi slt, %44, %566 : vector<1x256xi32>
      %568 = arith.andi %565, %567 : vector<1x256xi1>
      %c0_207 = arith.constant 0 : index
      %c83 = arith.constant 83 : index
      %569 = vector.load %arg7[%c0_207, %c83] : memref<1x512xf32, #tpu.memory_space<vmem>>, vector<1x256xf32>
      %c0_208 = arith.constant 0 : index
      %c83_209 = arith.constant 83 : index
      %570 = vector.load %arg8[%c0_208, %c83_209] : memref<1x512xf32, #tpu.memory_space<vmem>>, vector<1x256xf32>
      %c6 = arith.constant 6 : index
      %571 = memref.load %arg3[%c6] : memref<98xf32, #tpu.memory_space<smem>>
      %c55 = arith.constant 55 : index
      %572 = memref.load %arg3[%c55] : memref<98xf32, #tpu.memory_space<smem>>
      %573 = vector.broadcast %571 : f32 to vector<1x256xf32>
      %574 = arith.mulf %569, %573 : vector<1x256xf32>
      %575 = vector.broadcast %572 : f32 to vector<1x256xf32>
      %576 = arith.mulf %570, %575 : vector<1x256xf32>
      %577 = arith.addf %574, %576 : vector<1x256xf32>
      %cst_210 = arith.constant 0.000000e+00 : f32
      %578 = vector.broadcast %cst_210 : f32 to vector<1x256xf32>
      %579 = arith.select %568, %577, %578 : vector<1x256xi1>, vector<1x256xf32>
      %580 = arith.addf %527, %579 : vector<1x256xf32>
      %c0_211 = arith.constant 0 : index
      %c99 = arith.constant 99 : index
      %581 = vector.load %arg7[%c0_211, %c99] : memref<1x512xf32, #tpu.memory_space<vmem>>, vector<1x256xf32>
      %c0_212 = arith.constant 0 : index
      %c99_213 = arith.constant 99 : index
      %582 = vector.load %arg8[%c0_212, %c99_213] : memref<1x512xf32, #tpu.memory_space<vmem>>, vector<1x256xf32>
      %c13 = arith.constant 13 : index
      %583 = memref.load %arg3[%c13] : memref<98xf32, #tpu.memory_space<smem>>
      %c62 = arith.constant 62 : index
      %584 = memref.load %arg3[%c62] : memref<98xf32, #tpu.memory_space<smem>>
      %585 = vector.broadcast %583 : f32 to vector<1x256xf32>
      %586 = arith.mulf %581, %585 : vector<1x256xf32>
      %587 = vector.broadcast %584 : f32 to vector<1x256xf32>
      %588 = arith.mulf %582, %587 : vector<1x256xf32>
      %589 = arith.addf %586, %588 : vector<1x256xf32>
      %cst_214 = arith.constant 0.000000e+00 : f32
      %590 = vector.broadcast %cst_214 : f32 to vector<1x256xf32>
      %591 = arith.select %568, %589, %590 : vector<1x256xi1>, vector<1x256xf32>
      %592 = arith.addf %539, %591 : vector<1x256xf32>
      %c0_215 = arith.constant 0 : index
      %c115 = arith.constant 115 : index
      %593 = vector.load %arg7[%c0_215, %c115] : memref<1x512xf32, #tpu.memory_space<vmem>>, vector<1x256xf32>
      %c0_216 = arith.constant 0 : index
      %c115_217 = arith.constant 115 : index
      %594 = vector.load %arg8[%c0_216, %c115_217] : memref<1x512xf32, #tpu.memory_space<vmem>>, vector<1x256xf32>
      %c20 = arith.constant 20 : index
      %595 = memref.load %arg3[%c20] : memref<98xf32, #tpu.memory_space<smem>>
      %c69 = arith.constant 69 : index
      %596 = memref.load %arg3[%c69] : memref<98xf32, #tpu.memory_space<smem>>
      %597 = vector.broadcast %595 : f32 to vector<1x256xf32>
      %598 = arith.mulf %593, %597 : vector<1x256xf32>
      %599 = vector.broadcast %596 : f32 to vector<1x256xf32>
      %600 = arith.mulf %594, %599 : vector<1x256xf32>
      %601 = arith.addf %598, %600 : vector<1x256xf32>
      %cst_218 = arith.constant 0.000000e+00 : f32
      %602 = vector.broadcast %cst_218 : f32 to vector<1x256xf32>
      %603 = arith.select %568, %601, %602 : vector<1x256xi1>, vector<1x256xf32>
      %604 = arith.addf %551, %603 : vector<1x256xf32>
      %c0_219 = arith.constant 0 : index
      %c131 = arith.constant 131 : index
      %605 = vector.load %arg7[%c0_219, %c131] : memref<1x512xf32, #tpu.memory_space<vmem>>, vector<1x256xf32>
      %c0_220 = arith.constant 0 : index
      %c131_221 = arith.constant 131 : index
      %606 = vector.load %arg8[%c0_220, %c131_221] : memref<1x512xf32, #tpu.memory_space<vmem>>, vector<1x256xf32>
      %c27 = arith.constant 27 : index
      %607 = memref.load %arg3[%c27] : memref<98xf32, #tpu.memory_space<smem>>
      %c76 = arith.constant 76 : index
      %608 = memref.load %arg3[%c76] : memref<98xf32, #tpu.memory_space<smem>>
      %609 = vector.broadcast %607 : f32 to vector<1x256xf32>
      %610 = arith.mulf %605, %609 : vector<1x256xf32>
      %611 = vector.broadcast %608 : f32 to vector<1x256xf32>
      %612 = arith.mulf %606, %611 : vector<1x256xf32>
      %613 = arith.addf %610, %612 : vector<1x256xf32>
      %cst_222 = arith.constant 0.000000e+00 : f32
      %614 = vector.broadcast %cst_222 : f32 to vector<1x256xf32>
      %615 = arith.select %568, %613, %614 : vector<1x256xi1>, vector<1x256xf32>
      %616 = arith.addf %563, %615 : vector<1x256xf32>
      %c0_223 = arith.constant 0 : index
      %c147 = arith.constant 147 : index
      %617 = vector.load %arg7[%c0_223, %c147] : memref<1x512xf32, #tpu.memory_space<vmem>>, vector<1x256xf32>
      %c0_224 = arith.constant 0 : index
      %c147_225 = arith.constant 147 : index
      %618 = vector.load %arg8[%c0_224, %c147_225] : memref<1x512xf32, #tpu.memory_space<vmem>>, vector<1x256xf32>
      %c34 = arith.constant 34 : index
      %619 = memref.load %arg3[%c34] : memref<98xf32, #tpu.memory_space<smem>>
      %c83_226 = arith.constant 83 : index
      %620 = memref.load %arg3[%c83_226] : memref<98xf32, #tpu.memory_space<smem>>
      %621 = vector.broadcast %619 : f32 to vector<1x256xf32>
      %622 = arith.mulf %617, %621 : vector<1x256xf32>
      %623 = vector.broadcast %620 : f32 to vector<1x256xf32>
      %624 = arith.mulf %618, %623 : vector<1x256xf32>
      %625 = arith.addf %622, %624 : vector<1x256xf32>
      %cst_227 = arith.constant 0.000000e+00 : f32
      %626 = vector.broadcast %cst_227 : f32 to vector<1x256xf32>
      %627 = arith.select %568, %625, %626 : vector<1x256xi1>, vector<1x256xf32>
      %628 = arith.addf %580, %627 : vector<1x256xf32>
      %c0_228 = arith.constant 0 : index
      %c163 = arith.constant 163 : index
      %629 = vector.load %arg7[%c0_228, %c163] : memref<1x512xf32, #tpu.memory_space<vmem>>, vector<1x256xf32>
      %c0_229 = arith.constant 0 : index
      %c163_230 = arith.constant 163 : index
      %630 = vector.load %arg8[%c0_229, %c163_230] : memref<1x512xf32, #tpu.memory_space<vmem>>, vector<1x256xf32>
      %c41 = arith.constant 41 : index
      %631 = memref.load %arg3[%c41] : memref<98xf32, #tpu.memory_space<smem>>
      %c90 = arith.constant 90 : index
      %632 = memref.load %arg3[%c90] : memref<98xf32, #tpu.memory_space<smem>>
      %633 = vector.broadcast %631 : f32 to vector<1x256xf32>
      %634 = arith.mulf %629, %633 : vector<1x256xf32>
      %635 = vector.broadcast %632 : f32 to vector<1x256xf32>
      %636 = arith.mulf %630, %635 : vector<1x256xf32>
      %637 = arith.addf %634, %636 : vector<1x256xf32>
      %cst_231 = arith.constant 0.000000e+00 : f32
      %638 = vector.broadcast %cst_231 : f32 to vector<1x256xf32>
      %639 = arith.select %568, %637, %638 : vector<1x256xi1>, vector<1x256xf32>
      %640 = arith.addf %592, %639 : vector<1x256xf32>
      %c0_232 = arith.constant 0 : index
      %c179 = arith.constant 179 : index
      %641 = vector.load %arg7[%c0_232, %c179] : memref<1x512xf32, #tpu.memory_space<vmem>>, vector<1x256xf32>
      %c0_233 = arith.constant 0 : index
      %c179_234 = arith.constant 179 : index
      %642 = vector.load %arg8[%c0_233, %c179_234] : memref<1x512xf32, #tpu.memory_space<vmem>>, vector<1x256xf32>
      %c48 = arith.constant 48 : index
      %643 = memref.load %arg3[%c48] : memref<98xf32, #tpu.memory_space<smem>>
      %c97_235 = arith.constant 97 : index
      %644 = memref.load %arg3[%c97_235] : memref<98xf32, #tpu.memory_space<smem>>
      %645 = vector.broadcast %643 : f32 to vector<1x256xf32>
      %646 = arith.mulf %641, %645 : vector<1x256xf32>
      %647 = vector.broadcast %644 : f32 to vector<1x256xf32>
      %648 = arith.mulf %642, %647 : vector<1x256xf32>
      %649 = arith.addf %646, %648 : vector<1x256xf32>
      %cst_236 = arith.constant 0.000000e+00 : f32
      %650 = vector.broadcast %cst_236 : f32 to vector<1x256xf32>
      %651 = arith.select %568, %649, %650 : vector<1x256xi1>, vector<1x256xf32>
      %652 = arith.addf %604, %651 : vector<1x256xf32>
      %653 = arith.addf %652, %616 : vector<1x256xf32>
      %654 = arith.addf %628, %640 : vector<1x256xf32>
      %655 = arith.addf %653, %654 : vector<1x256xf32>
      %656 = arith.negf %655 : vector<1x256xf32>
      %657 = math.exp %656 : vector<1x256xf32>
      %cst_237 = arith.constant 1.000000e+00 : f32
      %658 = vector.broadcast %cst_237 : f32 to vector<1x256xf32>
      %659 = arith.addf %658, %657 : vector<1x256xf32>
      %660 = arith.divf %658, %659 : vector<1x256xf32>
      %c0_238 = arith.constant 0 : index
      %c0_239 = arith.constant 0 : index
      %c0_240 = arith.constant 0 : index
      %661 = vector.load %arg4[%c0_238, %c0_239, %c0_240] : memref<1x1x256xf32, #tpu.memory_space<vmem>>, vector<1x1x256xf32>
      %662 = vector.shape_cast %661 : vector<1x1x256xf32> to vector<1x256xf32>
      %663 = vector.shape_cast %660 : vector<1x256xf32> to vector<1x1x256xf32>
      tpu.vector_store %arg4[%c0_238, %c0_239, %c0_240], %663 {strides = array<i32>} : memref<1x1x256xf32, #tpu.memory_space<vmem>>, vector<1x1x256xf32>,
    } else {
    }
    return
  }
  func.func @transform_0(%arg0: i32, %arg1: i32) -> (i32, i32, i32) {
    %c0_i32 = arith.constant 0 : i32
    %c0_i32_0 = arith.constant 0 : i32
    return %arg0, %arg1, %c0_i32 : i32, i32, i32
  }
  func.func @transform_1(%arg0: i32, %arg1: i32) -> i32 {
    %c0_i32 = arith.constant 0 : i32
    %c0_i32_0 = arith.constant 0 : i32
    return %c0_i32 : i32
  }
  func.func @transform_2(%arg0: i32, %arg1: i32) -> (i32, i32, i32) {
    %c0_i32 = arith.constant 0 : i32
    %c0_i32_0 = arith.constant 0 : i32
    %c0_i32_1 = arith.constant 0 : i32
    return %arg0, %c0_i32, %c0_i32_0 : i32, i32, i32
  }
}

</mosaic_0001>

<bundles_post_ra>
// kernel: tpu_custom_call.1
= control target key start
LH: loop header
LB: loop body
LE: loop exit
PB: predicated region body
PF: predicated region fallthrough
CT: control target
= control target key end

     0   :  { %7 = vsyncpa [#allocation7], 0  ;;  %s3842_s0 = inlined_call_operand.hbm [shape: f32[2,4,256], index: 0, kind: input, shape index: {}]   ;;  %s3843_s1 = inlined_call_operand.vmem [shape: f32[98], index: 1, kind: input, shape index: {}]   ;;  %s3844_s2 = inlined_call_operand.hbm [shape: f32[2,1,256], index: 2, kind: output, shape index: {}]  }
   0x1   :  { %9 = vsyncpa [#allocation7 + $0x1], 0 }
   0x2   :  { %10 = vsyncpa [#allocation9], 0 }
   0x3   :  { %11 = vsyncpa [#allocation8], 0 }
   0x4   :  { %13 = vsyncpa [#allocation8 + $0x1], 0  ;;  %s2694_s9 = smov 0   ;;  %s2696_s10 = smov 0  }
   0x5   :  { %s2698_s11 = smov 0   ;;  %s2700_s12 = smov 0  }
   0x6   :  { %s2702_s13 = smov 0   ;;  %s2704_s14 = smov 0  }
   0x7 LB: > { %s2239_s15 = sadd.s32 4294967295, %s2624_s14   ;;  %s2240_s16 = sadd.s32 4294967294, %s2624_s14   ;;  %s2624_s14 = sphi %s2704_s14, %s19_s14   ;;  %s2620_s13 = sphi %s2702_s13, %s3915_s13   ;;  %s2616_s12 = sphi %s2700_s12, %s3914_s12   ;;  %s2612_s11 = sphi %s2698_s11, %s3913_s11   ;;  %s2608_s10 = sphi %s2696_s10, %s3912_s10   ;;  %s2604_s9 = sphi %s2694_s9, %s3911_s9  }
   0x8   : > { %p53_p0 = scmp.ne.s32.totalorder %s2608_s10, %s2604_s9  ;;  %p2728_p1 = scmp.eq.s32.totalorder %s2239_s15, 0 }
   0x9   : > { %p2732_p2 = scmp.eq.s32.totalorder %s2239_s15, 1  ;;  %p104_p3 = scmp.eq.s32.totalorder %s2240_s16, 1 }
   0xa   : > { %s3856_s17 = scalar_select %p2728_p1, 1, 0 }
   0xb   : > { %p2738_p4 = por %p2728_p1, %p53_p0  ;;  %p2241_p5 = scmp.ge.s32.totalorder %s2624_s14, 1 }
   0xc   : > { %p2743_p6 = por %p104_p3, %p53_p0  ;;  %p111_p7 = scmp.lt.s32.totalorder %s2624_s14, 3 }
   0xd   : > { %s3858_s19 = scalar_select %p2738_p4, 1, 0 }
   0xe   : > { %s3859_s20 = scalar_select %p2743_p6, 1, 0 }
   0xf   : > { %s124_s23 = sshll.u32 %s3843_s1, 4  ;;  %p2751_p8 = pnand %p2241_p5, %p111_p7  ;;  %s125_s23 = int_to_ptr.vmem [resolvable:$true] %s124_s23 }
  0x10   : > { %s31_s26 = sadd.s32 1, %s2620_s13  ;;  %s40_s27 = sadd.s32 1, %s2612_s11 }
  0x11   : > { %p2365_p10 = pneg %p2751_p8  ;;  %p33_p12 = scmp.ge.s32.totalorder %s31_s26, 2 }
  0x12   : > { %s2493_s28 = scalar_lea.vmem %s125_s23, 16  ;;  %p2501_p7 = scmp.lt.s32.totalorder %s125_s23, %s125_s23 }
  0x13   : > { %p2760_p11 = pnand %p2365_p10, %p2728_p1  ;;  %p2494_p13 = scmp.ne.s32.totalorder %s125_s23, %s2493_s28 }
  0x14   : > { %p2502_p6 = scmp.lt.s32.totalorder %s2493_s28, %s2493_s28 }
  0x15   : > { %p2495_p0 = pneg %p2760_p11 }
  0x16   : > { %p2503_p9 = por %p2502_p6, %p2501_p7 }
  0x17   : > { %p2496_p3 = pnand %p2495_p0, %p2494_p13 }
  0x19   : > { %p2497_p5 = pneg %p2496_p3 }
  0x1b   : > { %p2504_p4 = pnand %p2503_p9, %p2497_p5 }
  0x1d   : > { %2507 = shalt.err (!%p2504_p4)
}
  0x1e   : > { %s2626_s29 = smov [#allocation10]   ;;  %s3917_s26 = smov (%p33_p12, %s31_s26), 0 }
  0x1f   : > { %2368 = dma.vmem_to_smem (!%p2760_p11), %s125_s23, 16, %s2626_s29, [#allocation9]  }
  0x20   : > { %p47_p10 = scmp.ne.s32.totalorder %s2612_s11, %s2608_s10  ;;  %p48_p6 = scmp.eq.s32.totalorder %s2624_s14, 0 }
  0x21   : > { %s35_s30 = ssub.s32 %s2620_s13, %s3917_s26  ;;  %p2378_p4 = scmp.lt.s32.totalorder %s2624_s14, 2 }
  0x22   : > { %p38_p9 = scmp.eq.s32.totalorder %s35_s30, 0  ;;  %p49_p13 = por %p48_p6, %p47_p10 }
  0x23   : > { %p2780_p0 = por %p2732_p2, %p47_p10  ;;  %s135_s4 = sand.u32 1, %s2612_s11  }
  0x24   : > { %s2786_s5 = scalar_select %p38_p9, %s2612_s11, %s40_s27  }
  0x25   : > { %s3862_s3 = scalar_select %p2780_p0, 1, 0 }
  0x26   : > { %s2244_s6 = sshll.u32 %s135_s4, 3  ;;  %s2355_s7 = sshll.u32 %s2620_s13, 7 }
  0x27   : > { %s2792_s16 = scalar_lea.hbm %s3842_s0, %s2355_s7  ;;  %s139_s21 = scalar_lea.vmem [#allocation6], %s2244_s6 }
  0x28   : > { %s149_s18 = sshll.u32 %s139_s21, 4  ;;  %p2796_p2 = pnand %p2378_p4, %p49_p13  ;;  %s2794_s18 = int_to_ptr.vmem [resolvable:$true] %s149_s18 }
  0x29   : > { %s136_s23 = scalar_lea.sflag [#allocation7], %s135_s4  ;;  %s2508_s25 = scalar_lea.hbm %s2792_s16, 128 }
  0x2a   : > { %p2509_p11 = scmp.ne.s32.totalorder %s2792_s16, %s2508_s25  ;;  %p2510_p12 = pneg %p2796_p2 }
  0x2b   : > { %s2513_s29 = scalar_lea.hbm %s3842_s0, 256  ;;  %p2514_p7 = scmp.lt.u32.totalorder %s2792_s16, %s3842_s0 }
  0x2c   : > { %p2511_p3 = pnand %p2510_p12, %p2509_p11  ;;  %p2515_p10 = scmp.lt.u32.totalorder %s2513_s29, %s2508_s25 }
  0x2d   : > { %p2517_p4 = scmp.lt.u32.totalorder %s2508_s25, %s2792_s16 }
  0x2e   : > { %p2512_p5 = pneg %p2511_p3  ;;  %p2516_p6 = por %p2515_p10, %p2514_p7 }
  0x30   : > { %p2518_p9 = por %p2517_p4, %p2516_p6 }
  0x32   : > { %p2519_p13 = pnand %p2518_p9, %p2512_p5 }
  0x34   : > { %2522 = shalt.err (!%p2519_p13)
}
  0x35   : > { %s2523_s4 = scalar_lea.vmem %s2794_s18, 128  ;;  %s2627_s7 = smov [#allocation6]  }
  0x36   : > { %p2524_p11 = scmp.ne.s32.totalorder %s2794_s18, %s2523_s4  ;;  %s2528_s8 = sshll.u32 %s2627_s7, 4  ;;  %s2529_s8 = int_to_ptr.vmem [resolvable:$false] %s2528_s8 }
  0x37   : > { %s2530_s15 = scalar_lea.vmem %s2529_s8, 256  ;;  %p2531_p1 = scmp.lt.s32.totalorder %s2794_s18, %s2529_s8 }
  0x38   : > { %p2526_p3 = pnand %p2524_p11, %p2510_p12  ;;  %p2532_p7 = scmp.lt.s32.totalorder %s2530_s15, %s2523_s4 }
  0x3a   : > { %p2527_p0 = pneg %p2526_p3  ;;  %p2533_p10 = por %p2532_p7, %p2531_p1 }
  0x3c   : > { %p2534_p6 = pnand %p2533_p10, %p2527_p0 }
  0x3e   : > { %2537 = shalt.err (!%p2534_p6)
}
  0x3f   : > { %2372 = dma.hbm_to_vmem [thread:$0]  (!%p2796_p2), %s2792_s16, 128, %s2794_s18, %s136_s23  }
  0x40   : > { %158 = sbr.rel (%p2751_p8) target bundleno = 581 (0x245), region = 28 }
  0x47   : > { %s2828_s21 = sand.u32 1, %s2608_s10   ;;  %p3864_p1 = scmp.ne.s32.totalorder %s3858_s19, 0 }
  0x48   : > { %s2248_s25 = sshll.u32 %s2828_s21, 3  ;;  %s161_s27 = scalar_lea.sflag [#allocation7], %s2828_s21 }
  0x49   : > { %s164_s28 = scalar_lea.vmem [#allocation6], %s2248_s25 }
  0x4a   : > { %2591 = dma.done.wait (%p3864_p1), %s161_s27, 128  }
  0x4b   : > { %2593 = vsyncadd (%p3864_p1), %s161_s27, 4294967168  ;;  %p3865_p0 = scmp.ne.s32.totalorder %s3856_s17, 0 }
  0x4d   : > { %2595 = dma.done.wait (%p3865_p0), [#allocation9], 16  }
  0x4e   : > { %2597 = vsyncadd (%p3865_p0), [#allocation9], 4294967280 }
  0x4f   : > { %173 = sfence }
  0x50   : > { %v190_v0 = vld [vmem:[%s164_s28] sm:$0xff]  ;;  %vm194_vm0 = vcmask 1043456   ;;  %v233_v1 = vlaneseq  ;;  %v2628_v13 = vmov 0.0   ;;  %v2629_v14 = vmov 1966171168   ;;  %s2251_s17 = sld [smem:[#allocation10 + $0x31]] }
  0x51   : > { %v192_v2 = vcombine.high %v190_v0, %v190_v0  ;;  %v195_v3 = vsel %vm194_vm0, %v190_v0, 0.0  ;;  %v209_v4 = vsel %vm194_vm0, %v190_v0, -inf  ;;  %v231_v15 = vunpack.c.l.s4 %v2629_v14  ;;  %s2253_s19 = sld [smem:[#allocation10 + $0x38]]  ;;  %s2252_s16 = sld [smem:[#allocation10 + $0x7]] }
  0x52   : > { %v196_v5 = vrot.slane %v195_v3, 4  ;;  %v210_v6 = vrot.slane %v209_v4, 4  ;;  %vm324_vm1 = vcmp.lt.s32.totalorder %v233_v1, 128  ;;  %v234_v25 = vshrl.u32 %v233_v1, 7  ;;  %s372_s24 = sld [smem:[#allocation10]]  ;;  %s2255_s18 = sld [smem:[#allocation10 + $0x3f]] }
  0x53   : > { %v202_v7 = vsel %vm194_vm0, %v192_v2, 0.0  ;;  %v216_v8 = vsel %vm194_vm0, %v192_v2, -inf  ;;  %326 = vst.msk [vmem:[#allocation4] sm:$0x1] %vm324_vm1, %v2628_v13  ;;  %328 = vst.msk [vmem:[#allocation5] sm:$0x1] %vm324_vm1, %v2628_v13  ;;  %v232_v24 = vunpack.c.0.s8 %v231_v15 }
  0x54   : > { %v197_v9 = vadd.f32 %v196_v5, %v195_v3  ;;  %v203_v10 = vrot.slane %v202_v7, 4  ;;  %v211_v11 = vmax.f32 %v209_v4, %v210_v6  ;;  %v217_v12 = vrot.slane %v216_v8, 4  ;;  %327 = vst.msk [vmem:[#allocation4 + $0x3] sm:$0x1] %vm324_vm1, %v2628_v13  ;;  %329 = vst.msk [vmem:[#allocation5 + $0x3] sm:$0x1] %vm324_vm1, %v2628_v13 }
  0x55   : > { %v2842_v36 = vsub.s32 %v232_v24, %v234_v25  ;;  %vm2847_vm2 = vcmp.lt.s32.totalorder %v233_v1, 256  ;;  %v3867_v41 = vmov 0  ;;  %s2254_s22 = sld [smem:[#allocation10 + $0xe]]  ;;  %s2256_s23 = sld [smem:[#allocation10 + $0x15]]  ;;  %v2868_v56 = vsub.s32 0, %v234_v25 }
  0x56   : > { %v198_v16 = vrot.slane %v197_v9, 2  ;;  %v204_v17 = vadd.f32 %v203_v10, %v202_v7  ;;  %v212_v18 = vrot.slane %v211_v11, 2  ;;  %v218_v19 = vmax.f32 %v216_v8, %v217_v12  ;;  %s2257_s29 = sld [smem:[#allocation10 + $0x46]]  ;;  %s2630_s30 = smov 51  }
  0x57   : > { %3866 = vst [vmem:[#allocation15_spill] sm:$0xff] %v2842_v36  ;;  %v3868_v41 = vsel %vm2847_vm2, 4294967295, %v3867_v41  ;;  %v376_v47 = vstv %s2251_s17  ;;  %v411_v48 = vstv %s2253_s19  ;;  %v409_v51 = vstv %s2252_s16  ;;  %s2259_s6 = sld [smem:[#allocation10 + $0x4d]]  ;;  %s2258_s4 = sld [smem:[#allocation10 + $0x1c]] }
  0x58   : > { %v199_v20 = vadd.f32 %v198_v16, %v197_v9  ;;  %v205_v21 = vrot.slane %v204_v17, 2  ;;  %v213_v22 = vmax.f32 %v211_v11, %v212_v18  ;;  %v219_v23 = vrot.slane %v218_v19, 2  ;;  %3869 = vst [vmem:[#allocation16_spill] sm:$0xff] %v3868_v41  ;;  %s2260_s7 = sld [smem:[#allocation10 + $0x23]]  ;;  %s2631_s8 = smov 35  }
  0x59   : > { %v374_v50 = vstv %s372_s24  ;;  %v2870_v57 = vsub.s32 2, %v234_v25  ;;  %v2873_v60 = vsub.s32 1, %v234_v25  ;;  %v446_v62 = vstv %s2255_s18  ;;  %s2261_s15 = sld [smem:[#allocation10 + $0x54]]  ;;  %s2632_s25 = smov 19  }
  0x5a   : > { %v200_v26 = vrot.slane %v199_v20, 1  ;;  %v206_v27 = vadd.f32 %v205_v21, %v204_v17  ;;  %v214_v28 = vrot.slane %v213_v22, 1  ;;  %v220_v29 = vmax.f32 %v218_v19, %v219_v23  ;;  %s2263_s27 = sld [smem:[#allocation10 + $0x5b]]  ;;  %s2262_s28 = sld [smem:[#allocation10 + $0x2a]] }
  0x5b   : > { %v444_v63 = vstv %s2254_s22  ;;  %v479_v4 = vstv %s2256_s23  ;;  %s2264_s17 = sld [smem:[#allocation10 + $0x1]]  ;;  %s2633_s19 = smov 3   ;;  %vm398_vm4 = vcmask 416768   ;;  %vm433_vm5 = vcmask 285696  }
  0x5c   : > { %v201_v30 = vadd.f32 %v200_v26, %v199_v20  ;;  %v207_v31 = vrot.slane %v206_v27, 1  ;;  %v215_v32 = vmax.f32 %v213_v22, %v214_v28  ;;  %v221_v33 = vrot.slane %v220_v29, 1  ;;  %s2265_s24 = sld [smem:[#allocation10 + $0x32]]  ;;  %s2634_s16 = smov 115  }
  0x5d   : > { %v481_v8 = vstv %s2257_s29  ;;  %v518_v18 = vstv %s2259_s6  ;;  %v516_v20 = vstv %s2258_s4  ;;  %s2266_s18 = sld [smem:[#allocation10 + $0x8]]  ;;  %s2267_s22 = sld [smem:[#allocation10 + $0x39]]  ;;  %vm503_vm6 = vcmask 23552  }
  0x5e   : > { %v208_v34 = vadd.f32 %v207_v31, %v206_v27  ;;  %v222_v35 = vmax.f32 %v220_v29, %v221_v33  ;;  %v551_v22 = vstv %s2260_s7  ;;  %s2635_s23 = smov 99   ;;  %s2268_s29 = sld [smem:[#allocation10 + $0xf]]  ;;  %vm540_vm7 = vcmask 941056  }
  0x5f   : > { %v553_v26 = vstv %s2261_s15  ;;  %s2636_s6 = smov 83   ;;  %s2270_s4 = sld [smem:[#allocation10 + $0x16]]  ;;  %vm651_vm11 = vcmask 408576   ;;  %vm686_vm12 = vcmask 277504   ;;  %vm791_vm13 = vcmask 932864  }
  0x60   : > { %v229_v37 = vcombine.low %v201_v30, %v208_v34  ;;  %v252_v38 = vcombine.low %v215_v32, %v222_v35  ;;  %v588_v35 = vstv %s2263_s27  ;;  %s2271_s7 = sld [smem:[#allocation10 + $0x47]]  ;;  %s2637_s15 = smov 50   ;;  %vm826_vm14 = vcmask 801792  }
  0x61   : > { %s2274_s27 = sld [smem:[#allocation10 + $0x24]]  ;;  %vm575_vm15 = vcmask 809984   ;;  %vm610_vm0 = vcmask 678912   ;;  %p3908_p2 = scmp.ne.s32.totalorder %s3862_s3, 0 }
  0x62   : > { %v236_v39 = vrot.slane %v229_v37, %v2842_v36  ;;  %v259_v40 = vrot.slane %v252_v38, %v2842_v36  ;;  %v586_v37 = vstv %s2262_s28  ;;  %s2638_s28 = smov 34  }
  0x64   : > { %v243_v42 = vrot.slane %v236_v39, %v2842_v36  ;;  %v266_v43 = vrot.slane %v259_v40, %v2842_v36  ;;  %v627_v39 = vstv %s2264_s17  ;;  %s2275_s17 = sld [smem:[#allocation10 + $0x55]] }
  0x66   : > { %249 = vst.msk [vmem:[#allocation2] sm:$0x3] %vm2847_vm2, %v243_v42  ;;  %268 = vst.msk [vmem:[#allocation3] sm:$0x3] %vm2847_vm2, %v266_v43 }
  0x6d   : > { %v330_v44 = vld [vmem:[#allocation2] sm:$0x3]  ;;  %v335_v45 = vld [vmem:[#allocation3] sm:$0x3] }
  0x6e   : > { %v331_v46 = vmul.f32 0.25, %v330_v44  ;;  %336 = vst.msk [vmem:[#allocation5 + $0x1] sm:$0x3] %vm2847_vm2, %v335_v45  ;;  %v629_v44 = vstv %s2265_s24  ;;  %s2276_s24 = sld [smem:[#allocation10 + $0x2b]] }
  0x70   : > { %334 = vst.msk [vmem:[#allocation4 + $0x1] sm:$0x3] %vm2847_vm2, %v331_v46 }
  0x75   : > { %v2861_v49 = vld [vmem:[#allocation5] sm:$0x7] }
  0x76   : > { %v377_v52 = vmul.f32 %v376_v47, %v2861_v49  ;;  %v412_v53 = vmul.f32 %v411_v48, %v2861_v49  ;;  %v447_v3 = vmul.f32 %v446_v62, %v2861_v49  ;;  %v482_v10 = vmul.f32 %v481_v8, %v2861_v49  ;;  %v2887_v17 = vld [vmem:[#allocation5 + $0x1] sm:$0x7] }
  0x77   : > { %v2865_v54 = vld [vmem:[#allocation4] sm:$0x7]  ;;  %v519_v21 = vmul.f32 %v518_v18, %v2887_v17  ;;  %v554_v28 = vmul.f32 %v553_v26, %v2887_v17  ;;  %v589_v38 = vmul.f32 %v588_v35, %v2887_v17  ;;  %v630_v46 = vmul.f32 %v629_v44, %v2861_v49  ;;  %v3191_v36 = vld [vmem:[#allocation5] sm:$0x7] }
  0x78   : > { %v375_v55 = vmul.f32 %v374_v50, %v2865_v54  ;;  %v410_v58 = vmul.f32 %v409_v51, %v2865_v54  ;;  %v445_v7 = vmul.f32 %v444_v63, %v2865_v54  ;;  %v480_v9 = vmul.f32 %v479_v4, %v2865_v54  ;;  %v2889_v19 = vld [vmem:[#allocation4 + $0x1] sm:$0x7]  ;;  %3873 = vst [vmem:[#allocation20_spill] sm:$0xff] %v3191_v36 }
  0x79   : > { %v517_v25 = vmul.f32 %v516_v20, %v2889_v19  ;;  %v552_v27 = vmul.f32 %v551_v22, %v2889_v19  ;;  %v587_v43 = vmul.f32 %v586_v37, %v2889_v19  ;;  %v628_v45 = vmul.f32 %v627_v39, %v2865_v54 }
  0x7a   : > { %v378_v59 = vadd.f32 %v377_v52, %v375_v55  ;;  %v413_v61 = vadd.f32 %v412_v53, %v410_v58  ;;  %v448_v13 = vadd.f32 %v447_v3, %v445_v7  ;;  %v483_v16 = vadd.f32 %v482_v10, %v480_v9 }
  0x7b   : > { %v520_v31 = vadd.f32 %v519_v21, %v517_v25  ;;  %v555_v34 = vadd.f32 %v554_v28, %v552_v27  ;;  %v590_v50 = vadd.f32 %v589_v38, %v587_v43  ;;  %v631_v51 = vadd.f32 %v630_v46, %v628_v45 }
  0x7c   : > { %v391_v0 = vrot.slane %v378_v59, %v2870_v57  ;;  %v383_v2 = vrot.slane %v378_v59, %v2868_v56  ;;  %v418_v5 = vrot.slane %v413_v61, %v2868_v56  ;;  %v387_v6 = vrot.slane %v378_v59, %v2873_v60 }
  0x7d   : > { %v426_v11 = vrot.slane %v413_v61, %v2870_v57  ;;  %v422_v12 = vrot.slane %v413_v61, %v2873_v60  ;;  %v457_v14 = vrot.slane %v448_v13, %v2873_v60  ;;  %v453_v15 = vrot.slane %v448_v13, %v2868_v56 }
  0x7e   : > { %396 = vrot.lane.b32.xlu1 %v391_v0, %s2630_s30  ;;  %392 = vrot.lane.b32.xlu0 %v383_v2, %s2630_s30  ;;  %v488_v23 = vrot.slane %v483_v16, %v2868_v56  ;;  %v461_v24 = vrot.slane %v448_v13, %v2870_v57  ;;  %v496_v29 = vrot.slane %v483_v16, %v2870_v57  ;;  %v662_v55 = vstv %s2266_s18  ;;  %s2278_s18 = sld [smem:[#allocation10 + $0x2]] }
  0x7f   : > { %v492_v30 = vrot.slane %v483_v16, %v2873_v60  ;;  %v529_v32 = vrot.slane %v520_v31, %v2873_v60  ;;  %v525_v33 = vrot.slane %v520_v31, %v2868_v56  ;;  %v560_v40 = vrot.slane %v555_v34, %v2868_v56 }
  0x80   : > { %v533_v42 = vrot.slane %v520_v31, %v2870_v57  ;;  %v568_v47 = vrot.slane %v555_v34, %v2870_v57  ;;  %v564_v48 = vrot.slane %v555_v34, %v2873_v60  ;;  %v599_v52 = vrot.slane %v590_v50, %v2873_v60 }
  0x81   : > { %v595_v53 = vrot.slane %v590_v50, %v2868_v56  ;;  %v664_v58 = vstv %s2267_s22  ;;  %v636_v59 = vrot.slane %v631_v51, %v2868_v56  ;;  %v603_v61 = vrot.slane %v590_v50, %v2870_v57  ;;  %s2640_s22 = smov 2  }
  0x82   : > { %427 = vrot.lane.b32.xlu1 %v418_v5, %s2631_s8  ;;  %394 = vrot.lane.b32.xlu0 %v387_v6, %s2630_s30  ;;  %s2269_s30 = sld [smem:[#allocation10 + $0x40]]  ;;  %v663_v62 = vmul.f32 %v662_v55, %v2865_v54  ;;  %v665_v63 = vmul.f32 %v664_v58, %v2861_v49  ;;  %v697_v0 = vstv %s2268_s29  ;;  %v644_v3 = vrot.slane %v631_v51, %v2870_v57  ;;  %s2641_s29 = smov 114  }
  0x83   : > { %v640_v4 = vrot.slane %v631_v51, %v2873_v60  ;;  %v698_v6 = vmul.f32 %v697_v0, %v2865_v54  ;;  %v802_v26 = vstv %s2274_s27  ;;  %v837_v35 = vstv %s2276_s24  ;;  %s2285_s27 = sld [smem:[#allocation10 + $0x48]]  ;;  %s2645_s24 = smov 33  }
  0x84   : > { %v666_v5 = vadd.f32 %v665_v63, %v663_v62  ;;  %v803_v31 = vmul.f32 %v802_v26, %v2889_v19  ;;  %v838_v39 = vmul.f32 %v837_v35, %v2889_v19  ;;  %v878_v44 = vstv %s2278_s18  ;;  %s2289_s18 = sld [smem:[#allocation10 + $0x56]] }
  0x85   : > { %v879_v50 = vmul.f32 %v878_v44, %v2865_v54 }
  0x86   : > { %431 = vrot.lane.b32.xlu1 %v426_v11, %s2631_s8  ;;  %429 = vrot.lane.b32.xlu0 %v422_v12, %s2631_s8  ;;  %s2272_s8 = sld [smem:[#allocation10 + $0x1d]]  ;;  %v675_v8 = vrot.slane %v666_v5, %v2873_v60  ;;  %v671_v9 = vrot.slane %v666_v5, %v2868_v56  ;;  %v732_v11 = vstv %s2270_s4  ;;  %v734_v12 = vstv %s2271_s7  ;;  %s2282_s4 = sld [smem:[#allocation10 + $0x10]] }
  0x87   : > { %v733_v13 = vmul.f32 %v732_v11, %v2865_v54  ;;  %v679_v16 = vrot.slane %v666_v5, %v2870_v57  ;;  %v735_v18 = vmul.f32 %v734_v12, %v2861_v49  ;;  %s2642_s7 = smov 98  }
  0x88   : > { %v699_v2 = vstv %s2269_s30  ;;  %s2280_s30 = sld [smem:[#allocation10 + $0x9]] }
  0x89   : > { %v700_v7 = vmul.f32 %v699_v2, %v2861_v49  ;;  %v736_v25 = vadd.f32 %v735_v18, %v733_v13  ;;  %v985_v12 = vstv %s2285_s27  ;;  %s2296_s27 = sld [smem:[#allocation10 + $0x11]] }
  0x8a   : > { %464 = vrot.lane.b32.xlu1 %v457_v14, %s2632_s25  ;;  %462 = vrot.lane.b32.xlu0 %v453_v15, %s2632_s25  ;;  %v986_v18 = vmul.f32 %v985_v12, %v2861_v49 }
  0x8b   : > { %v701_v10 = vadd.f32 %v700_v7, %v698_v6  ;;  %v745_v27 = vrot.slane %v736_v25, %v2873_v60  ;;  %v741_v28 = vrot.slane %v736_v25, %v2868_v56  ;;  %v749_v34 = vrot.slane %v736_v25, %v2870_v57 }
  0x8c   : > { %v767_v14 = vstv %s2272_s8  ;;  %s2283_s8 = sld [smem:[#allocation10 + $0x41]]  ;;  %v948_v2 = vstv %s2282_s4  ;;  %s2293_s4 = sld [smem:[#allocation10 + $0x34]] }
  0x8d   : > { %v706_v15 = vrot.slane %v701_v10, %v2868_v56  ;;  %v768_v21 = vmul.f32 %v767_v14, %v2889_v19  ;;  %v949_v7 = vmul.f32 %v948_v2, %v2865_v54 }
  0x8e   : > { %497 = vrot.lane.b32.xlu1 %v488_v23, %s2633_s19  ;;  %466 = vrot.lane.b32.xlu0 %v461_v24, %s2632_s25  ;;  %s2273_s25 = sld [smem:[#allocation10 + $0x4e]]  ;;  %v714_v23 = vrot.slane %v701_v10, %v2870_v57  ;;  %v710_v24 = vrot.slane %v701_v10, %v2873_v60  ;;  %v913_v55 = vstv %s2280_s30  ;;  %s2292_s30 = sld [smem:[#allocation10 + $0x3]] }
  0x92   : > { %501 = vrot.lane.b32.xlu1 %v496_v29, %s2633_s19  ;;  %499 = vrot.lane.b32.xlu0 %v492_v30, %s2633_s19  ;;  %s2639_s19 = smov 18   ;;  %v804_v30 = vstv %s2275_s17  ;;  %v950_v6 = vstv %s2283_s8  ;;  %s2644_s17 = smov 49  }
  0x93   : > { %s2294_s8 = sld [smem:[#allocation10 + $0xa]] }
  0x94   : > { %v769_v20 = vstv %s2273_s25  ;;  %s2284_s25 = sld [smem:[#allocation10 + $0x17]]  ;;  %v1123_v44 = vstv %s2292_s30  ;;  %s2305_s30 = sld [smem:[#allocation10 + $0x5e]] }
  0x95   : > { %v770_v22 = vmul.f32 %v769_v20, %v2887_v17 }
  0x96   : > { %536 = vrot.lane.b32.xlu1 %v529_v32, %s2634_s16  ;;  %534 = vrot.lane.b32.xlu0 %v525_v33, %s2634_s16  ;;  %v805_v32 = vmul.f32 %v804_v30, %v2887_v17  ;;  %v1055_v30 = vstv %s2289_s18  ;;  %s2302_s18 = sld [smem:[#allocation10 + $0x26]] }
  0x97   : > { %v771_v29 = vadd.f32 %v770_v22, %v768_v21  ;;  %v1056_v35 = vmul.f32 %v1055_v30, %v2887_v17 }
  0x98   : > { %v806_v38 = vadd.f32 %v805_v32, %v803_v31 }
  0x99   : > { %v776_v33 = vrot.slane %v771_v29, %v2868_v56 }
  0x9a   : > { %569 = vrot.lane.b32.xlu1 %v560_v40, %s2635_s23  ;;  %538 = vrot.lane.b32.xlu0 %v533_v42, %s2634_s16  ;;  %s2277_s16 = sld [smem:[#allocation10 + $0x5c]]  ;;  %v784_v40 = vrot.slane %v771_v29, %v2870_v57  ;;  %v780_v42 = vrot.slane %v771_v29, %v2873_v60  ;;  %v815_v45 = vrot.slane %v806_v38, %v2873_v60  ;;  %v983_v11 = vstv %s2284_s25  ;;  %s2649_s25 = smov 97  }
  0x9b   : > { %v811_v46 = vrot.slane %v806_v38, %v2868_v56  ;;  %v984_v14 = vmul.f32 %v983_v11, %v2865_v54 }
  0x9e   : > { %573 = vrot.lane.b32.xlu1 %v568_v47, %s2635_s23  ;;  %571 = vrot.lane.b32.xlu0 %v564_v48, %s2635_s23  ;;  %s2279_s23 = sld [smem:[#allocation10 + $0x33]] }
  0xa0   : > { %v839_v37 = vstv %s2277_s16  ;;  %s2288_s16 = sld [smem:[#allocation10 + $0x25]] }
  0xa1   : > { %v840_v43 = vmul.f32 %v839_v37, %v2887_v17 }
  0xa2   : > { %606 = vrot.lane.b32.xlu1 %v599_v52, %s2636_s6  ;;  %604 = vrot.lane.b32.xlu0 %v595_v53, %s2636_s6  ;;  %v819_v53 = vrot.slane %v806_v38, %v2870_v57 }
  0xa3   : > { %v841_v47 = vadd.f32 %v840_v43, %v838_v39 }
  0xa4   : > { %v880_v48 = vstv %s2279_s23  ;;  %s2290_s23 = sld [smem:[#allocation10 + $0x2c]] }
  0xa5   : > { %v881_v51 = vmul.f32 %v880_v48, %v2861_v49  ;;  %v846_v52 = vrot.slane %v841_v47, %v2868_v56  ;;  %v854_v62 = vrot.slane %v841_v47, %v2870_v57  ;;  %v850_v63 = vrot.slane %v841_v47, %v2873_v60 }
  0xa6   : > { %645 = vrot.lane.b32.xlu1 %v636_v59, %s2637_s15  ;;  %608 = vrot.lane.b32.xlu0 %v603_v61, %s2636_s6  ;;  %s2281_s6 = sld [smem:[#allocation10 + $0x3a]]  ;;  %v914_v61 = vmul.f32 %v913_v55, %v2865_v54  ;;  %v1053_v29 = vstv %s2288_s16  ;;  %v1125_v48 = vstv %s2293_s4  ;;  %s2651_s16 = smov 48  }
  0xa7   : > { %v882_v59 = vadd.f32 %v881_v51, %v879_v50  ;;  %v1054_v32 = vmul.f32 %v1053_v29, %v2889_v19  ;;  %v1124_v50 = vmul.f32 %v1123_v44, %v2865_v54  ;;  %v1126_v51 = vmul.f32 %v1125_v48, %v2861_v49  ;;  %s3032_s4 = sld [smem:[#allocation10 + $0x4]] }
  0xa9   : > { %v895_v10 = vrot.slane %v882_v59, %v2870_v57  ;;  %v1057_v39 = vadd.f32 %v1056_v35, %v1054_v32 }
  0xaa   : > { %649 = vrot.lane.b32.xlu1 %v644_v3, %s2637_s15  ;;  %647 = vrot.lane.b32.xlu0 %v640_v4, %s2637_s15  ;;  %s2643_s15 = smov 82   ;;  %v891_v3 = vrot.slane %v882_v59, %v2873_v60  ;;  %v887_v4 = vrot.slane %v882_v59, %v2868_v56 }
  0xac   : > { %v915_v58 = vstv %s2281_s6  ;;  %s2647_s6 = smov 1  }
  0xad   : > { %v916_v0 = vmul.f32 %v915_v58, %v2861_v49 }
  0xae   : > { %682 = vrot.lane.b32.xlu1 %v675_v8, %s2638_s28  ;;  %680 = vrot.lane.b32.xlu0 %v671_v9, %s2638_s28  ;;  %v951_v8 = vmul.f32 %v950_v6, %v2861_v49 }
  0xaf   : > { %v917_v5 = vadd.f32 %v916_v0, %v914_v61  ;;  %v1156_v0 = vstv %s2294_s8  ;;  %s2654_s8 = smov 112  }
  0xb0   : > { %v952_v13 = vadd.f32 %v951_v8, %v949_v7 }
  0xb1   : > { %v922_v9 = vrot.slane %v917_v5, %v2868_v56 }
  0xb2   : > { %715 = vrot.lane.b32.xlu1 %v706_v15, %s2639_s19  ;;  %684 = vrot.lane.b32.xlu0 %v679_v16, %s2638_s28  ;;  %s2286_s28 = sld [smem:[#allocation10 + $0x1e]]  ;;  %v930_v15 = vrot.slane %v917_v5, %v2870_v57  ;;  %v926_v16 = vrot.slane %v917_v5, %v2873_v60  ;;  %v961_v21 = vrot.slane %v952_v13, %v2873_v60 }
  0xb3   : > { %v957_v22 = vrot.slane %v952_v13, %v2868_v56  ;;  %v1157_v5 = vmul.f32 %v1156_v0, %v2865_v54  ;;  %v1349_v0 = vstv %s3032_s4  ;;  %s2659_s4 = smov 15  }
  0xb6   : > { %719 = vrot.lane.b32.xlu1 %v714_v23, %s2639_s19  ;;  %717 = vrot.lane.b32.xlu0 %v710_v24, %s2639_s19  ;;  %s2287_s19 = sld [smem:[#allocation10 + $0x4f]]  ;;  %v987_v23 = vadd.f32 %v986_v18, %v984_v14 }
  0xb8   : > { %v1018_v20 = vstv %s2286_s28  ;;  %s2979_s28 = sld [smem:[#allocation10 + $0x42]] }
  0xb9   : > { %v1019_v25 = vmul.f32 %v1018_v20, %v2889_v19 }
  0xba   : > { %752 = vrot.lane.b32.xlu1 %v745_v27, %s2640_s22  ;;  %750 = vrot.lane.b32.xlu0 %v741_v28, %s2640_s22  ;;  %v992_v27 = vrot.slane %v987_v23, %v2868_v56  ;;  %v965_v28 = vrot.slane %v952_v13, %v2870_v57 }
  0xbc   : > { %v1020_v24 = vstv %s2287_s19  ;;  %s2650_s19 = smov 81  }
  0xbd   : > { %v1021_v26 = vmul.f32 %v1020_v24, %v2887_v17 }
  0xbe   : > { %785 = vrot.lane.b32.xlu1 %v776_v33, %s2641_s29  ;;  %754 = vrot.lane.b32.xlu0 %v749_v34, %s2640_s22  ;;  %s2646_s22 = smov 17   ;;  %v1000_v33 = vrot.slane %v987_v23, %v2870_v57  ;;  %v996_v34 = vrot.slane %v987_v23, %v2873_v60 }
  0xbf   : > { %v1022_v31 = vadd.f32 %v1021_v26, %v1019_v25 }
  0xc1   : > { %v1031_v37 = vrot.slane %v1022_v31, %v2873_v60  ;;  %v1027_v38 = vrot.slane %v1022_v31, %v2868_v56 }
  0xc2   : > { %789 = vrot.lane.b32.xlu1 %v784_v40, %s2641_s29  ;;  %787 = vrot.lane.b32.xlu0 %v780_v42, %s2641_s29  ;;  %s2291_s29 = sld [smem:[#allocation10 + $0x5d]]  ;;  %v1088_v40 = vstv %s2290_s23  ;;  %s2652_s23 = smov 32  }
  0xc3   : > { %v1089_v43 = vmul.f32 %v1088_v40, %v2889_v19 }
  0xc6   : > { %822 = vrot.lane.b32.xlu1 %v815_v45, %s2642_s7  ;;  %820 = vrot.lane.b32.xlu0 %v811_v46, %s2642_s7  ;;  %v1062_v45 = vrot.slane %v1057_v39, %v2868_v56  ;;  %v1035_v46 = vrot.slane %v1022_v31, %v2870_v57 }
  0xc8   : > { %v1090_v42 = vstv %s2291_s29  ;;  %s2304_s29 = sld [smem:[#allocation10 + $0x2d]] }
  0xc9   : > { %v1091_v47 = vmul.f32 %v1090_v42, %v2887_v17 }
  0xca   : > { %855 = vrot.lane.b32.xlu1 %v846_v52, %s2643_s15  ;;  %824 = vrot.lane.b32.xlu0 %v819_v53, %s2642_s7  ;;  %s2648_s7 = smov 113   ;;  %v1070_v52 = vrot.slane %v1057_v39, %v2870_v57  ;;  %v1066_v53 = vrot.slane %v1057_v39, %v2873_v60 }
  0xcb   : > { %v1092_v55 = vadd.f32 %v1091_v47, %v1089_v43 }
  0xcd   : > { %v1101_v61 = vrot.slane %v1092_v55, %v2873_v60  ;;  %v1105_v7 = vrot.slane %v1092_v55, %v2870_v57 }
  0xce   : > { %859 = vrot.lane.b32.xlu1 %v854_v62, %s2643_s15  ;;  %857 = vrot.lane.b32.xlu0 %v850_v63, %s2643_s15  ;;  %s2295_s15 = sld [smem:[#allocation10 + $0x3b]]  ;;  %v1097_v62 = vrot.slane %v1092_v55, %v2868_v56  ;;  %v1127_v63 = vadd.f32 %v1126_v51, %v1124_v50  ;;  %v1310_v50 = vstv %s2304_s29  ;;  %v1312_v51 = vstv %s2305_s30  ;;  %s2658_s29 = smov 31  }
  0xcf   : > { %s3109_s30 = sld [smem:[#allocation10 + $0x27]] }
  0xd0   : > { %v1132_v6 = vrot.slane %v1127_v63, %v2868_v56  ;;  %v1140_v13 = vrot.slane %v1127_v63, %v2870_v57 }
  0xd2   : > { %898 = vrot.lane.b32.xlu1 %v891_v3, %s2644_s17  ;;  %896 = vrot.lane.b32.xlu0 %v887_v4, %s2644_s17 }
  0xd4   : > { %v1158_v2 = vstv %s2295_s15  ;;  %s3052_s15 = sld [smem:[#allocation10 + $0xb]] }
  0xd5   : > { %v1159_v8 = vmul.f32 %v1158_v2, %v2861_v49 }
  0xd6   : > { %931 = vrot.lane.b32.xlu1 %v922_v9, %s2645_s24  ;;  %900 = vrot.lane.b32.xlu0 %v895_v10, %s2644_s17  ;;  %s2992_s17 = sld [smem:[#allocation10 + $0x1f]]  ;;  %v1189_v9 = vstv %s2296_s27  ;;  %v1191_v10 = vstv %s2979_s28  ;;  %s3062_s27 = sld [smem:[#allocation10 + $0x12]] }
  0xd7   : > { %v1190_v14 = vmul.f32 %v1189_v9, %v2865_v54  ;;  %v1192_v18 = vmul.f32 %v1191_v10, %v2861_v49  ;;  %s2655_s28 = smov 96   ;;  %v1350_v10 = vmul.f32 %v1349_v0, %v2865_v54 }
  0xd9   : > { %v1193_v25 = vadd.f32 %v1192_v18, %v1190_v14 }
  0xda   : > { %935 = vrot.lane.b32.xlu1 %v930_v15, %s2645_s24  ;;  %933 = vrot.lane.b32.xlu0 %v926_v16, %s2645_s24  ;;  %s2301_s24 = sld [smem:[#allocation10 + $0x50]]  ;;  %v1136_v15 = vrot.slane %v1127_v63, %v2873_v60  ;;  %v1160_v16 = vadd.f32 %v1159_v8, %v1157_v5  ;;  %v1313_v63 = vmul.f32 %v1312_v51, %v2887_v17 }
  0xdb   : > { %v1198_v31 = vrot.slane %v1193_v25, %v2868_v56  ;;  %v1206_v40 = vrot.slane %v1193_v25, %v2870_v57  ;;  %v1202_v42 = vrot.slane %v1193_v25, %v2873_v60 }
  0xdc   : > { %v1169_v23 = vrot.slane %v1160_v16, %v2873_v60  ;;  %v1165_v24 = vrot.slane %v1160_v16, %v2868_v56  ;;  %v1173_v32 = vrot.slane %v1160_v16, %v2870_v57 }
  0xde   : > { %968 = vrot.lane.b32.xlu1 %v961_v21, %s2646_s22  ;;  %966 = vrot.lane.b32.xlu0 %v957_v22, %s2646_s22  ;;  %v1244_v22 = vstv %s2992_s17  ;;  %s2311_s17 = sld [smem:[#allocation10 + $0x43]] }
  0xdf   : > { %v1245_v29 = vmul.f32 %v1244_v22, %v2889_v19 }
  0xe0   : > { %v1246_v26 = vstv %s2301_s24  ;;  %s2312_s24 = sld [smem:[#allocation10 + $0x19]] }
  0xe1   : > { %v1247_v30 = vmul.f32 %v1246_v26, %v2887_v17 }
  0xe2   : > { %1001 = vrot.lane.b32.xlu1 %v992_v27, %s2647_s6  ;;  %970 = vrot.lane.b32.xlu0 %v965_v28, %s2646_s22  ;;  %s3006_s22 = sld [smem:[#allocation10 + $0x57]] }
  0xe6   : > { %1005 = vrot.lane.b32.xlu1 %v1000_v33, %s2647_s6  ;;  %1003 = vrot.lane.b32.xlu0 %v996_v34, %s2647_s6  ;;  %v1277_v33 = vstv %s2302_s18  ;;  %s2653_s6 = smov 16   ;;  %s2657_s18 = smov 47  }
  0xe7   : > { %v1278_v39 = vmul.f32 %v1277_v33, %v2889_v19 }
  0xe8   : > { %v1279_v34 = vstv %s3006_s22  ;;  %s3091_s22 = sld [smem:[#allocation10 + $0x20]] }
  0xe9   : > { %v1280_v43 = vmul.f32 %v1279_v34, %v2887_v17  ;;  %v1421_v34 = vstv %s2311_s17  ;;  %s3144_s17 = sld [smem:[#allocation10 + $0x13]] }
  0xea   : > { %1038 = vrot.lane.b32.xlu1 %v1031_v37, %s2648_s7  ;;  %1036 = vrot.lane.b32.xlu0 %v1027_v38, %s2648_s7  ;;  %v1248_v38 = vadd.f32 %v1247_v30, %v1245_v29  ;;  %v1419_v30 = vstv %s3062_s27  ;;  %s3139_s27 = sld [smem:[#allocation10 + $0xc]] }
  0xeb   : > { %v1281_v48 = vadd.f32 %v1280_v43, %v1278_v39 }
  0xec   : > { %v1253_v47 = vrot.slane %v1248_v38, %v2868_v56  ;;  %v1261_v55 = vrot.slane %v1248_v38, %v2870_v57 }
  0xed   : > { %v1290_v8 = vrot.slane %v1281_v48, %v2873_v60 }
  0xee   : > { %1071 = vrot.lane.b32.xlu1 %v1062_v45, %s2649_s25  ;;  %1040 = vrot.lane.b32.xlu0 %v1035_v46, %s2648_s7  ;;  %s3034_s7 = sld [smem:[#allocation10 + $0x35]]  ;;  %v1257_v46 = vrot.slane %v1248_v38, %v2873_v60 }
  0xf0   : > { %v2981_v58 = vpop.permute.xlu1 %396  ;;  %v2983_v59 = vpop.permute.xlu0 %392 }
  0xf2   : > { %1075 = vrot.lane.b32.xlu1 %v1070_v52, %s2649_s25  ;;  %1073 = vrot.lane.b32.xlu0 %v1066_v53, %s2649_s25  ;;  %s3054_s25 = sld [smem:[#allocation10 + $0x3c]] }
  0xf4   : > { %v2987_v3 = vpop.permute.xlu1 %427  ;;  %v2989_v4 = vpop.permute.xlu0 %394  ;;  %v1351_v2 = vstv %s3034_s7  ;;  %s3123_s7 = sld [smem:[#allocation10 + $0x2e]] }
  0xf6   : > { %1108 = vrot.lane.b32.xlu1 %v1101_v61, %s2650_s19  ;;  %1106 = vrot.lane.b32.xlu0 %v1097_v62, %s2650_s19  ;;  %v1286_v61 = vrot.slane %v1281_v48, %v2868_v56  ;;  %v1311_v62 = vmul.f32 %v1310_v50, %v2889_v19 }
  0xf8   : > { %v2998_v11 = vpop.permute.xlu1 %431  ;;  %v3000_v12 = vpop.permute.xlu0 %429  ;;  %v1314_v9 = vadd.f32 %v1313_v63, %v1311_v62 }
  0xfa   : > { %1141 = vrot.lane.b32.xlu1 %v1132_v6, %s2651_s16  ;;  %1110 = vrot.lane.b32.xlu0 %v1105_v7, %s2650_s19  ;;  %v1294_v7 = vrot.slane %v1281_v48, %v2870_v57  ;;  %v1323_v16 = vrot.slane %v1314_v9, %v2873_v60  ;;  %v1319_v18 = vrot.slane %v1314_v9, %v2868_v56  ;;  %s2656_s19 = smov 80  }
  0xfb   : > { %v1327_v29 = vrot.slane %v1314_v9, %v2870_v57 }
  0xfc   : > { %v3008_v20 = vpop.permute.xlu1 %464  ;;  %v3010_v21 = vpop.permute.xlu0 %462 }
  0xfe   : > { %1145 = vrot.lane.b32.xlu1 %v1140_v13, %s2651_s16  ;;  %1143 = vrot.lane.b32.xlu0 %v1136_v15, %s2651_s16  ;;  %v1352_v13 = vmul.f32 %v1351_v2, %v2861_v49  ;;  %s2313_s16 = sld [smem:[#allocation10 + $0x4a]] }
 0x100   : > { %v3015_v27 = vpop.permute.xlu1 %497  ;;  %v3017_v28 = vpop.permute.xlu0 %466  ;;  %v1353_v22 = vadd.f32 %v1352_v13, %v1350_v10  ;;  %v1489_v10 = vstv %s3091_s22  ;;  %s3172_s22 = sld [smem:[#allocation10 + $0x21]] }
 0x101   : > { %3870 = vst [vmem:[#allocation17_spill] sm:$0xff] %v3017_v28 }
 0x102   : > { %1176 = vrot.lane.b32.xlu1 %v1169_v23, %s2652_s23  ;;  %1174 = vrot.lane.b32.xlu0 %v1165_v24, %s2652_s23  ;;  %v1384_v23 = vstv %s3052_s15  ;;  %v1386_v24 = vstv %s3054_s25  ;;  %v1366_v43 = vrot.slane %v1353_v22, %v2870_v57  ;;  %s3132_s15 = sld [smem:[#allocation10 + $0x5]]  ;;  %s3134_s25 = sld [smem:[#allocation10 + $0x36]] }
 0x103   : > { %v1387_v33 = vmul.f32 %v1386_v24, %v2861_v49 }
 0x104   : > { %v3024_v35 = vpop.permute.xlu1 %501  ;;  %v3026_v37 = vpop.permute.xlu0 %499  ;;  %v1456_v62 = vstv %s2313_s16  ;;  %s3154_s16 = sld [smem:[#allocation10 + $0x4b]] }
 0x106   : > { %1207 = vrot.lane.b32.xlu1 %v1198_v31, %s2653_s6  ;;  %1178 = vrot.lane.b32.xlu0 %v1173_v32, %s2652_s23  ;;  %v1358_v31 = vrot.slane %v1353_v22, %v2868_v56  ;;  %v1385_v32 = vmul.f32 %v1384_v23, %v2865_v54  ;;  %s3093_s23 = sld [smem:[#allocation10 + $0x51]] }
 0x108   : > { %v3036_v44 = vpop.permute.xlu1 %536  ;;  %v3038_v45 = vpop.permute.xlu0 %534 }
 0x10a   : > { %1211 = vrot.lane.b32.xlu1 %v1206_v40, %s2653_s6  ;;  %1209 = vrot.lane.b32.xlu0 %v1202_v42, %s2653_s6  ;;  %v1420_v40 = vmul.f32 %v1419_v30, %v2865_v54  ;;  %v1422_v42 = vmul.f32 %v1421_v34, %v2861_v49  ;;  %s3111_s6 = sld [smem:[#allocation10 + $0x58]] }
 0x10c   : > { %v3042_v52 = vpop.permute.xlu1 %569  ;;  %v3044_v53 = vpop.permute.xlu0 %538  ;;  %v1423_v51 = vadd.f32 %v1422_v42, %v1420_v40  ;;  %v1491_v13 = vstv %s3093_s23  ;;  %v1524_v42 = vstv %s3109_s30  ;;  %s3174_s23 = sld [smem:[#allocation10 + $0x52]]  ;;  %s3204_s30 = sld [smem:[#allocation10 + $0x28]] }
 0x10d   : > { %v1492_v30 = vmul.f32 %v1491_v13, %v2887_v17 }
 0x10e   : > { %1264 = vrot.lane.b32.xlu1 %v1257_v46, %s2654_s8  ;;  %1262 = vrot.lane.b32.xlu0 %v1253_v47, %s2654_s8  ;;  %v1362_v46 = vrot.slane %v1353_v22, %v2873_v60  ;;  %v1388_v47 = vadd.f32 %v1387_v33, %v1385_v32  ;;  %v1436_v22 = vrot.slane %v1423_v51, %v2870_v57 }
 0x10f   : > { %v1432_v24 = vrot.slane %v1423_v51, %v2873_v60 }
 0x110   : > { %v3056_v5 = vpop.permute.xlu1 %573  ;;  %v3058_v6 = vpop.permute.xlu0 %571  ;;  %v1397_v49 = vrot.slane %v1388_v47, %v2873_v60  ;;  %v1401_v9 = vrot.slane %v1388_v47, %v2870_v57 }
 0x112   : > { %1295 = vrot.lane.b32.xlu1 %v1286_v61, %s2655_s28  ;;  %1266 = vrot.lane.b32.xlu0 %v1261_v55, %s2654_s8  ;;  %v1393_v55 = vrot.slane %v1388_v47, %v2868_v56  ;;  %v1454_v61 = vstv %s2312_s24  ;;  %s3125_s8 = sld [smem:[#allocation10 + $0x5f]]  ;;  %s3152_s24 = sld [smem:[#allocation10 + $0x1a]] }
 0x113   : > { %v1455_v2 = vmul.f32 %v1454_v61, %v2889_v19 }
 0x114   : > { %v3066_v14 = vpop.permute.xlu1 %606  ;;  %v3068_v15 = vpop.permute.xlu0 %604 }
 0x116   : > { %1299 = vrot.lane.b32.xlu1 %v1294_v7, %s2655_s28  ;;  %1297 = vrot.lane.b32.xlu0 %v1290_v8, %s2655_s28  ;;  %v1457_v7 = vmul.f32 %v1456_v62, %v2887_v17  ;;  %v1428_v8 = vrot.slane %v1423_v51, %v2868_v56  ;;  %s3141_s28 = sld [smem:[#allocation10 + $0x3d]] }
 0x118   : > { %v3074_v25 = vpop.permute.xlu1 %645  ;;  %v3076_v26 = vpop.permute.xlu0 %608  ;;  %v1458_v23 = vadd.f32 %v1457_v7, %v1455_v2  ;;  %v1559_v2 = vstv %s3123_s7  ;;  %v1561_v7 = vstv %s3125_s8  ;;  %s2663_s7 = smov 79   ;;  %s2664_s8 = smov 46  }
 0x119   : > { %3871 = vst [vmem:[#allocation18_spill] sm:$0xff] %v3076_v26 }
 0x11a   : > { %1330 = vrot.lane.b32.xlu1 %v1323_v16, %s2656_s19  ;;  %1328 = vrot.lane.b32.xlu0 %v1319_v18, %s2656_s19  ;;  %v1467_v33 = vrot.slane %v1458_v23, %v2873_v60  ;;  %v1463_v34 = vrot.slane %v1458_v23, %v2868_v56  ;;  %v1471_v61 = vrot.slane %v1458_v23, %v2870_v57 }
 0x11b   : > { %v1560_v23 = vmul.f32 %v1559_v2, %v2889_v19  ;;  %v1705_v2 = vstv %s3152_s24  ;;  %s3505_s24 = sld [smem:[#allocation10 + $0x37]] }
 0x11c   : > { %v3083_v38 = vpop.permute.xlu1 %649  ;;  %v3085_v39 = vpop.permute.xlu0 %647 }
 0x11e   : > { %1367 = vrot.lane.b32.xlu1 %v1358_v31, %s2657_s18  ;;  %1332 = vrot.lane.b32.xlu0 %v1327_v29, %s2656_s19  ;;  %v1490_v29 = vmul.f32 %v1489_v10, %v2889_v19  ;;  %s3146_s19 = sld [smem:[#allocation10 + $0x44]] }
 0x120   : > { %v3095_v48 = vpop.permute.xlu1 %682  ;;  %v3097_v50 = vpop.permute.xlu0 %680  ;;  %v1493_v40 = vadd.f32 %v1492_v30, %v1490_v29  ;;  %v1602_v29 = vstv %s3134_s25  ;;  %v1562_v30 = vmul.f32 %v1561_v7, %v2887_v17  ;;  %v1707_v7 = vstv %s3154_s16  ;;  %s3448_s25 = sld [smem:[#allocation10 + $0x2f]]  ;;  %s2668_s16 = smov 110  }
 0x122   : > { %1371 = vrot.lane.b32.xlu1 %v1366_v43, %s2657_s18  ;;  %1369 = vrot.lane.b32.xlu0 %v1362_v46, %s2657_s18  ;;  %v1526_v43 = vstv %s3111_s6  ;;  %v338_v46 = vand.u32 127, %v233_v1  ;;  %s2660_s18 = smov 127   ;;  %v1498_v1 = vrot.slane %v1493_v40, %v2868_v56  ;;  %v1506_v10 = vrot.slane %v1493_v40, %v2870_v57  ;;  %s3210_s6 = sld [smem:[#allocation10 + $0x59]] }
 0x123   : > { %v1502_v13 = vrot.slane %v1493_v40, %v2873_v60 }
 0x124   : > { %v3101_v63 = vpop.permute.xlu1 %715  ;;  %v3103_v0 = vpop.permute.xlu0 %684  ;;  %v339_v62 = vadd.s32 128, %v338_v46  ;;  %v3180_v40 = vand.u32 15, %v338_v46 }
 0x126   : > { %1404 = vrot.lane.b32.xlu1 %v1397_v49, %s2658_s29  ;;  %1402 = vrot.lane.b32.xlu0 %v1393_v55, %s2658_s29  ;;  %v1525_v49 = vmul.f32 %v1524_v42, %v2889_v19  ;;  %v1527_v55 = vmul.f32 %v1526_v43, %v2887_v17  ;;  %v3182_v42 = vand.u32 15, %v339_v62  ;;  %v1670_v43 = vstv %s3144_s17  ;;  %s2667_s17 = smov 126  }
 0x127   : > { %vm364_vm3 = vcmp.ge.s32.totalorder %v3180_v40, 3  ;;  %vm619_vm9 = vcmp.ge.s32.totalorder %v3180_v40, 2  ;;  %vm870_vm1 = vcmp.ge.s32.totalorder %v3180_v40, 1 }
 0x128   : > { %v3115_v16 = vpop.permute.xlu1 %719  ;;  %v3117_v18 = vpop.permute.xlu0 %717  ;;  %vm365_vm8 = vcmp.ge.s32.totalorder %v3182_v42, 3  ;;  %vm620_vm10 = vcmp.ge.s32.totalorder %v3182_v42, 2 }
 0x12a   : > { %1437 = vrot.lane.b32.xlu1 %v1428_v8, %s2659_s4  ;;  %1406 = vrot.lane.b32.xlu0 %v1401_v9, %s2658_s29  ;;  %s2661_s29 = smov 111  }
 0x12c   : > { %v3127_v31 = vpop.permute.xlu1 %752  ;;  %v3129_v32 = vpop.permute.xlu0 %750 }
 0x12e   : > { %1441 = vrot.lane.b32.xlu1 %v1436_v22, %s2659_s4  ;;  %1439 = vrot.lane.b32.xlu0 %v1432_v24, %s2659_s4  ;;  %v3168_v22 = vadd.f32 %v1527_v55, %v1525_v49  ;;  %v1600_v24 = vstv %s3132_s15  ;;  %v1672_v49 = vstv %s3146_s19  ;;  %s2662_s4 = smov 95   ;;  %s2665_s15 = smov 30  }
 0x12f   : > { %s3503_s19 = sld [smem:[#allocation10 + $0x6]] }
 0x130   : > { %v3148_v47 = vpop.permute.xlu1 %785  ;;  %v3150_v51 = vpop.permute.xlu0 %754  ;;  %v1537_v46 = vrot.slane %v3168_v22, %v2873_v60  ;;  %v1533_v62 = vrot.slane %v3168_v22, %v2868_v56 }
 0x131   : > { %3872 = vst [vmem:[#allocation19_spill] sm:$0xff] %v3150_v51  ;;  %v3200_v51 = vld [vmem:[#allocation4] sm:$0x7] }
 0x132   : > { %1474 = vrot.lane.b32.xlu1 %v1467_v33, %s2660_s18  ;;  %1472 = vrot.lane.b32.xlu0 %v1463_v34, %s2660_s18  ;;  %v1635_v33 = vstv %s3139_s27  ;;  %v1637_v34 = vstv %s3141_s28  ;;  %3874 = vst [vmem:[#allocation21_spill] sm:$0xff] %v3200_v51  ;;  %s2666_s27 = smov 14   ;;  %s3465_s28 = sld [smem:[#allocation10 + $0x60]] }
 0x133   : > { %v1636_v28 = vmul.f32 %v3200_v51, %v1635_v33  ;;  %v1638_v26 = vmul.f32 %v3191_v36, %v1637_v34  ;;  %v1706_v33 = vmul.f32 %v1705_v2, %v2889_v19  ;;  %v1708_v34 = vmul.f32 %v1707_v7, %v2887_v17 }
 0x134   : > { %v3162_v8 = vpop.permute.xlu1 %789  ;;  %v3164_v9 = vpop.permute.xlu0 %787  ;;  %v1740_v19 = vstv %s3172_s22  ;;  %v1742_v17 = vstv %s3174_s23  ;;  %s3542_s22 = sld [smem:[#allocation10 + $0x3e]]  ;;  %s2669_s23 = smov 94  }
 0x136   : > { %1507 = vrot.lane.b32.xlu1 %v1498_v1, %s2661_s29  ;;  %1476 = vrot.lane.b32.xlu0 %v1471_v61, %s2660_s18  ;;  %v1601_v1 = vmul.f32 %v1600_v24, %v2865_v54  ;;  %v1603_v61 = vmul.f32 %v3191_v36, %v1602_v29  ;;  %v3206_v54 = vadd.f32 %v1562_v30, %v1560_v23  ;;  %s3540_s18 = sld [smem:[#allocation10 + $0xd]] }
 0x137   : > { %v1671_v24 = vmul.f32 %v3200_v51, %v1670_v43  ;;  %v1673_v29 = vmul.f32 %v3191_v36, %v1672_v49  ;;  %v3224_v30 = vadd.f32 %v1638_v26, %v1636_v28  ;;  %v1541_v49 = vrot.slane %v3168_v22, %v2870_v57 }
 0x138   : > { %v3186_v55 = vpop.permute.xlu1 %822  ;;  %v3188_v41 = vpop.permute.xlu0 %820  ;;  %v3219_v23 = vadd.f32 %v1603_v61, %v1601_v1  ;;  %v1568_v43 = vrot.slane %v3206_v54, %v2868_v56  ;;  %v1576_v61 = vrot.slane %v3206_v54, %v2870_v57  ;;  %v1572_v28 = vrot.slane %v3206_v54, %v2873_v60 }
 0x139   : > { %v3232_v1 = vadd.f32 %v1673_v29, %v1671_v24  ;;  %v3238_v26 = vadd.f32 %v1708_v34, %v1706_v33  ;;  %v3251_v29 = vld [vmem:[#allocation5 + $0x1] sm:$0x7]  ;;  %v1777_v36 = vstv %s3210_s6  ;;  %v399_v22 = vsel %vm398_vm4, %v2983_v59, %v2989_v4  ;;  %s2670_s6 = smov 78  }
 0x13a   : > { %1511 = vrot.lane.b32.xlu1 %v1506_v10, %s2661_s29  ;;  %1509 = vrot.lane.b32.xlu0 %v1502_v13, %s2661_s29  ;;  %v1743_v54 = vmul.f32 %v3251_v29, %v1742_v17  ;;  %v541_v17 = vsel %vm540_vm7, %v3038_v45, %v3036_v44  ;;  %v652_v45 = vsel %vm651_vm11, %v3074_v25, %v3085_v39  ;;  %s3556_s29 = sld [smem:[#allocation10 + $0x14]] }
 0x13b   : > { %v1718_v59 = vrot.slane %v3238_v26, %v2873_v60  ;;  %v504_v25 = vsel %vm503_vm6, %v3015_v27, %v3026_v37 }
 0x13c   : > { %v3215_v10 = vpop.permute.xlu1 %855  ;;  %v3217_v13 = vpop.permute.xlu0 %824 }
 0x13e   : > { %1544 = vrot.lane.b32.xlu1 %v1537_v46, %s2662_s4  ;;  %1542 = vrot.lane.b32.xlu0 %v1533_v62, %s2662_s4  ;;  %v3248_v62 = vld [vmem:[#allocation4 + $0x1] sm:$0x7]  ;;  %v1775_v46 = vstv %s3204_s30  ;;  %s3564_s30 = sld [smem:[#allocation10 + $0x45]] }
 0x13f   : > { %v1741_v24 = vmul.f32 %v3248_v62, %v1740_v19  ;;  %v400_v19 = vsel %vm398_vm4, %v2989_v4, %v2981_v58  ;;  %v434_v58 = vsel %vm433_vm5, %v2987_v3, %v3000_v12  ;;  %v435_v4 = vsel %vm433_vm5, %v3000_v12, %v2998_v11 }
 0x140   : > { %v3240_v2 = vpop.permute.xlu1 %859  ;;  %v3242_v7 = vpop.permute.xlu0 %857  ;;  %vm721_vm4 = vcmask 146432   ;;  %v545_v3 = vsel %vm364_vm3, %v541_v17, 0.0  ;;  %v792_v11 = vsel %vm791_vm13, %v3148_v47, %v3164_v9  ;;  %v793_v12 = vsel %vm791_vm13, %v3164_v9, %v3162_v8 }
 0x141   : > { %v3287_v51 = vadd.f32 %v1743_v54, %v1741_v24  ;;  %v3304_v24 = vmul.f32 %v3251_v29, %v1777_v36  ;;  %v505_v36 = vsel %vm503_vm6, %v3026_v37, %v3024_v35  ;;  %v404_v27 = vsel %vm365_vm8, %v400_v19, 0.0 }
 0x142   : > { %1577 = vrot.lane.b32.xlu1 %v1568_v43, %s2663_s7  ;;  %1546 = vrot.lane.b32.xlu0 %v1541_v49, %s2662_s4  ;;  %v3290_v43 = vmul.f32 %v3248_v62, %v1775_v46  ;;  %v653_v49 = vsel %vm651_vm11, %v3085_v39, %v3083_v38  ;;  %v403_v46 = vsel %vm364_vm3, %v399_v22, 0.0  ;;  %vm972_vm11 = vcmask 138240   ;;  %s3584_s4 = sld [smem:[#allocation10 + $0x1b]] }
 0x143   : > { %v542_v38 = vsel %vm540_vm7, %v3036_v44, %v3044_v53  ;;  %v656_v35 = vsel %vm619_vm9, %v652_v45, 0.0  ;;  %v657_v37 = vsel %vm620_vm10, %v653_v49, 0.0  ;;  %v438_v8 = vsel %vm364_vm3, %v434_v58, 0.0 }
 0x144   : > { %v3281_v33 = vpop.permute.xlu1 %898  ;;  %v3283_v34 = vpop.permute.xlu0 %896  ;;  %v439_v9 = vsel %vm365_vm8, %v435_v4, 0.0  ;;  %v687_v44 = vsel %vm686_vm12, %v3097_v50, %v3095_v48  ;;  %v509_v53 = vsel %vm365_vm8, %v505_v36, 0.0  ;;  %v796_v22 = vsel %vm619_vm9, %v792_v11, 0.0 }
 0x145   : > { %v797_v54 = vsel %vm620_vm10, %v793_v12, 0.0  ;;  %v3875_v19 = vrot.slane %v3219_v23, %v2873_v60  ;;  %v3876_v17 = vrot.slane %v3219_v23, %v2868_v56  ;;  %v546_v50 = vsel %vm365_vm8, %v542_v38, 0.0 }
 0x146   : > { %1581 = vrot.lane.b32.xlu1 %v1576_v61, %s2663_s7  ;;  %1579 = vrot.lane.b32.xlu0 %v1572_v28, %s2663_s7  ;;  %v508_v61 = vsel %vm364_vm3, %v504_v25, 0.0  ;;  %v547_v28 = vadd.f32 %v545_v3, %v403_v46  ;;  %v659_v45 = vadd.f32 %v657_v37, %v509_v53  ;;  %v827_v46 = vsel %vm826_vm14, %v3188_v41, %v3186_v55  ;;  %s3586_s7 = sld [smem:[#allocation10 + $0x4c]] }
 0x147   : > { %v658_v49 = vadd.f32 %v656_v35, %v508_v61  ;;  %v576_v58 = vsel %vm575_vm15, %v3042_v52, %v3058_v6  ;;  %v577_v4 = vsel %vm575_vm15, %v3058_v6, %v3056_v5  ;;  %v691_v25 = vsel %vm619_vm9, %v687_v44, 0.0 }
 0x148   : > { %v932_v39 = vpop.permute.xlu1 %931  ;;  %v3339_v47 = vpop.permute.xlu0 %900  ;;  %v688_v36 = vsel %vm686_vm12, %v3095_v48, %v3103_v0  ;;  %vm902_vm7 = vcmask 400384   ;;  %v799_v41 = vadd.f32 %v797_v54, %v659_v45  ;;  %vm3877_vm13 = vcmask 269312  }
 0x149   : > { %v798_v12 = vadd.f32 %v796_v22, %v658_v49  ;;  %vm3878_vm6 = vmmov %vm3877_vm13  ;;  %vm3879_vm5 = vcmask 154624   ;;  %v831_v6 = vsel %vm619_vm9, %v827_v46, 0.0  ;;  %vm3880_vm12 = vcmp.ge.s32.totalorder %v3182_v42, 1 }
 0x14a   : > { %1620 = vrot.lane.b32.xlu1 %v3875_v19, %s2664_s8  ;;  %1618 = vrot.lane.b32.xlu0 %v3876_v17, %s2664_s8  ;;  %v469_v5 = vsel %vm3879_vm5, %v3010_v21, %v3008_v20  ;;  %v3881_v0 = vrot.slane %v3224_v30, %v2868_v56  ;;  %v3882_v37 = vrot.slane %v3219_v23, %v2870_v57  ;;  %vm1007_vm15 = vcmask 7168  }
 0x14b   : > { %v693_v21 = vadd.f32 %v691_v25, %v547_v28  ;;  %v548_v53 = vadd.f32 %v546_v50, %v404_v27  ;;  %v580_v22 = vsel %vm364_vm3, %v576_v58, 0.0  ;;  %v581_v54 = vsel %vm365_vm8, %v577_v4, 0.0 }
 0x14c   : > { %v936_v3 = vpop.permute.xlu1 %935  ;;  %v934_v11 = vpop.permute.xlu0 %933  ;;  %v692_v23 = vsel %vm620_vm10, %v688_v36, 0.0  ;;  %v473_v50 = vsel %vm364_vm3, %v469_v5, 0.0  ;;  %v611_v49 = vsel %vm610_vm0, %v3068_v15, %v3066_v14  ;;  %v3883_v46 = vrot.slane %v3224_v30, %v2870_v57 }
 0x14d   : > { %v938_v38 = vsel %vm3877_vm13, %v932_v39, %v934_v11  ;;  %v939_v52 = vsel %vm3878_vm6, %v934_v11, %v936_v3  ;;  %v828_v39 = vsel %vm826_vm14, %v3186_v55, %v3217_v13  ;;  %v722_v55 = vsel %vm721_vm4, %v3101_v63, %v3117_v18 }
 0x14e   : > { %v942_v35 = vsel %vm870_vm1, %v938_v38, 0.0  ;;  %v943_v48 = vsel %vm3880_vm12, %v939_v52, 0.0  ;;  %1653 = vrot.lane.b32.xlu1 %v3881_v0, %s2665_s15  ;;  %1622 = vrot.lane.b32.xlu0 %v3882_v37, %s2664_s8  ;;  %v723_v13 = vsel %vm721_vm4, %v3117_v18, %v3115_v16  ;;  %v833_v27 = vadd.f32 %v831_v6, %v693_v21  ;;  %v3892_v37 = vld [vmem:[#allocation17_spill] sm:$0xff]  ;;  %s2671_s8 = smov 45  }
 0x14f   : > { %v3398_v61 = vadd.f32 %v942_v35, %v798_v12  ;;  %v3400_v44 = vadd.f32 %v943_v48, %v799_v41  ;;  %v832_v45 = vsel %vm620_vm10, %v828_v39, 0.0  ;;  %v3884_v16 = vrot.slane %v3224_v30, %v2873_v60 }
 0x150   : > { %v969_v19 = vpop.permute.xlu1 %968  ;;  %v967_v28 = vpop.permute.xlu0 %966  ;;  %vm1042_vm14 = vcmask 924672   ;;  %v694_v18 = vadd.f32 %v692_v23, %v548_v53  ;;  %vm3885_vm4 = vcmask 670720   ;;  %v582_v25 = vadd.f32 %v580_v22, %v438_v8  ;;  %v3888_v8 = vld [vmem:[#allocation18_spill] sm:$0xff]  ;;  %v3894_v22 = vld [vmem:[#allocation19_spill] sm:$0xff] }
 0x151   : > { %v973_v17 = vsel %vm972_vm11, %v967_v28, %v969_v19  ;;  %v862_v15 = vsel %vm3885_vm4, %v3215_v10, %v3242_v7  ;;  %vm3886_vm5 = vmmov %vm3885_vm4  ;;  %v583_v36 = vadd.f32 %v581_v54, %v439_v9  ;;  %v726_v3 = vsel %vm619_vm9, %v722_v55, 0.0 }
 0x152   : > { %v977_v63 = vsel %vm870_vm1, %v973_v17, 0.0  ;;  %1657 = vrot.lane.b32.xlu1 %v3883_v46, %s2665_s15  ;;  %1655 = vrot.lane.b32.xlu0 %v3884_v16, %s2665_s15  ;;  %v863_v58 = vsel %vm3886_vm5, %v3242_v7, %v3240_v2  ;;  %v727_v30 = vsel %vm620_vm10, %v723_v13, 0.0  ;;  %v615_v41 = vsel %vm364_vm3, %v611_v49, 0.0  ;;  %vm3889_vm3 = vmmov %vm3880_vm12  ;;  %s3602_s15 = sld [smem:[#allocation10 + $0x22]] }
 0x153   : > { %v3436_v4 = vadd.f32 %v977_v63, %v833_v27  ;;  %vm3887_vm6 = vcmask 15360   ;;  %v834_v2 = vadd.f32 %v832_v45, %v694_v18  ;;  %v612_v9 = vsel %vm610_vm0, %v3066_v14, %v3888_v8  ;;  %vm3902_vm12 = vmmov %vm3889_vm3 }
 0x154   : > { %v1002_v11 = vpop.permute.xlu1 %1001  ;;  %v971_v12 = vpop.permute.xlu0 %970  ;;  %v757_v10 = vsel %vm3887_vm6, %v3129_v32, %v3127_v31  ;;  %v866_v38 = vsel %vm619_vm9, %v862_v15, 0.0  ;;  %v867_v52 = vsel %vm620_vm10, %v863_v58, 0.0  ;;  %v3890_v32 = vrot.slane %v3232_v1, %v2873_v60 }
 0x155   : > { %v974_v7 = vsel %vm972_vm11, %v969_v19, %v971_v12  ;;  %v3891_v6 = vrot.slane %v3232_v1, %v2868_v56  ;;  %v728_v14 = vadd.f32 %v726_v3, %v582_v25  ;;  %v729_v35 = vadd.f32 %v727_v30, %v583_v36  ;;  %vm3895_vm11 = vmmov %vm3887_vm6 }
 0x156   : > { %v978_v5 = vsel %vm3889_vm3, %v974_v7, 0.0  ;;  %1690 = vrot.lane.b32.xlu1 %v3890_v32, %s2666_s27  ;;  %v903_v48 = vsel %vm902_vm7, %v3283_v34, %v3281_v33  ;;  %vm3893_vm0 = vcmask 154624   ;;  %v617_v39 = vadd.f32 %v615_v41, %v473_v50 }
 0x157   : > { %1688 = vrot.lane.b32.xlu0 %v3891_v6, %s2666_s27  ;;  %v3470_v0 = vadd.f32 %v978_v5, %v834_v2  ;;  %v470_v21 = vsel %vm3893_vm0, %v3008_v20, %v3892_v37  ;;  %v761_v53 = vsel %vm619_vm9, %v757_v10, 0.0  ;;  %v758_v54 = vsel %vm3895_vm11, %v3127_v31, %v3894_v22  ;;  %vm3896_vm9 = vmmov %vm3889_vm3 }
 0x158   : > { %v1006_v23 = vpop.permute.xlu1 %1005  ;;  %v1004_v19 = vpop.permute.xlu0 %1003  ;;  %v868_v28 = vadd.f32 %v866_v38, %v728_v14  ;;  %v869_v55 = vadd.f32 %v867_v52, %v729_v35  ;;  %v616_v27 = vsel %vm365_vm8, %v612_v9, 0.0  ;;  %v907_v20 = vsel %vm870_vm1, %v903_v48, 0.0 }
 0x159   : > { %v1008_v34 = vsel %vm1007_vm15, %v1002_v11, %v1004_v19  ;;  %v1009_v13 = vsel %vm1007_vm15, %v1004_v19, %v1006_v23  ;;  %v3897_v50 = vrot.slane %v3238_v26, %v2868_v56  ;;  %v3898_v49 = vrot.slane %v3232_v1, %v2870_v57  ;;  %v3903_v19 = vld [vmem:[#allocation21_spill] sm:$0xff] }
 0x15a   : > { %v1012_v17 = vsel %vm870_vm1, %v1008_v34, 0.0  ;;  %v1013_v31 = vsel %vm3896_vm9, %v1009_v13, 0.0  ;;  %v763_v45 = vadd.f32 %v761_v53, %v617_v39  ;;  %v904_v63 = vsel %vm902_vm7, %v3281_v33, %v3339_v47 }
 0x15b   : > { %1723 = vrot.lane.b32.xlu1 %v3897_v50, %s2667_s17  ;;  %1692 = vrot.lane.b32.xlu0 %v3898_v49, %s2666_s27  ;;  %v3499_v46 = vadd.f32 %v1012_v17, %v868_v28  ;;  %v3501_v16 = vadd.f32 %v1013_v31, %v869_v55  ;;  %v474_v18 = vsel %vm365_vm8, %v470_v21, 0.0  ;;  %v762_v1 = vsel %vm620_vm10, %v758_v54, 0.0  ;;  %vm3899_vm8 = vmmov %vm3889_vm3  ;;  %v3904_v55 = vld [vmem:[#allocation20_spill] sm:$0xff]  ;;  %s2672_s27 = smov 29  }
 0x15c   : > { %v1039_v15 = vpop.permute.xlu1 %1038  ;;  %v1037_v58 = vpop.permute.xlu0 %1036  ;;  %v1753_v33 = vrot.slane %v3287_v51, %v2873_v60  ;;  %v1749_v47 = vrot.slane %v3287_v51, %v2868_v56  ;;  %v618_v25 = vadd.f32 %v616_v27, %v474_v18  ;;  %v909_v36 = vadd.f32 %v907_v20, %v763_v45  ;;  %vm3901_vm10 = vmmov %vm3889_vm3 }
 0x15d   : > { %v1043_v3 = vsel %vm1042_vm14, %v1037_v58, %v1039_v15  ;;  %v1779_v30 = vadd.f32 %v3304_v24, %v3290_v43  ;;  %v908_v11 = vsel %vm3899_vm8, %v904_v63, 0.0  ;;  %v3900_v41 = vrot.slane %v3238_v26, %v2870_v57 }
 0x15e   : > { %v1047_v12 = vsel %vm870_vm1, %v1043_v3, 0.0  ;;  %v1810_v10 = vstv %s3448_s25  ;;  %v1812_v2 = vstv %s3465_s28  ;;  %v764_v7 = vadd.f32 %v762_v1, %v618_v25  ;;  %s3604_s25 = sld [smem:[#allocation10 + $0x53]]  ;;  %s3623_s28 = sld [smem:[#allocation10 + $0x29]] }
 0x15f   : > { %1727 = vrot.lane.b32.xlu1 %v3900_v41, %s2667_s17  ;;  %1725 = vrot.lane.b32.xlu0 %v1718_v59, %s2667_s17  ;;  %v3530_v8 = vadd.f32 %v1047_v12, %v909_v36  ;;  %v1811_v52 = vmul.f32 %v3248_v62, %v1810_v10  ;;  %v1813_v5 = vmul.f32 %v3251_v29, %v1812_v2  ;;  %vm1077_vm7 = vcmask 793600   ;;  %s3625_s17 = sld [smem:[#allocation10 + $0x5a]] }
 0x160   : > { %v1072_v43 = vpop.permute.xlu1 %1071  ;;  %v1041_v24 = vpop.permute.xlu0 %1040  ;;  %v910_v9 = vadd.f32 %v908_v11, %v764_v7  ;;  %v1784_v59 = vrot.slane %v1779_v30, %v2868_v56  ;;  %v1757_v32 = vrot.slane %v3287_v51, %v2870_v57  ;;  %v1851_v14 = vstv %s3503_s19  ;;  %s3630_s19 = sld [smem:[#allocation10 + $0x18]] }
 0x161   : > { %v1044_v38 = vsel %vm1042_vm14, %v1039_v15, %v1041_v24  ;;  %v1853_v35 = vstv %s3505_s24  ;;  %vm1112_vm13 = vcmask 662528   ;;  %v1792_v21 = vrot.slane %v1779_v30, %v2870_v57  ;;  %s3632_s24 = sld [smem:[#allocation10 + $0x49]] }
 0x162   : > { %v1048_v26 = vsel %vm3901_vm10, %v1044_v38, 0.0  ;;  %v1788_v22 = vrot.slane %v1779_v30, %v2873_v60  ;;  %v1814_v54 = vadd.f32 %v1813_v5, %v1811_v52  ;;  %v1852_v28 = vmul.f32 %v3903_v19, %v1851_v14 }
 0x163   : > { %1760 = vrot.lane.b32.xlu1 %v1753_v33, %s2668_s16  ;;  %1758 = vrot.lane.b32.xlu0 %v1749_v47, %s2668_s16  ;;  %v3544_v6 = vadd.f32 %v1048_v26, %v910_v9  ;;  %v1854_v34 = vmul.f32 %v3904_v55, %v1853_v35  ;;  %v1886_v63 = vstv %s3540_s18  ;;  %vm1147_vm15 = vcmask 392192   ;;  %s3642_s18 = sld [smem:[#allocation10 + $0x30]] }
 0x164   : > { %v1076_v48 = vpop.permute.xlu1 %1075  ;;  %v1074_v37 = vpop.permute.xlu0 %1073  ;;  %v1823_v50 = vrot.slane %v1814_v54, %v2873_v60  ;;  %v1819_v49 = vrot.slane %v1814_v54, %v2868_v56  ;;  %v1887_v33 = vmul.f32 %v3903_v19, %v1886_v63  ;;  %v1921_v3 = vstv %s3556_s29  ;;  %s2675_s29 = smov 109  }
 0x165   : > { %v1078_v39 = vsel %vm1077_vm7, %v1072_v43, %v1074_v37  ;;  %v1079_v53 = vsel %vm1077_vm7, %v1074_v37, %v1076_v48  ;;  %v1923_v11 = vstv %s3564_s30  ;;  %v1922_v9 = vmul.f32 %v3903_v19, %v1921_v3  ;;  %s2676_s30 = smov 93  }
 0x166   : > { %v1082_v51 = vsel %vm870_vm1, %v1078_v39, 0.0  ;;  %v1083_v23 = vsel %vm3902_vm12, %v1079_v53, 0.0  ;;  %vm1180_vm14 = vcmask 261120   ;;  %v1956_v35 = vstv %s3584_s4  ;;  %s2250_s4 = sshll.u32 %s2828_s21, 1 }
 0x167   : > { %1793 = vrot.lane.b32.xlu1 %v1784_v59, %s2669_s23  ;;  %1762 = vrot.lane.b32.xlu0 %v1757_v32, %s2668_s16  ;;  %v3559_v13 = vadd.f32 %v1082_v51, %v3398_v61  ;;  %v3562_v27 = vadd.f32 %v1083_v23, %v3400_v44  ;;  %v1855_v61 = vadd.f32 %v1854_v34, %v1852_v28  ;;  %v1888_v44 = vstv %s3542_s22  ;;  %s2673_s16 = smov 13   ;;  %s3644_s22 = sld [smem:[#allocation10 + $0x61]] }
 0x168   : > { %v1109_v20 = vpop.permute.xlu1 %1108  ;;  %v1107_v17 = vpop.permute.xlu0 %1106  ;;  %v1889_v47 = vmul.f32 %v3904_v55, %v1888_v44  ;;  %v1958_v48 = vstv %s3586_s7  ;;  %vm1213_vm4 = vcmask 130048   ;;  %v1957_v53 = vmul.f32 %v3248_v62, %v1956_v35  ;;  %s2356_s7 = sshll.u32 %s2616_s12, 5  ;;  %s2132_s12 = scalar_lea.sflag [#allocation8], %s2828_s21 }
 0x169   : > { %v1113_v31 = vsel %vm1112_vm13, %v1107_v17, %v1109_v20  ;;  %v1860_v36 = vrot.slane %v1855_v61, %v2868_v56  ;;  %v1868_v10 = vrot.slane %v1855_v61, %v2870_v57  ;;  %v1864_v2 = vrot.slane %v1855_v61, %v2873_v60 }
 0x16a   : > { %v1117_v45 = vsel %vm870_vm1, %v1113_v31, 0.0  ;;  %vm3905_vm1 = vmmov %vm3889_vm3  ;;  %v1890_v24 = vadd.f32 %v1889_v47, %v1887_v33  ;;  %v1991_v23 = vstv %s3602_s15  ;;  %v1993_v19 = vstv %s3604_s25 }
 0x16b   : > { %1797 = vrot.lane.b32.xlu1 %v1792_v21, %s2669_s23  ;;  %1795 = vrot.lane.b32.xlu0 %v1788_v22, %s2669_s23  ;;  %v3574_v18 = vadd.f32 %v1117_v45, %v3436_v4  ;;  %v1827_v4 = vrot.slane %v1814_v54, %v2870_v57  ;;  %v1959_v22 = vmul.f32 %v3251_v29, %v1958_v48  ;;  %vm1268_vm5 = vcmask 916480   ;;  %s2674_s23 = smov 125  }
 0x16c   : > { %v1142_v1 = vpop.permute.xlu1 %1141  ;;  %v1111_v15 = vpop.permute.xlu0 %1110  ;;  %v1903_v51 = vrot.slane %v1890_v24, %v2870_v57  ;;  %v1994_v61 = vmul.f32 %v3251_v29, %v1993_v19  ;;  %v2026_v33 = vstv %s3623_s28  ;;  %v2028_v47 = vstv %s3625_s17  ;;  %s3791_s28 = scalar_lea.hbm %s3844_s2, %s2356_s7 }
 0x16d   : > { %v1114_v58 = vsel %vm1112_vm13, %v1109_v20, %v1111_v15  ;;  %v1960_v31 = vadd.f32 %v1959_v22, %v1957_v53  ;;  %v1226_v3 = vstv %s3632_s24  ;;  %vm1301_vm6 = vcmask 785408  }
 0x16e   : > { %v1118_v25 = vsel %vm3905_vm1, %v1114_v58, 0.0  ;;  %vm1334_vm3 = vcmask 654336   ;;  %vm1373_vm0 = vcmask 384000   ;;  %vm1343_vm11 = vcmp.lt.s32.totalorder %v3180_v40, 15 }
 0x16f   : > { %1830 = vrot.lane.b32.xlu1 %v1823_v50, %s2670_s6  ;;  %1828 = vrot.lane.b32.xlu0 %v1819_v49, %s2670_s6  ;;  %v3589_v30 = vadd.f32 %v1118_v25, %v3470_v0  ;;  %v1924_v0 = vmul.f32 %v3904_v55, %v1923_v11  ;;  %v1992_v50 = vmul.f32 %v3248_v62, %v1991_v23  ;;  %vm1344_vm9 = vcmp.lt.s32.totalorder %v3182_v42, 15 }
 0x170   : > { %v1146_v12 = vpop.permute.xlu1 %1145  ;;  %v1144_v41 = vpop.permute.xlu0 %1143  ;;  %vm1408_vm8 = vcmask 252928   ;;  %vm1443_vm10 = vcmask 121856   ;;  %vm1478_vm7 = vcmask 1039360   ;;  %vm1513_vm13 = vcmask 908288  }
 0x171   : > { %v1148_v7 = vsel %vm1147_vm15, %v1142_v1, %v1144_v41  ;;  %v1149_v43 = vsel %vm1147_vm15, %v1144_v41, %v1146_v12  ;;  %v1925_v14 = vadd.f32 %v1924_v0, %v1922_v9  ;;  %v1965_v1 = vrot.slane %v1960_v31, %v2868_v56 }
 0x172   : > { %v1152_v38 = vadd.f32 %v1148_v7, %v3499_v46  ;;  %v3599_v52 = vadd.f32 %v1149_v43, %v3501_v16  ;;  %v1899_v46 = vrot.slane %v1890_v24, %v2873_v60  ;;  %v1895_v16 = vrot.slane %v1890_v24, %v2868_v56 }
 0x173   : > { %1869 = vrot.lane.b32.xlu1 %v1860_v36, %s2671_s8  ;;  %1832 = vrot.lane.b32.xlu0 %v1827_v4, %s2670_s6  ;;  %v1938_v34 = vrot.slane %v1925_v14, %v2870_v57  ;;  %v1995_v58 = vadd.f32 %v1994_v61, %v1992_v50  ;;  %v1224_v4 = vstv %s3630_s19  ;;  %v2027_v12 = vmul.f32 %v3248_v62, %v2026_v33  ;;  %s2677_s6 = smov 77   ;;  %s2678_s19 = smov [#allocation11]  }
 0x174   : > { %v1177_v5 = vpop.permute.xlu1 %1176  ;;  %v1175_v26 = vpop.permute.xlu0 %1174  ;;  %v2029_v41 = vmul.f32 %v3251_v29, %v2028_v47  ;;  %v1973_v24 = vrot.slane %v1960_v31, %v2870_v57  ;;  %v2061_v9 = vstv %s3642_s18  ;;  %vm1548_vm12 = vcmask 777216   ;;  %s2542_s24 = sshll.u32 %s2678_s19, 4  ;;  %s2543_s24 = int_to_ptr.vmem [resolvable:$false] %s2542_s24 }
 0x175   : > { %v1181_v59 = vsel %vm1180_vm14, %v1175_v26, %v1177_v5  ;;  %v2000_v43 = vrot.slane %v1995_v58, %v2868_v56  ;;  %v2008_v26 = vrot.slane %v1995_v58, %v2870_v57  ;;  %v2062_v48 = vmul.f32 %v3248_v62, %v2061_v9 }
 0x176   : > { %v3610_v32 = vadd.f32 %v1181_v59, %v3530_v8  ;;  %v1930_v8 = vrot.slane %v1925_v14, %v2868_v56  ;;  %v2004_v59 = vrot.slane %v1995_v58, %v2873_v60  ;;  %v2030_v35 = vadd.f32 %v2029_v41, %v2027_v12 }
 0x177   : > { %1873 = vrot.lane.b32.xlu1 %v1868_v10, %s2671_s8  ;;  %1871 = vrot.lane.b32.xlu0 %v1864_v2, %s2671_s8  ;;  %v1220_v10 = vld [vmem:[#allocation4 + $0x1] sm:$0x3]  ;;  %v1221_v2 = vld [vmem:[#allocation5 + $0x1] sm:$0x3]  ;;  %vm1583_vm15 = vcmask 646144   ;;  %vm1624_vm1 = vcmask 375808  }
 0x178   : > { %v1208_v37 = vpop.permute.xlu1 %1207  ;;  %v1179_v21 = vpop.permute.xlu0 %1178  ;;  %v2035_v62 = vrot.slane %v2030_v35, %v2868_v56  ;;  %s189_s8 = scalar_lea.vmem [#allocation11], %s2250_s4 }
 0x179   : > { %v1182_v39 = vsel %vm1180_vm14, %v1177_v5, %v1179_v21  ;;  %vm1594_vm14 = vcmp.lt.s32.totalorder %v3180_v40, 14  ;;  %s2146_s15 = sshll.u32 %s189_s8, 4  ;;  %s3793_s15 = int_to_ptr.vmem [resolvable:$true] %s2146_s15 }
 0x17a   : > { %v3618_v54 = vadd.f32 %v1182_v39, %v3544_v6  ;;  %v1934_v6 = vrot.slane %v1925_v14, %v2873_v60  ;;  %s2538_s17 = scalar_lea.vmem %s3793_s15, 32  ;;  %p2545_p4 = scmp.lt.s32.totalorder %s3793_s15, %s2543_s24 }
 0x17b   : > { %1906 = vrot.lane.b32.xlu1 %v1899_v46, %s2672_s27  ;;  %1904 = vrot.lane.b32.xlu0 %v1895_v16, %s2672_s27  ;;  %v1225_v46 = vmul.f32 %v1224_v4, %v1220_v10  ;;  %v1227_v16 = vmul.f32 %v1226_v3, %v1221_v2  ;;  %p2539_p8 = scmp.ne.s32.totalorder %s3793_s15, %s2538_s17 }
 0x17c   : > { %v1212_v28 = vpop.permute.xlu1 %1211  ;;  %v1210_v55 = vpop.permute.xlu0 %1209 }
 0x17d   : > { %v1214_v20 = vsel %vm1213_vm4, %v1208_v37, %v1210_v55  ;;  %v1215_v17 = vsel %vm1213_vm4, %v1210_v55, %v1212_v28  ;;  %v1228_v23 = vadd.f32 %v1227_v16, %v1225_v46  ;;  %vm1595_vm4 = vcmp.lt.s32.totalorder %v3182_v42, 14  ;;  %p2540_p12 = pnand %p2539_p8, %p3908_p2 }
 0x17e   : > { %v1218_v49 = vadd.f32 %v1214_v20, %v3559_v13  ;;  %v3639_v45 = vadd.f32 %v1215_v17, %v3562_v27  ;;  %v1969_v27 = vrot.slane %v1960_v31, %v2873_v60  ;;  %v2043_v17 = vrot.slane %v2030_v35, %v2870_v57 }
 0x17f   : > { %1939 = vrot.lane.b32.xlu1 %v1930_v8, %s2673_s16  ;;  %1908 = vrot.lane.b32.xlu0 %v1903_v51, %s2672_s27  ;;  %v2039_v51 = vrot.slane %v2030_v35, %v2873_v60  ;;  %p2541_p5 = pneg %p2540_p12 }
 0x180   : > { %v1265_v63 = vpop.permute.xlu1 %1264  ;;  %v1263_v44 = vpop.permute.xlu0 %1262 }
 0x181   : > { %v1269_v13 = vsel %vm1268_vm5, %v1263_v44, %v1265_v63 }
 0x182   : > { %v3649_v15 = vadd.f32 %v1269_v13, %v1152_v38  ;;  %v2063_v38 = vstv %s3644_s22 }
 0x183   : > { %1943 = vrot.lane.b32.xlu1 %v1938_v34, %s2673_s16  ;;  %1941 = vrot.lane.b32.xlu0 %v1934_v6, %s2673_s16  ;;  %v2064_v39 = vmul.f32 %v3251_v29, %v2063_v38  ;;  %v1233_v34 = vrot.slane %v1228_v23, %v2868_v56  ;;  %v1237_v6 = vrot.slane %v1228_v23, %v2873_v60  ;;  %s2544_s16 = scalar_lea.vmem %s2543_s24, 64 }
 0x184   : > { %v1296_v25 = vpop.permute.xlu1 %1295  ;;  %v1267_v36 = vpop.permute.xlu0 %1266  ;;  %p2546_p9 = scmp.lt.s32.totalorder %s2544_s16, %s2538_s17 }
 0x185   : > { %v1270_v11 = vsel %vm1268_vm5, %v1265_v63, %v1267_v36  ;;  %v1241_v61 = vadd.f32 %v1237_v6, %v3589_v30  ;;  %vm1659_vm5 = vcmask 244736  }
 0x186   : > { %v3659_v7 = vadd.f32 %v1270_v11, %v3599_v52  ;;  %p2547_p13 = por %p2546_p9, %p2545_p4 }
 0x187   : > { %1976 = vrot.lane.b32.xlu1 %v1969_v27, %s2674_s23  ;;  %1974 = vrot.lane.b32.xlu0 %v1965_v1, %s2674_s23 }
 0x188   : > { %v1300_v0 = vpop.permute.xlu1 %1299  ;;  %v1298_v5 = vpop.permute.xlu0 %1297  ;;  %p2548_p11 = pnand %p2547_p13, %p2541_p5 }
 0x189   : > { %v1302_v52 = vsel %vm1301_vm6, %v1296_v25, %v1298_v5  ;;  %v1303_v14 = vsel %vm1301_vm6, %v1298_v5, %v1300_v0  ;;  %vm1694_vm6 = vcmask 113664  }
 0x18a   : > { %v3671_v37 = vadd.f32 %v1302_v52, %v3610_v32  ;;  %v3674_v21 = vadd.f32 %v1303_v14, %v3618_v54  ;;  %v2065_v32 = vadd.f32 %v2064_v39, %v2062_v48 }
 0x18b   : > { %2009 = vrot.lane.b32.xlu1 %v2000_v43, %s2675_s29  ;;  %1978 = vrot.lane.b32.xlu0 %v1973_v24, %s2674_s23 }
 0x18c   : > { %v1331_v53 = vpop.permute.xlu1 %1330  ;;  %v1329_v22 = vpop.permute.xlu0 %1328  ;;  %v2070_v20 = vrot.slane %v2065_v32, %v2868_v56  ;;  %v2078_v13 = vrot.slane %v2065_v32, %v2870_v57  ;;  %v2074_v27 = vrot.slane %v2065_v32, %v2873_v60 }
 0x18d   : > { %v1335_v8 = vsel %vm1334_vm3, %v1329_v22, %v1331_v53 }
 0x18e   : > { %v1339_v19 = vadd.f32 %v1335_v8, %v1218_v49  ;;  %v1240_v49 = vadd.f32 %v1233_v34, %v3574_v18 }
 0x18f   : > { %2013 = vrot.lane.b32.xlu1 %v2008_v26, %s2675_s29  ;;  %2011 = vrot.lane.b32.xlu0 %v2004_v59, %s2675_s29 }
 0x190   : > { %v1368_v54 = vpop.permute.xlu1 %1367  ;;  %v1333_v28 = vpop.permute.xlu0 %1332 }
 0x191   : > { %v1336_v55 = vsel %vm1334_vm3, %v1331_v53, %v1333_v28  ;;  %vm1729_vm3 = vcmask 1031168  }
 0x192   : > { %v1340_v29 = vadd.f32 %v1336_v55, %v3639_v45 }
 0x193   : > { %2046 = vrot.lane.b32.xlu1 %v2039_v51, %s2676_s30  ;;  %2044 = vrot.lane.b32.xlu0 %v2035_v62, %s2676_s30 }
 0x194   : > { %v1372_v31 = vpop.permute.xlu1 %1371  ;;  %v1370_v50 = vpop.permute.xlu0 %1369 }
 0x195   : > { %v1374_v45 = vsel %vm1373_vm0, %v1368_v54, %v1370_v50  ;;  %v1375_v63 = vsel %vm1373_vm0, %v1370_v50, %v1372_v31  ;;  %vm1764_vm0 = vcmask 900096  }
 0x196   : > { %v1378_v44 = vsel %vm1343_vm11, %v1374_v45, 0.0  ;;  %v1379_v56 = vsel %vm1344_vm9, %v1375_v63, 0.0 }
 0x197   : > { %2079 = vrot.lane.b32.xlu1 %v2070_v20, %s2677_s6  ;;  %2048 = vrot.lane.b32.xlu0 %v2043_v17, %s2676_s30  ;;  %v1380_v1 = vadd.f32 %v1378_v44, %v1240_v49  ;;  %v1381_v58 = vadd.f32 %v1379_v56, %v1241_v61 }
 0x198   : > { %v1405_v18 = vpop.permute.xlu1 %1404  ;;  %v1403_v33 = vpop.permute.xlu0 %1402 }
 0x199   : > { %v1409_v30 = vsel %vm1408_vm8, %v1403_v33, %v1405_v18 }
 0x19a   : > { %v1413_v47 = vsel %vm1343_vm11, %v1409_v30, 0.0 }
 0x19b   : > { %2083 = vrot.lane.b32.xlu1 %v2078_v13, %s2677_s6  ;;  %2081 = vrot.lane.b32.xlu0 %v2074_v27, %s2677_s6  ;;  %v1415_v25 = vadd.f32 %v1413_v47, %v3649_v15 }
 0x19c   : > { %v1438_v36 = vpop.permute.xlu1 %1437  ;;  %v1407_v4 = vpop.permute.xlu0 %1406 }
 0x19d   : > { %v1410_v3 = vsel %vm1408_vm8, %v1405_v18, %v1407_v4  ;;  %vm1875_vm8 = vcmask 367616  }
 0x19e   : > { %v1414_v57 = vsel %vm1344_vm9, %v1410_v3, 0.0 }
 0x19f   : > { %v1416_v60 = vadd.f32 %v1414_v57, %v3659_v7 }
 0x1a0   : > { %v1442_v11 = vpop.permute.xlu1 %1441  ;;  %v1440_v12 = vpop.permute.xlu0 %1439 }
 0x1a1   : > { %v1444_v41 = vsel %vm1443_vm10, %v1438_v36, %v1440_v12  ;;  %v1445_v10 = vsel %vm1443_vm10, %v1440_v12, %v1442_v11  ;;  %vm1845_vm10 = vcmp.lt.s32.totalorder %v3180_v40, 13 }
 0x1a2   : > { %v1448_v2 = vsel %vm1343_vm11, %v1444_v41, 0.0  ;;  %v1449_v15 = vsel %vm1344_vm9, %v1445_v10, 0.0 }
 0x1a3   : > { %v1450_v43 = vadd.f32 %v1448_v2, %v3671_v37  ;;  %v1451_v24 = vadd.f32 %v1449_v15, %v3674_v21 }
 0x1a4   : > { %v1475_v9 = vpop.permute.xlu1 %1474  ;;  %v1473_v38 = vpop.permute.xlu0 %1472 }
 0x1a5   : > { %v1479_v0 = vsel %vm1478_vm7, %v1473_v38, %v1475_v9 }
 0x1a6   : > { %v1483_v7 = vsel %vm1343_vm11, %v1479_v0, 0.0 }
 0x1a7   : > { %v1485_v5 = vadd.f32 %v1483_v7, %v1339_v19 }
 0x1a8   : > { %v1508_v26 = vpop.permute.xlu1 %1507  ;;  %v1477_v59 = vpop.permute.xlu0 %1476 }
 0x1a9   : > { %v1480_v46 = vsel %vm1478_vm7, %v1475_v9, %v1477_v59  ;;  %vm1846_vm7 = vcmp.lt.s32.totalorder %v3182_v42, 13 }
 0x1aa   : > { %v1484_v16 = vsel %vm1344_vm9, %v1480_v46, 0.0 }
 0x1ab   : > { %v1486_v52 = vadd.f32 %v1484_v16, %v1340_v29 }
 0x1ac   : > { %v1512_v14 = vpop.permute.xlu1 %1511  ;;  %v1510_v35 = vpop.permute.xlu0 %1509 }
 0x1ad   : > { %v1514_v48 = vsel %vm1513_vm13, %v1508_v26, %v1510_v35  ;;  %v1515_v37 = vsel %vm1513_vm13, %v1510_v35, %v1512_v14  ;;  %vm1910_vm13 = vcmask 236544  }
 0x1ae   : > { %v1518_v21 = vsel %vm1343_vm11, %v1514_v48, 0.0  ;;  %v1519_v39 = vsel %vm1344_vm9, %v1515_v37, 0.0 }
 0x1af   : > { %v1520_v53 = vadd.f32 %v1518_v21, %v1380_v1  ;;  %v1521_v22 = vadd.f32 %v1519_v39, %v1381_v58 }
 0x1b0   : > { %v1545_v8 = vpop.permute.xlu1 %1544  ;;  %v1543_v51 = vpop.permute.xlu0 %1542 }
 0x1b1   : > { %v1549_v23 = vsel %vm1548_vm12, %v1543_v51, %v1545_v8 }
 0x1b2   : > { %v1553_v19 = vsel %vm1343_vm11, %v1549_v23, 0.0 }
 0x1b3   : > { %v1555_v62 = vadd.f32 %v1553_v19, %v1415_v25 }
 0x1b4   : > { %v1578_v32 = vpop.permute.xlu1 %1577  ;;  %v1547_v54 = vpop.permute.xlu0 %1546 }
 0x1b5   : > { %v1550_v28 = vsel %vm1548_vm12, %v1545_v8, %v1547_v54  ;;  %vm1945_vm12 = vcmask 105472  }
 0x1b6   : > { %v1554_v55 = vsel %vm1344_vm9, %v1550_v28, 0.0 }
 0x1b7   : > { %v1556_v34 = vadd.f32 %v1554_v55, %v1416_v60 }
 0x1b8   : > { %v1582_v6 = vpop.permute.xlu1 %1581  ;;  %v1580_v29 = vpop.permute.xlu0 %1579 }
 0x1b9   : > { %v1584_v20 = vsel %vm1583_vm15, %v1578_v32, %v1580_v29  ;;  %v1585_v17 = vsel %vm1583_vm15, %v1580_v29, %v1582_v6  ;;  %vm1980_vm15 = vcmask 1022976  }
 0x1ba   : > { %v1588_v31 = vsel %vm1343_vm11, %v1584_v20, 0.0  ;;  %v1589_v50 = vsel %vm1344_vm9, %v1585_v17, 0.0  ;;  %vm1799_vm11 = vcmask 769024   ;;  %vm1834_vm9 = vcmask 637952  }
 0x1bb   : > { %v1590_v49 = vadd.f32 %v1588_v31, %v1450_v43  ;;  %v1591_v61 = vadd.f32 %v1589_v50, %v1451_v24 }
 0x1bc   : > { %v1621_v45 = vpop.permute.xlu1 %1620  ;;  %v1619_v63 = vpop.permute.xlu0 %1618 }
 0x1bd   : > { %v1625_v44 = vsel %vm1624_vm1, %v1619_v63, %v1621_v45 }
 0x1be   : > { %v1629_v56 = vsel %vm1594_vm14, %v1625_v44, 0.0 }
 0x1bf   : > { %v1631_v13 = vadd.f32 %v1629_v56, %v1485_v5 }
 0x1c0   : > { %v1654_v27 = vpop.permute.xlu1 %1653  ;;  %v1623_v1 = vpop.permute.xlu0 %1622 }
 0x1c1   : > { %v1626_v58 = vsel %vm1624_vm1, %v1621_v45, %v1623_v1  ;;  %vm2015_vm1 = vcmask 891904  }
 0x1c2   : > { %v1630_v18 = vsel %vm1595_vm4, %v1626_v58, 0.0 }
 0x1c3   : > { %v1632_v33 = vadd.f32 %v1630_v18, %v1486_v52 }
 0x1c4   : > { %v1658_v30 = vpop.permute.xlu1 %1657  ;;  %v1656_v47 = vpop.permute.xlu0 %1655 }
 0x1c5   : > { %v1660_v25 = vsel %vm1659_vm5, %v1654_v27, %v1656_v47  ;;  %v1661_v36 = vsel %vm1659_vm5, %v1656_v47, %v1658_v30 }
 0x1c6   : > { %v1664_v4 = vsel %vm1594_vm14, %v1660_v25, 0.0  ;;  %v1665_v3 = vsel %vm1595_vm4, %v1661_v36, 0.0 }
 0x1c7   : > { %v1666_v57 = vadd.f32 %v1664_v4, %v1520_v53  ;;  %v1667_v60 = vadd.f32 %v1665_v3, %v1521_v22 }
 0x1c8   : > { %v1691_v11 = vpop.permute.xlu1 %1690 }
 0x1c9   : > { %v1689_v12 = vpop.permute.xlu0 %1688 }
 0x1ca   : > { %v1695_v41 = vsel %vm1694_vm6, %v1689_v12, %v1691_v11 }
 0x1cb   : > { %v1699_v10 = vsel %vm1594_vm14, %v1695_v41, 0.0 }
 0x1cc   : > { %v1701_v2 = vadd.f32 %v1699_v10, %v1555_v62 }
 0x1cd   : > { %v1724_v15 = vpop.permute.xlu1 %1723  ;;  %v1693_v43 = vpop.permute.xlu0 %1692 }
 0x1ce   : > { %v1696_v24 = vsel %vm1694_vm6, %v1691_v11, %v1693_v43 }
 0x1cf   : > { %v1700_v9 = vsel %vm1595_vm4, %v1696_v24, 0.0 }
 0x1d0   : > { %v1702_v38 = vadd.f32 %v1700_v9, %v1556_v34 }
 0x1d1   : > { %v1728_v0 = vpop.permute.xlu1 %1727  ;;  %v1726_v7 = vpop.permute.xlu0 %1725 }
 0x1d2   : > { %v1730_v5 = vsel %vm1729_vm3, %v1724_v15, %v1726_v7  ;;  %v1731_v26 = vsel %vm1729_vm3, %v1726_v7, %v1728_v0 }
 0x1d3   : > { %v1734_v59 = vsel %vm1594_vm14, %v1730_v5, 0.0  ;;  %v1735_v46 = vsel %vm1595_vm4, %v1731_v26, 0.0 }
 0x1d4   : > { %v1736_v16 = vadd.f32 %v1734_v59, %v1590_v49  ;;  %v1737_v52 = vadd.f32 %v1735_v46, %v1591_v61 }
 0x1d5   : > { %v1761_v14 = vpop.permute.xlu1 %1760  ;;  %v1759_v35 = vpop.permute.xlu0 %1758 }
 0x1d6   : > { %v1765_v48 = vsel %vm1764_vm0, %v1759_v35, %v1761_v14 }
 0x1d7   : > { %v1769_v37 = vsel %vm1594_vm14, %v1765_v48, 0.0 }
 0x1d8   : > { %v1771_v21 = vadd.f32 %v1769_v37, %v1631_v13 }
 0x1d9   : > { %v1794_v39 = vpop.permute.xlu1 %1793  ;;  %v1763_v53 = vpop.permute.xlu0 %1762 }
 0x1da   : > { %v1766_v22 = vsel %vm1764_vm0, %v1761_v14, %v1763_v53 }
 0x1db   : > { %v1770_v8 = vsel %vm1595_vm4, %v1766_v22, 0.0 }
 0x1dc   : > { %v1772_v51 = vadd.f32 %v1770_v8, %v1632_v33 }
 0x1dd   : > { %v1798_v23 = vpop.permute.xlu1 %1797  ;;  %v1796_v19 = vpop.permute.xlu0 %1795 }
 0x1de   : > { %v1800_v62 = vsel %vm1799_vm11, %v1794_v39, %v1796_v19  ;;  %v1801_v32 = vsel %vm1799_vm11, %v1796_v19, %v1798_v23 }
 0x1df   : > { %v1804_v54 = vsel %vm1594_vm14, %v1800_v62, 0.0  ;;  %v1805_v28 = vsel %vm1595_vm4, %v1801_v32, 0.0 }
 0x1e0   : > { %v1806_v55 = vadd.f32 %v1804_v54, %v1666_v57  ;;  %v1807_v34 = vadd.f32 %v1805_v28, %v1667_v60 }
 0x1e1   : > { %v1831_v6 = vpop.permute.xlu1 %1830  ;;  %v1829_v29 = vpop.permute.xlu0 %1828 }
 0x1e2   : > { %v1835_v20 = vsel %vm1834_vm9, %v1829_v29, %v1831_v6 }
 0x1e3   : > { %v1839_v17 = vsel %vm1594_vm14, %v1835_v20, 0.0  ;;  %vm2050_vm14 = vcmask 760832  }
 0x1e4   : > { %v1841_v31 = vadd.f32 %v1839_v17, %v1701_v2 }
 0x1e5   : > { %v1870_v50 = vpop.permute.xlu1 %1869  ;;  %v1833_v49 = vpop.permute.xlu0 %1832 }
 0x1e6   : > { %v1836_v61 = vsel %vm1834_vm9, %v1831_v6, %v1833_v49 }
 0x1e7   : > { %v1840_v45 = vsel %vm1595_vm4, %v1836_v61, 0.0  ;;  %vm2085_vm4 = vcmask 629760  }
 0x1e8   : > { %v1842_v63 = vadd.f32 %v1840_v45, %v1702_v38 }
 0x1e9   : > { %v1874_v44 = vpop.permute.xlu1 %1873  ;;  %v1872_v56 = vpop.permute.xlu0 %1871 }
 0x1ea   : > { %v1876_v13 = vsel %vm1875_vm8, %v1870_v50, %v1872_v56  ;;  %v1877_v27 = vsel %vm1875_vm8, %v1872_v56, %v1874_v44 }
 0x1eb   : > { %v1880_v1 = vsel %vm1845_vm10, %v1876_v13, 0.0  ;;  %v1881_v58 = vsel %vm1846_vm7, %v1877_v27, 0.0 }
 0x1ec   : > { %v1882_v18 = vadd.f32 %v1880_v1, %v1736_v16  ;;  %v1883_v33 = vadd.f32 %v1881_v58, %v1737_v52 }
 0x1ed   : > { %v1907_v30 = vpop.permute.xlu1 %1906  ;;  %v1905_v47 = vpop.permute.xlu0 %1904 }
 0x1ee   : > { %v1911_v25 = vsel %vm1910_vm13, %v1905_v47, %v1907_v30 }
 0x1ef   : > { %v1915_v36 = vsel %vm1845_vm10, %v1911_v25, 0.0 }
 0x1f0   : > { %v1917_v4 = vadd.f32 %v1915_v36, %v1771_v21 }
 0x1f1   : > { %v1940_v3 = vpop.permute.xlu1 %1939  ;;  %v1909_v57 = vpop.permute.xlu0 %1908 }
 0x1f2   : > { %v1912_v60 = vsel %vm1910_vm13, %v1907_v30, %v1909_v57 }
 0x1f3   : > { %v1916_v11 = vsel %vm1846_vm7, %v1912_v60, 0.0 }
 0x1f4   : > { %v1918_v12 = vadd.f32 %v1916_v11, %v1772_v51 }
 0x1f5   : > { %v1944_v41 = vpop.permute.xlu1 %1943  ;;  %v1942_v10 = vpop.permute.xlu0 %1941 }
 0x1f6   : > { %v1946_v2 = vsel %vm1945_vm12, %v1940_v3, %v1942_v10  ;;  %v1947_v15 = vsel %vm1945_vm12, %v1942_v10, %v1944_v41  ;;  %v3906_v3 = vld [vmem:[#allocation15_spill] sm:$0xff] }
 0x1f7   : > { %v1950_v43 = vsel %vm1845_vm10, %v1946_v2, 0.0  ;;  %v1951_v24 = vsel %vm1846_vm7, %v1947_v15, 0.0 }
 0x1f8   : > { %v1952_v9 = vadd.f32 %v1950_v43, %v1806_v55  ;;  %v1953_v38 = vadd.f32 %v1951_v24, %v1807_v34 }
 0x1f9   : > { %v1977_v0 = vpop.permute.xlu1 %1976  ;;  %v1975_v7 = vpop.permute.xlu0 %1974 }
 0x1fa   : > { %v1981_v5 = vsel %vm1980_vm15, %v1975_v7, %v1977_v0 }
 0x1fb   : > { %v1985_v26 = vsel %vm1845_vm10, %v1981_v5, 0.0 }
 0x1fc   : > { %v1987_v59 = vadd.f32 %v1985_v26, %v1841_v31 }
 0x1fd   : > { %v2010_v46 = vpop.permute.xlu1 %2009  ;;  %v1979_v16 = vpop.permute.xlu0 %1978 }
 0x1fe   : > { %v1982_v52 = vsel %vm1980_vm15, %v1977_v0, %v1979_v16 }
 0x1ff   : > { %v1986_v14 = vsel %vm1846_vm7, %v1982_v52, 0.0 }
 0x200   : > { %v1988_v35 = vadd.f32 %v1986_v14, %v1842_v63 }
 0x201   : > { %v2014_v48 = vpop.permute.xlu1 %2013  ;;  %v2012_v37 = vpop.permute.xlu0 %2011 }
 0x202   : > { %v2016_v21 = vsel %vm2015_vm1, %v2010_v46, %v2012_v37  ;;  %v2017_v39 = vsel %vm2015_vm1, %v2012_v37, %v2014_v48 }
 0x203   : > { %v2020_v53 = vsel %vm1845_vm10, %v2016_v21, 0.0  ;;  %v2021_v22 = vsel %vm1846_vm7, %v2017_v39, 0.0 }
 0x204   : > { %v2022_v8 = vadd.f32 %v2020_v53, %v1882_v18  ;;  %v2023_v51 = vadd.f32 %v2021_v22, %v1883_v33 }
 0x205   : > { %v2047_v23 = vpop.permute.xlu1 %2046  ;;  %v2045_v19 = vpop.permute.xlu0 %2044 }
 0x206   : > { %v2051_v62 = vsel %vm2050_vm14, %v2045_v19, %v2047_v23 }
 0x207   : > { %v2055_v32 = vsel %vm1845_vm10, %v2051_v62, 0.0 }
 0x208   : > { %v2057_v54 = vadd.f32 %v2055_v32, %v1917_v4 }
 0x209   : > { %v2080_v28 = vpop.permute.xlu1 %2079  ;;  %v2049_v55 = vpop.permute.xlu0 %2048 }
 0x20a   : > { %v2096_v34 = vadd.f32 %v2057_v54, %v2022_v8  ;;  %v2052_v6 = vsel %vm2050_vm14, %v2047_v23, %v2049_v55 }
 0x20b   : > { %v2056_v29 = vsel %vm1846_vm7, %v2052_v6, 0.0 }
 0x20c   : > { %v2058_v20 = vadd.f32 %v2056_v29, %v1918_v12 }
 0x20d   : > { %v2084_v17 = vpop.permute.xlu1 %2083  ;;  %v2082_v31 = vpop.permute.xlu0 %2081 }
 0x20e   : > { %v2097_v50 = vadd.f32 %v2058_v20, %v2023_v51  ;;  %v2086_v49 = vsel %vm2085_vm4, %v2080_v28, %v2082_v31  ;;  %v2087_v61 = vsel %vm2085_vm4, %v2082_v31, %v2084_v17 }
 0x20f   : > { %v2090_v45 = vsel %vm1845_vm10, %v2086_v49, 0.0  ;;  %v2091_v63 = vsel %vm1846_vm7, %v2087_v61, 0.0 }
 0x210   : > { %v2092_v44 = vadd.f32 %v2090_v45, %v1952_v9  ;;  %v2093_v56 = vadd.f32 %v2091_v63, %v1953_v38 }
 0x212   : > { %v2094_v13 = vadd.f32 %v2092_v44, %v1987_v59  ;;  %v2095_v27 = vadd.f32 %v2093_v56, %v1988_v35 }
 0x214   : > { %v2098_v1 = vadd.f32 %v2096_v34, %v2094_v13  ;;  %v2099_v58 = vadd.f32 %v2097_v50, %v2095_v27 }
 0x216   : > { %v2348_v18 = vmul.f32 -1.442695, %v2098_v1  ;;  %v2349_v33 = vmul.f32 -1.442695, %v2099_v58 }
 0x218   : > { %2481 = vpow2.f32 %v2348_v18 }
 0x219   : > { %2483 = vpow2.f32 %v2349_v33 }
 0x222   : > { %v2482_v30 = vpop.eup %2481 }
 0x223   : > { %v2484_v47 = vpop.eup %2483  ;;  %v2106_v25 = vadd.f32 1.0, %v2482_v30 }
 0x224   : > { %v2107_v40 = vadd.f32 1.0, %v2484_v47 }
 0x225   : > { %2485 = vrcp.f32 %v2106_v25 }
 0x226   : > { %2487 = vrcp.f32 %v2107_v40 }
 0x22f   : > { %v2486_v42 = vpop.eup %2485 }
 0x230   : > { %v2488_v36 = vpop.eup %2487 }
 0x231   : > { %v2114_v4 = vcombine.low %v2486_v42, %v2488_v36 }
 0x233   : > { %v2121_v57 = vrot.slane %v2114_v4, %v3906_v3 }
 0x235   : > { %v2128_v60 = vrot.slane %v2121_v57, %v3906_v3 }
 0x237   : > { %2130 = vst.msk [vmem:[%s189_s8] sm:$0x3] %vm2847_vm2, %v2128_v60 }
 0x238   : > { %2551 = shalt.err (!%p2548_p11)
}
 0x239   : > { %s2552_s21 = scalar_lea.hbm %s3791_s28, 32  ;;  %s2556_s23 = scalar_lea.hbm %s3844_s2, 64 }
 0x23a   : > { %p2553_p3 = scmp.ne.s32.totalorder %s3791_s28, %s2552_s21  ;;  %p2557_p6 = scmp.lt.u32.totalorder %s3791_s28, %s3844_s2 }
 0x23b   : > { %p2558_p1 = scmp.lt.u32.totalorder %s2556_s23, %s2552_s21  ;;  %p2560_p8 = scmp.lt.u32.totalorder %s2552_s21, %s3791_s28 }
 0x23c   : > { %p2554_p7 = pnand %p2553_p3, %p3908_p2 }
 0x23d   : > { %p2559_p0 = por %p2558_p1, %p2557_p6 }
 0x23e   : > { %p2555_p10 = pneg %p2554_p7 }
 0x23f   : > { %p2561_p12 = por %p2560_p8, %p2559_p0 }
 0x241   : > { %p2562_p5 = pnand %p2561_p12, %p2555_p10 }
 0x243   : > { %2565 = shalt.err (!%p2562_p5)
}
 0x244   : > { %2363 = dma.vmem_to_hbm [thread:$0]  (%p3908_p2), %s3793_s15, 32, %s3791_s28, %s2132_s12  }
 0x245 PF: > { %s2158_s6 = sand.u32 1, %s2604_s9   ;;  %p3909_p4 = scmp.ne.s32.totalorder %s3859_s20, 0 }
 0x246   : > { %p3910_p9 = scmp.ge.s32.totalorder %s2624_s14, 2  ;;  %s2159_s4 = scalar_lea.sflag [#allocation8], %s2158_s6 }
 0x248   : > { %p2374_p13 = pnand %p3910_p9, %p3909_p4 }
 0x24a   : > { %2599 = dma.done.wait (!%p2374_p13), %s2159_s4, 32  }
 0x24b   : > { %2601 = vsyncadd (!%p2374_p13), %s2159_s4, 4294967264  ;;  %s19_s14 = sadd.s32 1, %s2624_s14   ;;  %s3911_s9 = smov %s2608_s10 }
 0x24c   : > { %p16_p11 = scmp.ge.s32.totalorder %s19_s14, 4   ;;  %s3912_s10 = smov %s2612_s11 }
 0x24d   : > { %s3913_s11 = smov %s2786_s5  ;;  %s3914_s12 = smov %s2620_s13 }
 0x24e   : > { %s3915_s13 = smov %s3917_s26  ;;  %18 = sbr.rel (!%p16_p11) target bundleno = 7 (0x7), region = 90 }
 0x255   :  { %2164 = vsyncpa [#allocation7], 1 }
 0x256   :  { %2166 = vsyncpa [#allocation7 + $0x1], 1 }
 0x257   :  { %2167 = vsyncpa [#allocation8], 1 }
 0x258   :  { %2169 = vsyncpa [#allocation8 + $0x1], 1 }
 0x259   :  { %2170 = vsyncpa [#allocation9], 1 }
 0x25a   :  { %2172 = vsyncpa [#allocation9 + $0x1], 1 }

</bundles_post_ra>
